<compile_context>
chip_gen: v7x
topology: tpu7x:2x2x1
jax: 0.10.0
libtpu: 0.0.40
codegen_flags: <defaults>
</compile_context>

<pallas_src>
import jax
import jax.numpy as jnp
from jax import lax
from jax.experimental import pallas as pl
from jax.experimental.pallas import tpu as pltpu


# ----------------------------- XLA glue: trilinear upsample ------------------
def _upsample2_stencil_axis(x, axis):
    """PyTorch Upsample(scale=2, mode='*linear', align_corners=False) along one
    axis, written as shifted adds + even/odd interleave (no gathers)."""
    n = x.shape[axis]
    x_prev = jnp.concatenate(
        [lax.slice_in_dim(x, 0, 1, axis=axis),
         lax.slice_in_dim(x, 0, n - 1, axis=axis)], axis=axis)   # x[max(i-1, 0)]
    x_next = jnp.concatenate(
        [lax.slice_in_dim(x, 1, n, axis=axis),
         lax.slice_in_dim(x, n - 1, n, axis=axis)], axis=axis)   # x[min(i+1, n-1)]
    y_even = 0.75 * x + 0.25 * x_prev                            # output 2i
    y_odd = 0.75 * x + 0.25 * x_next                             # output 2i+1
    y = jnp.stack([y_even, y_odd], axis=axis + 1)
    shape = list(x.shape)
    shape[axis] = 2 * n
    return y.reshape(shape)


def _upsample_linear_axis(x, axis, scale):
    """General gather-based lerp (reference / non-2 strides)."""
    n = x.shape[axis]
    m = n * scale
    o = jnp.arange(m, dtype=jnp.float32)
    c = (o + 0.5) / scale - 0.5
    c = jnp.maximum(c, 0.0)
    i0 = jnp.minimum(jnp.floor(c).astype(jnp.int32), n - 1)
    i1 = jnp.minimum(i0 + 1, n - 1)
    w = c - i0.astype(jnp.float32)
    x0 = jnp.take(x, i0, axis=axis)
    x1 = jnp.take(x, i1, axis=axis)
    wshape = [1] * x.ndim
    wshape[axis] = m
    w = w.reshape(wshape)
    return x0 * (1.0 - w) + x1 * w


# ----------------------------- Pallas kernel ----------------------------------
def conv3d_bias_relu_kernel(x_ref, w_ref, b_ref, o_ref):
    # x_ref : (Dp, Hp, K)            bf16  upsampled + padded slab (lane-padded K)
    # w_ref : (3, 3, K, W2*Cout)     bf16  banded weights (kw, Cin folded into K)
    # b_ref : (1, W2*Cout)           f32
    # o_ref : (dt, H2, W2*Cout)      f32   lane-dense output tile
    dt, h, wco = o_ref.shape
    k = x_ref.shape[-1]

    # D window start for this tile (slab block is resident across the d axis).
    d0 = pl.multiple_of(pl.program_id(1) * dt, dt)

    # Bias-initialised value accumulator; 9 chained MXU dots, one store.
    acc = jnp.broadcast_to(b_ref[...], (dt * h, wco)).astype(jnp.float32)
    for kd in range(3):
        for kh in range(3):
            xs = x_ref[pl.ds(d0 + kd, dt), pl.ds(kh, h), :]      # bf16 (dt, h, K)
            xs = xs.reshape(dt * h, k)
            acc = acc + jax.lax.dot_general(
                xs, w_ref[kd, kh],
                (((1,), (0,)), ((), ())),
                preferred_element_type=jnp.float32)

    o_ref[...] = jnp.maximum(acc, 0.0).reshape(dt, h, wco).astype(o_ref.dtype)


# ----------------------------- wrapper ----------------------------------------
def upsampling_forward(x, weight, bias, stride=2, d_tile=None,
                       compute_dtype=jnp.bfloat16):
    """x: (N, Cin, D, H, W); weight: (Cout, Cin, 3, 3, 3); bias: (Cout,)."""
    N, Cin, D, H, W = x.shape
    Cout = weight.shape[0]
    D2, H2, W2 = D * stride, H * stride, W * stride
    Hp, Wp = H2 + 2, W2 + 2
    WCout = W2 * Cout
    itemsize = jnp.dtype(compute_dtype).itemsize

    # ---- D tiling: target M = dt*H2 ~ 256 rows per matmul; pad D2 up to a
    #      multiple of dt (crop afterwards) instead of shrinking dt.
    if d_tile is None:
        d_tile = max(1, 256 // max(H2, 1))
    dt = max(1, min(d_tile, D2))
    num_d = -(-D2 // dt)
    Dgrid = num_d * dt
    Dp = Dgrid + 2

    # Lane-pad the contraction axis to a multiple of 128 (MXU pads K anyway,
    # but this keeps loads and the (dt,h,K)->(dt*h,K) reshape lane-dense).
    K = Wp * Cin
    K128 = -(-K // 128) * 128

    # ---- glue: channels-last transpose on the SMALL pre-upsample tensor, then
    #      gather-free scale-2 lerp, halo pad, lane flatten + pad, bf16 cast
    #      (all fusable elementwise/pad ops — no HBM gather round trips).
    xl = jnp.transpose(x, (0, 2, 3, 4, 1)).astype(jnp.float32)       # (N,D,H,W,Cin)
    if stride == 2:
        for ax in (1, 2, 3):
            xl = _upsample2_stencil_axis(xl, ax)                     # (N,D2,H2,W2,Cin)
    else:
        for ax in (1, 2, 3):
            xl = _upsample_linear_axis(xl, ax, stride)
    xl = jnp.pad(xl, ((0, 0), (1, 1 + Dgrid - D2), (1, 1), (1, 1), (0, 0)))
    xl = xl.reshape(N, Dp, Hp, K)
    xl = jnp.pad(xl, ((0, 0), (0, 0), (0, 0), (0, K128 - K))).astype(compute_dtype)

    # ---- banded weight: wband[kd,kh,(wp,ci),(w,co)] = wt[kd,kh,wp-w,ci,co]
    #      (zero outside 0 <= wp-w <= 2), K zero-padded to K128.
    # TODO(synk): W-tile this band (K -> O(3*Cin) per output-W tile) for large W.
    wt = jnp.transpose(weight, (2, 3, 4, 1, 0)).astype(jnp.float32)  # (3,3,3,Cin,Cout)
    kw_off = jnp.arange(Wp)[:, None] - jnp.arange(W2)[None, :]       # (Wp, W2)
    valid = ((kw_off >= 0) & (kw_off <= 2)).astype(jnp.float32)
    wband = wt[:, :, jnp.clip(kw_off, 0, 2), :, :]                   # (3,3,Wp,W2,Cin,Cout)
    wband = wband * valid[None, None, :, :, None, None]
    wband = jnp.transpose(wband, (0, 1, 2, 4, 3, 5))                 # (3,3,Wp,Cin,W2,Cout)
    wband = wband.reshape(3, 3, K, WCout)
    wband = jnp.pad(wband, ((0, 0), (0, 0), (0, K128 - K), (0, 0))).astype(compute_dtype)

    bias_dense = jnp.tile(bias.astype(jnp.float32), (W2,)).reshape(1, WCout)

    # ---- VMEM budget from the actual pipeline footprint (double-buffered blocks
    #      + headroom for in-kernel temporaries); keeps v7x (64 MiB) happy.
    slab_b = Dp * Hp * K128 * itemsize
    wband_b = 9 * K128 * WCout * itemsize
    out_b = dt * H2 * WCout * 4
    footprint = 2 * (slab_b + wband_b + WCout * 4 + out_b)
    vmem_limit = int(min(100 * 2**20, max(footprint + 16 * 2**20, 32 * 2**20)))

    grid = (N, num_d)
    out = pl.pallas_call(
        conv3d_bias_relu_kernel,
        out_shape=jax.ShapeDtypeStruct((N, Dgrid, H2, WCout), jnp.float32),
        grid=grid,
        in_specs=[
            # Full padded slab per batch item; block index constant across d, so it
            # is DMA'd once per n and sliced in-kernel with the +2 halo.
            pl.BlockSpec((None, Dp, Hp, K128), lambda n, d: (n, 0, 0, 0)),
            pl.BlockSpec((3, 3, K128, WCout), lambda n, d: (0, 0, 0, 0)),
            pl.BlockSpec((1, WCout), lambda n, d: (0, 0)),
        ],
        out_specs=pl.BlockSpec((None, dt, H2, WCout), lambda n, d: (n, d, 0, 0)),
        compiler_params=pltpu.CompilerParams(
            dimension_semantics=("parallel", "parallel"),
            vmem_limit_bytes=vmem_limit,
        ),
    )(xl, wband, bias_dense)

    out = out[:, :D2]
    out = out.reshape(N, D2, H2, W2, Cout)
    return jnp.transpose(out, (0, 4, 1, 2, 3)).astype(x.dtype)       # back to NCDHW


# ----------------------------- reference (pure JAX) for sanity check ----------
def upsampling_reference(x, weight, bias, stride=2):
    x_up = x
    for ax in (2, 3, 4):
        x_up = _upsample_linear_axis(x_up, ax, stride)
    y = jax.lax.conv_general_dilated(
        x_up, weight, window_strides=(1, 1, 1),
        padding=((1, 1), (1, 1), (1, 1)),
        dimension_numbers=("NCDHW", "OIDHW", "NCDHW"))
    y = y + bias.reshape(1, -1, 1, 1, 1)
    return jnp.maximum(y, 0.0)


if __name__ == "__main__":
    key = jax.random.PRNGKey(0)
    k_x, k_w, k_b = jax.random.split(key, 3)

    N, Cin, Cout = 2, 4, 8
    D = H = W = 8                      # upsampled to 16^3 inside the module

    x = jax.random.normal(k_x, (N, Cin, D, H, W), dtype=jnp.float32)
    weight = 0.1 * jax.random.normal(k_w, (Cout, Cin, 3, 3, 3), dtype=jnp.float32)
    bias = 0.1 * jax.random.normal(k_b, (Cout,), dtype=jnp.float32)

    y = jax.block_until_ready(jax.jit(upsampling_forward)(x, weight, bias))
    y_ref = jax.block_until_ready(upsampling_reference(x, weight, bias, stride=2))

    assert y.shape == (N, Cout, 2 * D, 2 * H, 2 * W)
    # bf16 MXU operands (f32 accumulate) -> relaxed tolerance vs the f32 reference.
    assert jnp.allclose(y, y_ref, atol=5e-2, rtol=5e-2), float(
        jnp.max(jnp.abs(y - y_ref)))

    print("KERNEL_OK")
</pallas_src>

<mosaic_0001>
module attributes {stable_mosaic.version = 11 : i64} {
  func.func @conv3d_bias_relu_kernel(%arg0: i32, %arg1: i32, %arg2: memref<1x18x18x128xbf16, #tpu.memory_space<vmem>>, %arg3: memref<3x3x128x128xbf16, #tpu.memory_space<vmem>>, %arg4: memref<1x128xf32, #tpu.memory_space<vmem>>, %arg5: memref<1x16x16x128xf32, #tpu.memory_space<vmem>>) attributes {dimension_semantics = [#tpu.dimension_semantics<parallel>, #tpu.dimension_semantics<parallel>], iteration_bounds = array<i64: 2, 1>, scalar_prefetch = 0 : i64, scratch_operands = 0 : i64, tpu.core_type = #tpu.core_type<tc>, window_params = [{transform_indices = @transform_0, window_bounds = array<i64: 1, 18, 18, 128>}, {pipeline_mode = #tpu.pipeline_mode<synchronous>, transform_indices = @transform_1, window_bounds = array<i64: 3, 3, 128, 128>}, {pipeline_mode = #tpu.pipeline_mode<synchronous>, transform_indices = @transform_2, window_bounds = array<i64: 1, 128>}, {transform_indices = @transform_3, window_bounds = array<i64: 1, 16, 16, 128>}]} {
    %c16_i32 = arith.constant 16 : i32
    %0 = arith.muli %arg1, %c16_i32 : i32
    %1 = tpu.assume_multiple %0, 16 : i32
    %c0 = arith.constant 0 : index
    %c0_0 = arith.constant 0 : index
    %2 = vector.load %arg4[%c0, %c0_0] : memref<1x128xf32, #tpu.memory_space<vmem>>, vector<1x128xf32>
    %3 = vector.shape_cast %2 : vector<1x128xf32> to vector<1x128xf32>
    %4 = vector.broadcast %3 : vector<1x128xf32> to vector<256x128xf32>
    %c0_i32 = arith.constant 0 : i32
    %5 = arith.addi %1, %c0_i32 : i32
    %c0_1 = arith.constant 0 : index
    %6 = arith.index_cast %5 : i32 to index
    %c0_2 = arith.constant 0 : index
    %c0_3 = arith.constant 0 : index
    %7 = vector.load %arg2[%c0_1, %6, %c0_2, %c0_3] : memref<1x18x18x128xbf16, #tpu.memory_space<vmem>>, vector<1x16x16x128xbf16>
    %8 = vector.shape_cast %7 : vector<1x16x16x128xbf16> to vector<16x16x128xbf16>
    %9 = vector.shape_cast %8 : vector<16x16x128xbf16> to vector<256x128xbf16>
    %c0_4 = arith.constant 0 : index
    %c0_5 = arith.constant 0 : index
    %c0_6 = arith.constant 0 : index
    %c0_7 = arith.constant 0 : index
    %10 = vector.load %arg3[%c0_4, %c0_5, %c0_6, %c0_7] : memref<3x3x128x128xbf16, #tpu.memory_space<vmem>>, vector<1x1x128x128xbf16>
    %11 = vector.shape_cast %10 : vector<1x1x128x128xbf16> to vector<128x128xbf16>
    %cst = arith.constant dense<0.000000e+00> : vector<256x128xf32>
    %12 = tpu.matmul %9, %11, %cst {dimension_numbers = #tpu.dot_dimension_numbers<[1], [0], [0], [1], [0, 0, 1, 1], [], []>} : vector<256x128xbf16>, vector<128x128xbf16>, vector<256x128xf32> -> vector<256x128xf32>
    %13 = arith.addf %4, %12 : vector<256x128xf32>
    %c0_i32_8 = arith.constant 0 : i32
    %14 = arith.addi %1, %c0_i32_8 : i32
    %c0_9 = arith.constant 0 : index
    %15 = arith.index_cast %14 : i32 to index
    %c1 = arith.constant 1 : index
    %c0_10 = arith.constant 0 : index
    %16 = vector.load %arg2[%c0_9, %15, %c1, %c0_10] : memref<1x18x18x128xbf16, #tpu.memory_space<vmem>>, vector<1x16x16x128xbf16>
    %17 = vector.shape_cast %16 : vector<1x16x16x128xbf16> to vector<16x16x128xbf16>
    %18 = vector.shape_cast %17 : vector<16x16x128xbf16> to vector<256x128xbf16>
    %c0_11 = arith.constant 0 : index
    %c1_12 = arith.constant 1 : index
    %c0_13 = arith.constant 0 : index
    %c0_14 = arith.constant 0 : index
    %19 = vector.load %arg3[%c0_11, %c1_12, %c0_13, %c0_14] : memref<3x3x128x128xbf16, #tpu.memory_space<vmem>>, vector<1x1x128x128xbf16>
    %20 = vector.shape_cast %19 : vector<1x1x128x128xbf16> to vector<128x128xbf16>
    %cst_15 = arith.constant dense<0.000000e+00> : vector<256x128xf32>
    %21 = tpu.matmul %18, %20, %cst_15 {dimension_numbers = #tpu.dot_dimension_numbers<[1], [0], [0], [1], [0, 0, 1, 1], [], []>} : vector<256x128xbf16>, vector<128x128xbf16>, vector<256x128xf32> -> vector<256x128xf32>
    %22 = arith.addf %13, %21 : vector<256x128xf32>
    %c0_i32_16 = arith.constant 0 : i32
    %23 = arith.addi %1, %c0_i32_16 : i32
    %c0_17 = arith.constant 0 : index
    %24 = arith.index_cast %23 : i32 to index
    %c2 = arith.constant 2 : index
    %c0_18 = arith.constant 0 : index
    %25 = vector.load %arg2[%c0_17, %24, %c2, %c0_18] : memref<1x18x18x128xbf16, #tpu.memory_space<vmem>>, vector<1x16x16x128xbf16>
    %26 = vector.shape_cast %25 : vector<1x16x16x128xbf16> to vector<16x16x128xbf16>
    %27 = vector.shape_cast %26 : vector<16x16x128xbf16> to vector<256x128xbf16>
    %c0_19 = arith.constant 0 : index
    %c2_20 = arith.constant 2 : index
    %c0_21 = arith.constant 0 : index
    %c0_22 = arith.constant 0 : index
    %28 = vector.load %arg3[%c0_19, %c2_20, %c0_21, %c0_22] : memref<3x3x128x128xbf16, #tpu.memory_space<vmem>>, vector<1x1x128x128xbf16>
    %29 = vector.shape_cast %28 : vector<1x1x128x128xbf16> to vector<128x128xbf16>
    %cst_23 = arith.constant dense<0.000000e+00> : vector<256x128xf32>
    %30 = tpu.matmul %27, %29, %cst_23 {dimension_numbers = #tpu.dot_dimension_numbers<[1], [0], [0], [1], [0, 0, 1, 1], [], []>} : vector<256x128xbf16>, vector<128x128xbf16>, vector<256x128xf32> -> vector<256x128xf32>
    %31 = arith.addf %22, %30 : vector<256x128xf32>
    %c1_i32 = arith.constant 1 : i32
    %32 = arith.addi %1, %c1_i32 : i32
    %c0_24 = arith.constant 0 : index
    %33 = arith.index_cast %32 : i32 to index
    %c0_25 = arith.constant 0 : index
    %c0_26 = arith.constant 0 : index
    %34 = vector.load %arg2[%c0_24, %33, %c0_25, %c0_26] : memref<1x18x18x128xbf16, #tpu.memory_space<vmem>>, vector<1x16x16x128xbf16>
    %35 = vector.shape_cast %34 : vector<1x16x16x128xbf16> to vector<16x16x128xbf16>
    %36 = vector.shape_cast %35 : vector<16x16x128xbf16> to vector<256x128xbf16>
    %c1_27 = arith.constant 1 : index
    %c0_28 = arith.constant 0 : index
    %c0_29 = arith.constant 0 : index
    %c0_30 = arith.constant 0 : index
    %37 = vector.load %arg3[%c1_27, %c0_28, %c0_29, %c0_30] : memref<3x3x128x128xbf16, #tpu.memory_space<vmem>>, vector<1x1x128x128xbf16>
    %38 = vector.shape_cast %37 : vector<1x1x128x128xbf16> to vector<128x128xbf16>
    %cst_31 = arith.constant dense<0.000000e+00> : vector<256x128xf32>
    %39 = tpu.matmul %36, %38, %cst_31 {dimension_numbers = #tpu.dot_dimension_numbers<[1], [0], [0], [1], [0, 0, 1, 1], [], []>} : vector<256x128xbf16>, vector<128x128xbf16>, vector<256x128xf32> -> vector<256x128xf32>
    %40 = arith.addf %31, %39 : vector<256x128xf32>
    %c1_i32_32 = arith.constant 1 : i32
    %41 = arith.addi %1, %c1_i32_32 : i32
    %c0_33 = arith.constant 0 : index
    %42 = arith.index_cast %41 : i32 to index
    %c1_34 = arith.constant 1 : index
    %c0_35 = arith.constant 0 : index
    %43 = vector.load %arg2[%c0_33, %42, %c1_34, %c0_35] : memref<1x18x18x128xbf16, #tpu.memory_space<vmem>>, vector<1x16x16x128xbf16>
    %44 = vector.shape_cast %43 : vector<1x16x16x128xbf16> to vector<16x16x128xbf16>
    %45 = vector.shape_cast %44 : vector<16x16x128xbf16> to vector<256x128xbf16>
    %c1_36 = arith.constant 1 : index
    %c1_37 = arith.constant 1 : index
    %c0_38 = arith.constant 0 : index
    %c0_39 = arith.constant 0 : index
    %46 = vector.load %arg3[%c1_36, %c1_37, %c0_38, %c0_39] : memref<3x3x128x128xbf16, #tpu.memory_space<vmem>>, vector<1x1x128x128xbf16>
    %47 = vector.shape_cast %46 : vector<1x1x128x128xbf16> to vector<128x128xbf16>
    %cst_40 = arith.constant dense<0.000000e+00> : vector<256x128xf32>
    %48 = tpu.matmul %45, %47, %cst_40 {dimension_numbers = #tpu.dot_dimension_numbers<[1], [0], [0], [1], [0, 0, 1, 1], [], []>} : vector<256x128xbf16>, vector<128x128xbf16>, vector<256x128xf32> -> vector<256x128xf32>
    %49 = arith.addf %40, %48 : vector<256x128xf32>
    %c1_i32_41 = arith.constant 1 : i32
    %50 = arith.addi %1, %c1_i32_41 : i32
    %c0_42 = arith.constant 0 : index
    %51 = arith.index_cast %50 : i32 to index
    %c2_43 = arith.constant 2 : index
    %c0_44 = arith.constant 0 : index
    %52 = vector.load %arg2[%c0_42, %51, %c2_43, %c0_44] : memref<1x18x18x128xbf16, #tpu.memory_space<vmem>>, vector<1x16x16x128xbf16>
    %53 = vector.shape_cast %52 : vector<1x16x16x128xbf16> to vector<16x16x128xbf16>
    %54 = vector.shape_cast %53 : vector<16x16x128xbf16> to vector<256x128xbf16>
    %c1_45 = arith.constant 1 : index
    %c2_46 = arith.constant 2 : index
    %c0_47 = arith.constant 0 : index
    %c0_48 = arith.constant 0 : index
    %55 = vector.load %arg3[%c1_45, %c2_46, %c0_47, %c0_48] : memref<3x3x128x128xbf16, #tpu.memory_space<vmem>>, vector<1x1x128x128xbf16>
    %56 = vector.shape_cast %55 : vector<1x1x128x128xbf16> to vector<128x128xbf16>
    %cst_49 = arith.constant dense<0.000000e+00> : vector<256x128xf32>
    %57 = tpu.matmul %54, %56, %cst_49 {dimension_numbers = #tpu.dot_dimension_numbers<[1], [0], [0], [1], [0, 0, 1, 1], [], []>} : vector<256x128xbf16>, vector<128x128xbf16>, vector<256x128xf32> -> vector<256x128xf32>
    %58 = arith.addf %49, %57 : vector<256x128xf32>
    %c2_i32 = arith.constant 2 : i32
    %59 = arith.addi %1, %c2_i32 : i32
    %c0_50 = arith.constant 0 : index
    %60 = arith.index_cast %59 : i32 to index
    %c0_51 = arith.constant 0 : index
    %c0_52 = arith.constant 0 : index
    %61 = vector.load %arg2[%c0_50, %60, %c0_51, %c0_52] : memref<1x18x18x128xbf16, #tpu.memory_space<vmem>>, vector<1x16x16x128xbf16>
    %62 = vector.shape_cast %61 : vector<1x16x16x128xbf16> to vector<16x16x128xbf16>
    %63 = vector.shape_cast %62 : vector<16x16x128xbf16> to vector<256x128xbf16>
    %c2_53 = arith.constant 2 : index
    %c0_54 = arith.constant 0 : index
    %c0_55 = arith.constant 0 : index
    %c0_56 = arith.constant 0 : index
    %64 = vector.load %arg3[%c2_53, %c0_54, %c0_55, %c0_56] : memref<3x3x128x128xbf16, #tpu.memory_space<vmem>>, vector<1x1x128x128xbf16>
    %65 = vector.shape_cast %64 : vector<1x1x128x128xbf16> to vector<128x128xbf16>
    %cst_57 = arith.constant dense<0.000000e+00> : vector<256x128xf32>
    %66 = tpu.matmul %63, %65, %cst_57 {dimension_numbers = #tpu.dot_dimension_numbers<[1], [0], [0], [1], [0, 0, 1, 1], [], []>} : vector<256x128xbf16>, vector<128x128xbf16>, vector<256x128xf32> -> vector<256x128xf32>
    %67 = arith.addf %58, %66 : vector<256x128xf32>
    %c2_i32_58 = arith.constant 2 : i32
    %68 = arith.addi %1, %c2_i32_58 : i32
    %c0_59 = arith.constant 0 : index
    %69 = arith.index_cast %68 : i32 to index
    %c1_60 = arith.constant 1 : index
    %c0_61 = arith.constant 0 : index
    %70 = vector.load %arg2[%c0_59, %69, %c1_60, %c0_61] : memref<1x18x18x128xbf16, #tpu.memory_space<vmem>>, vector<1x16x16x128xbf16>
    %71 = vector.shape_cast %70 : vector<1x16x16x128xbf16> to vector<16x16x128xbf16>
    %72 = vector.shape_cast %71 : vector<16x16x128xbf16> to vector<256x128xbf16>
    %c2_62 = arith.constant 2 : index
    %c1_63 = arith.constant 1 : index
    %c0_64 = arith.constant 0 : index
    %c0_65 = arith.constant 0 : index
    %73 = vector.load %arg3[%c2_62, %c1_63, %c0_64, %c0_65] : memref<3x3x128x128xbf16, #tpu.memory_space<vmem>>, vector<1x1x128x128xbf16>
    %74 = vector.shape_cast %73 : vector<1x1x128x128xbf16> to vector<128x128xbf16>
    %cst_66 = arith.constant dense<0.000000e+00> : vector<256x128xf32>
    %75 = tpu.matmul %72, %74, %cst_66 {dimension_numbers = #tpu.dot_dimension_numbers<[1], [0], [0], [1], [0, 0, 1, 1], [], []>} : vector<256x128xbf16>, vector<128x128xbf16>, vector<256x128xf32> -> vector<256x128xf32>
    %76 = arith.addf %67, %75 : vector<256x128xf32>
    %c2_i32_67 = arith.constant 2 : i32
    %77 = arith.addi %1, %c2_i32_67 : i32
    %c0_68 = arith.constant 0 : index
    %78 = arith.index_cast %77 : i32 to index
    %c2_69 = arith.constant 2 : index
    %c0_70 = arith.constant 0 : index
    %79 = vector.load %arg2[%c0_68, %78, %c2_69, %c0_70] : memref<1x18x18x128xbf16, #tpu.memory_space<vmem>>, vector<1x16x16x128xbf16>
    %80 = vector.shape_cast %79 : vector<1x16x16x128xbf16> to vector<16x16x128xbf16>
    %81 = vector.shape_cast %80 : vector<16x16x128xbf16> to vector<256x128xbf16>
    %c2_71 = arith.constant 2 : index
    %c2_72 = arith.constant 2 : index
    %c0_73 = arith.constant 0 : index
    %c0_74 = arith.constant 0 : index
    %82 = vector.load %arg3[%c2_71, %c2_72, %c0_73, %c0_74] : memref<3x3x128x128xbf16, #tpu.memory_space<vmem>>, vector<1x1x128x128xbf16>
    %83 = vector.shape_cast %82 : vector<1x1x128x128xbf16> to vector<128x128xbf16>
    %cst_75 = arith.constant dense<0.000000e+00> : vector<256x128xf32>
    %84 = tpu.matmul %81, %83, %cst_75 {dimension_numbers = #tpu.dot_dimension_numbers<[1], [0], [0], [1], [0, 0, 1, 1], [], []>} : vector<256x128xbf16>, vector<128x128xbf16>, vector<256x128xf32> -> vector<256x128xf32>
    %85 = arith.addf %76, %84 : vector<256x128xf32>
    %cst_76 = arith.constant 0.000000e+00 : f32
    %86 = vector.broadcast %cst_76 : f32 to vector<256x128xf32>
    %87 = arith.maximumf %85, %86 : vector<256x128xf32>
    %88 = vector.shape_cast %87 : vector<256x128xf32> to vector<16x16x128xf32>
    %c0_77 = arith.constant 0 : index
    %c0_78 = arith.constant 0 : index
    %c0_79 = arith.constant 0 : index
    %c0_80 = arith.constant 0 : index
    %89 = vector.load %arg5[%c0_77, %c0_78, %c0_79, %c0_80] : memref<1x16x16x128xf32, #tpu.memory_space<vmem>>, vector<1x16x16x128xf32>
    %90 = vector.shape_cast %89 : vector<1x16x16x128xf32> to vector<16x16x128xf32>
    %91 = vector.shape_cast %88 : vector<16x16x128xf32> to vector<1x16x16x128xf32>
    tpu.vector_store %arg5[%c0_77, %c0_78, %c0_79, %c0_80], %91 {strides = array<i32>} : memref<1x16x16x128xf32, #tpu.memory_space<vmem>>, vector<1x16x16x128xf32>,
    return
  }
  func.func @transform_0(%arg0: i32, %arg1: i32) -> (i32, i32, i32, i32) {
    %c0_i32 = arith.constant 0 : i32
    %c0_i32_0 = arith.constant 0 : i32
    %c0_i32_1 = arith.constant 0 : i32
    %c0_i32_2 = arith.constant 0 : i32
    return %arg0, %c0_i32, %c0_i32_0, %c0_i32_1 : i32, i32, i32, i32
  }
  func.func @transform_1(%arg0: i32, %arg1: i32) -> (i32, i32, i32, i32) {
    %c0_i32 = arith.constant 0 : i32
    %c0_i32_0 = arith.constant 0 : i32
    %c0_i32_1 = arith.constant 0 : i32
    %c0_i32_2 = arith.constant 0 : i32
    %c0_i32_3 = arith.constant 0 : i32
    return %c0_i32, %c0_i32_0, %c0_i32_1, %c0_i32_2 : i32, i32, i32, i32
  }
  func.func @transform_2(%arg0: i32, %arg1: i32) -> (i32, i32) {
    %c0_i32 = arith.constant 0 : i32
    %c0_i32_0 = arith.constant 0 : i32
    %c0_i32_1 = arith.constant 0 : i32
    return %c0_i32, %c0_i32_0 : i32, i32
  }
  func.func @transform_3(%arg0: i32, %arg1: i32) -> (i32, i32, i32, i32) {
    %c0_i32 = arith.constant 0 : i32
    %c0_i32_0 = arith.constant 0 : i32
    %c0_i32_1 = arith.constant 0 : i32
    return %arg0, %arg1, %c0_i32, %c0_i32_0 : i32, i32, i32, i32
  }
}

</mosaic_0001>

<bundles_post_ra>
// kernel: tile.8
= control target key start
LH: loop header
LB: loop body
LE: loop exit
PB: predicated region body
PF: predicated region fallthrough
CT: control target
= control target key end

     0   :  { %s28_s0 = inlined_call_operand.vmem [shape: f32[8], index: 0, kind: input, shape index: {}]   ;;  %s29_s1 = inlined_call_operand.vmem [shape: f32[16,8], index: 1, kind: output, shape index: {}]  }
   0x1   :  { %v4_v0 = vld [vmem:[%s28_s0] ss:$0 sm:$0xff] }
   0x2   :  { %5 = vst [vmem:[%s29_s1] sm:$0xff] %v4_v0  ;;  %8 = vst [vmem:[%s29_s1 + $0x8] sm:$0xff] %v4_v0 }

// kernel: tile.9
= control target key start
LH: loop header
LB: loop body
LE: loop exit
PB: predicated region body
PF: predicated region fallthrough
CT: control target
= control target key end

     0   :  { %s131_s10 = smov 120   ;;  %s132_s11 = smov 104   ;;  %vm3_vm0 = vcmask 64512   ;;  %vm9_vm1 = vcmask 1048512   ;;  %vm15_vm2 = vcmask 982912   ;;  %vm21_vm3 = vcmask 917312   ;;  %s207_s0 = inlined_call_operand.vmem [shape: f32[16,8], index: 0, kind: input, shape index: {}]   ;;  %s208_s1 = inlined_call_operand.vmem [shape: f32[1,128], index: 1, kind: output, shape index: {}]  }
   0x1   :  { %v101_v0 = vld [vmem:[%s207_s0 + $0xf] sm:$0x1]   ;;  %v103_v1 = vld [vmem:[%s207_s0 + $0xd] sm:$0x1]   ;;  %v102_v2 = vld [vmem:[%s207_s0 + $0xe] sm:$0x1]  }
   0x2   :  { %7 = vrot.lane.b32.xlu0 %v101_v0, %s131_s10  ;;  %19 = vrot.lane.b32.xlu1 %v103_v1, %s132_s11  ;;  %v104_v3 = vld [vmem:[%s207_s0 + $0xc] sm:$0x1]   ;;  %s133_s16 = smov 112   ;;  %s134_s17 = smov 96   ;;  %v105_v4 = vld [vmem:[%s207_s0 + $0xb] sm:$0x1]  }
   0x3   :  { %v106_v5 = vld [vmem:[%s207_s0 + $0xa] sm:$0x1]   ;;  %v2_v6 = vld [vmem:[%s207_s0] sm:$0x1]   ;;  %s135_s24 = smov 88   ;;  %s136_s25 = smov 80  }
   0x4   :  { %4 = vst.msk [vmem:[#allocation0] sm:$0x1] %vm3_vm0, %v2_v6   ;;  %v107_v7 = vld [vmem:[%s207_s0 + $0x9] sm:$0x1]   ;;  %v108_v8 = vld [vmem:[%s207_s0 + $0x8] sm:$0x1]  }
   0x5   :  { %s137_s30 = smov 72   ;;  %s138_s2 = smov 64   ;;  %v109_v9 = vld [vmem:[%s207_s0 + $0x7] sm:$0x1]   ;;  %v110_v10 = vld [vmem:[%s207_s0 + $0x6] sm:$0x1]  }
   0x6   :  { %13 = vrot.lane.b32.xlu0 %v102_v2, %s133_s16  ;;  %25 = vrot.lane.b32.xlu1 %v104_v3, %s134_s17  ;;  %s139_s7 = smov 56   ;;  %s140_s8 = smov 48   ;;  %v111_v11 = vld [vmem:[%s207_s0 + $0x5] sm:$0x1]   ;;  %v112_v12 = vld [vmem:[%s207_s0 + $0x4] sm:$0x1]  }
   0x7   :  { %s141_s13 = smov 40   ;;  %s142_s14 = smov 32   ;;  %v113_v13 = vld [vmem:[%s207_s0 + $0x3] sm:$0x1]   ;;  %v114_v14 = vld [vmem:[%s207_s0 + $0x2] sm:$0x1]  }
   0x8   :  { %s143_s19 = smov 24   ;;  %s144_s20 = smov 16   ;;  %v115_v15 = vld [vmem:[%s207_s0 + $0x1] sm:$0x1]   ;;  %vm27_vm4 = vcmask 851712   ;;  %vm33_vm5 = vcmask 786112  }
   0x9   :  { %s145_s0 = smov 8   ;;  %vm39_vm6 = vcmask 720512   ;;  %vm45_vm7 = vcmask 654912   ;;  %vm51_vm8 = vcmask 589312   ;;  %vm57_vm9 = vcmask 523712  }
   0xa   :  { %31 = vrot.lane.b32.xlu0 %v105_v4, %s135_s24  ;;  %37 = vrot.lane.b32.xlu1 %v106_v5, %s136_s25  ;;  %vm63_vm10 = vcmask 458112   ;;  %vm69_vm11 = vcmask 392512   ;;  %vm75_vm12 = vcmask 326912   ;;  %vm81_vm13 = vcmask 261312  }
   0xb   :  { %vm87_vm14 = vcmask 195712   ;;  %vm93_vm15 = vcmask 130112  }
   0xe   :  { %43 = vrot.lane.b32.xlu0 %v107_v7, %s137_s30  ;;  %49 = vrot.lane.b32.xlu1 %v108_v8, %s138_s2 }
  0x12   :  { %55 = vrot.lane.b32.xlu0 %v109_v9, %s139_s7  ;;  %61 = vrot.lane.b32.xlu1 %v110_v10, %s140_s8 }
  0x16   :  { %67 = vrot.lane.b32.xlu0 %v111_v11, %s141_s13  ;;  %73 = vrot.lane.b32.xlu1 %v112_v12, %s142_s14 }
  0x1a   :  { %79 = vrot.lane.b32.xlu0 %v113_v13, %s143_s19  ;;  %85 = vrot.lane.b32.xlu1 %v114_v14, %s144_s20 }
  0x1e   :  { %91 = vrot.lane.b32.xlu0 %v115_v15, %s145_s0 }
  0x74   :  { %v8_v16 = vpop.permute.xlu0 %7   ;;  %v20_v17 = vpop.permute.xlu1 %19  }
  0x75   :  { %10 = vst.msk [vmem:[#allocation0] sm:$0x1] %vm9_vm1, %v8_v16  }
  0x78   :  { %v14_v18 = vpop.permute.xlu0 %13   ;;  %v26_v19 = vpop.permute.xlu1 %25  }
  0x79   :  { %16 = vst.msk [vmem:[#allocation0] sm:$0x1] %vm15_vm2, %v14_v18  }
  0x7a   :  { %22 = vst.msk [vmem:[#allocation0] sm:$0x1] %vm21_vm3, %v20_v17  }
  0x7b   :  { %28 = vst.msk [vmem:[#allocation0] sm:$0x1] %vm27_vm4, %v26_v19  }
  0x7c   :  { %v32_v20 = vpop.permute.xlu0 %31   ;;  %v38_v21 = vpop.permute.xlu1 %37  }
  0x7d   :  { %34 = vst.msk [vmem:[#allocation0] sm:$0x1] %vm33_vm5, %v32_v20  }
  0x7e   :  { %40 = vst.msk [vmem:[#allocation0] sm:$0x1] %vm39_vm6, %v38_v21  }
  0x80   :  { %v44_v22 = vpop.permute.xlu0 %43   ;;  %v50_v23 = vpop.permute.xlu1 %49  }
  0x81   :  { %46 = vst.msk [vmem:[#allocation0] sm:$0x1] %vm45_vm7, %v44_v22  }
  0x82   :  { %52 = vst.msk [vmem:[#allocation0] sm:$0x1] %vm51_vm8, %v50_v23  }
  0x84   :  { %v56_v24 = vpop.permute.xlu0 %55   ;;  %v62_v25 = vpop.permute.xlu1 %61  }
  0x85   :  { %58 = vst.msk [vmem:[#allocation0] sm:$0x1] %vm57_vm9, %v56_v24  }
  0x86   :  { %64 = vst.msk [vmem:[#allocation0] sm:$0x1] %vm63_vm10, %v62_v25  }
  0x88   :  { %v68_v26 = vpop.permute.xlu0 %67   ;;  %v74_v27 = vpop.permute.xlu1 %73  }
  0x89   :  { %70 = vst.msk [vmem:[#allocation0] sm:$0x1] %vm69_vm11, %v68_v26  }
  0x8a   :  { %76 = vst.msk [vmem:[#allocation0] sm:$0x1] %vm75_vm12, %v74_v27  }
  0x8c   :  { %v80_v28 = vpop.permute.xlu0 %79   ;;  %v86_v29 = vpop.permute.xlu1 %85  }
  0x8d   :  { %82 = vst.msk [vmem:[#allocation0] sm:$0x1] %vm81_vm13, %v80_v28  }
  0x8e   :  { %88 = vst.msk [vmem:[#allocation0] sm:$0x1] %vm87_vm14, %v86_v29  }
  0x90   :  { %v92_v30 = vpop.permute.xlu0 %91  }
  0x91   :  { %94 = vst.msk [vmem:[#allocation0] sm:$0x1] %vm93_vm15, %v92_v30  }
  0x98   :  { %v98_v31 = vld [vmem:[#allocation0] sm:$0x1] }
  0x99   :  { %100 = vst [vmem:[%s208_s1] sm:$0x1] %v98_v31 }

// kernel: upsampling_forward.1
= control target key start
LH: loop header
LB: loop body
LE: loop exit
PB: predicated region body
PF: predicated region fallthrough
CT: control target
= control target key end

     0   :  { %s7063_s12 = smov 0   ;;  %s7065_s13 = smov 0   ;;  %s8675_s0 = inlined_call_operand.vmem [shape: bf16[2,18,18,128], index: 0, kind: input, shape index: {}]   ;;  %s8676_s1 = inlined_call_operand.vmem [shape: bf16[3,3,128,128], index: 1, kind: input, shape index: {}]   ;;  %s8677_s2 = inlined_call_operand.vmem [shape: f32[1,128], index: 2, kind: input, shape index: {}]   ;;  %s8678_s3 = inlined_call_operand.vmem [shape: f32[2,16,16,128], index: 3, kind: output, shape index: {}]  }
   0x1   :  { %s7067_s14 = smov 0  }
   0x2 LB: > { %s25_s15 = sadd.s32 1, %s7037_s13  ;;  %p5300_p0 = scmp.ge.s32.totalorder %s7041_s14, 1  ;;  %s7041_s14 = sphi %s7067_s14, %s13_s14   ;;  %s7037_s13 = sphi %s7065_s13, %s8684_s13   ;;  %s7033_s12 = sphi %s7063_s12, %s8683_s12  }
   0x3   : > { %p27_p1 = scmp.ge.s32.totalorder %s25_s15, 2  ;;  %p151_p2 = scmp.lt.s32.totalorder %s7041_s14, 3 }
   0x5   : > { %s8686_s15 = smov (%p27_p1, %s25_s15), 0  ;;  %p152_p3 = pnand %p5300_p0, %p151_p2 }
   0x6   : > { %v6869_v0 = vld [vmem:[%s8676_s1] sm:$0xff] (!%p152_p3)   ;;  %v6871_v2 = vld [vmem:[%s8676_s1 + $0x8] sm:$0xff] (!%p152_p3)   ;;  %p180_p4 = scmp.lt.s32.totalorder (!%p152_p3), %s7033_s12, 1  ;;  %v6873_v4 = vld [vmem:[%s8676_s1 + $0x10] sm:$0xff] (!%p152_p3)   ;;  %vm641_vm0 = vsmask.f32 (!%p152_p3), 3328 }
   0x7   : > { %155 = sbr.rel (%p152_p3) target bundleno = 547 (0x223), region = 32  ;;  %v6870_v1 = vld [vmem:[%s8676_s1 + $0x100] sm:$0xff] (!%p152_p3)   ;;  %6108 = vmatprep.subr.bf16.mxu1 (!%p152_p3), %v6869_v0  ;;  %v6872_v3 = vld [vmem:[%s8676_s1 + $0x108] sm:$0xff] (!%p152_p3)   ;;  %v6874_v5 = vld [vmem:[%s8676_s1 + $0x110] sm:$0xff] (!%p152_p3)   ;;  %vm642_vm1 = vsmask.f32 (!%p152_p3), 7440 }
   0x8   : > { %6300 = vmatprep.subr.bf16.mxu0 (!%p152_p3), %v6870_v1  ;;  %6109 = vmatpush3.bf16.msra.mxu1 (!%p152_p3), %v6869_v0  ;;  %v6875_v6 = vld [vmem:[%s8676_s1 + $0x18] sm:$0xff] (!%p152_p3)   ;;  %v6877_v8 = vld [vmem:[%s8676_s1 + $0x20] sm:$0xff] (!%p152_p3)   ;;  %v6879_v10 = vld [vmem:[%s8676_s1 + $0x28] sm:$0xff] (!%p152_p3)   ;;  %vm1414_vm3 = vcmask (!%p152_p3), 1042432   ;;  %vm1415_vm4 = vcmask (!%p152_p3), 1046532  }
   0x9   : > { %6301 = vmatpush3.bf16.msra.mxu0 (!%p152_p3), %v6870_v1  ;;  %6110 = vmatprep.subr.bf16.mxu1 (!%p152_p3), %v6871_v2  ;;  %v6876_v7 = vld [vmem:[%s8676_s1 + $0x118] sm:$0xff] (!%p152_p3)   ;;  %v6878_v9 = vld [vmem:[%s8676_s1 + $0x120] sm:$0xff] (!%p152_p3)   ;;  %v6880_v12 = vld [vmem:[%s8676_s1 + $0x128] sm:$0xff] (!%p152_p3)  }
   0xa   : > { %6302 = vmatprep.subr.bf16.mxu0 (!%p152_p3), %v6872_v3  ;;  %v6881_v18 = vld [vmem:[%s8676_s1 + $0x30] sm:$0xff] (!%p152_p3)   ;;  %v6883_v28 = vld [vmem:[%s8676_s1 + $0x38] sm:$0xff] (!%p152_p3)   ;;  %vm7153_vm2 = vmor (!%p152_p3), %vm641_vm0, %vm642_vm1 }
   0xb   : > { %v6882_v24 = vld [vmem:[%s8676_s1 + $0x130] sm:$0xff] (!%p152_p3)   ;;  %v6884_v32 = vld [vmem:[%s8676_s1 + $0x138] sm:$0xff] (!%p152_p3)   ;;  %v6887_v49 = vld [vmem:[%s8676_s1 + $0x40] sm:$0xff] (!%p152_p3)  }
   0xc   : > { %6111 = vmatpush3.bf16.msra.mxu1 (!%p152_p3), %v6871_v2  ;;  %v6888_v55 = vld [vmem:[%s8676_s1 + $0x140] sm:$0xff] (!%p152_p3)   ;;  %vm7301_vm5 = vmor (!%p152_p3), %vm1414_vm3, %vm1415_vm4 }
   0xd   : > { %6303 = vmatpush3.bf16.msra.mxu0 (!%p152_p3), %v6872_v3  ;;  %6112 = vmatprep.subr.bf16.mxu1 (!%p152_p3), %v6873_v4 }
   0xe   : > { %s8688_s12 = smov (!%p180_p4, %s7033_s12), 1  ;;  %6304 = vmatprep.subr.bf16.mxu0 %v6874_v5 }
   0xf   : > { %s6844_s5 = smul.u32 216, %s8688_s12  ;;  %s5891_s26 = sshll.u32 %s8688_s12, 8 }
  0x10   : > { %6113 = vmatpush3.bf16.msra.mxu1 %v6873_v4  ;;  %s8600_s29 = scalar_lea.vmem %s8678_s3, %s5891_s26 }
  0x11   : > { %6305 = vmatpush3.bf16.msra.mxu0 %v6874_v5  ;;  %6114 = vmatprep.subr.bf16.mxu1 %v6875_v6  ;;  %s7117_s16 = scalar_lea.vmem %s8675_s0, %s6844_s5 }
  0x12   : > { %6306 = vmatprep.subr.bf16.mxu0 %v6876_v7  ;;  %v6885_v11 = vld [vmem:[%s7117_s16] sm:$0xff]   ;;  %v5497_v13 = vld [vmem:[%s7117_s16 + $0xc] sm:$0xf]  ;;  %v7128_v14 = vld [vmem:[%s7117_s16 + $0x10] sm:$0xf] }
  0x13   : > { %6124 = vmatprep.mubr.bf16.mxu1 %v6885_v11  ;;  %v7131_v15 = vld [vmem:[%s7117_s16 + $0x14] sm:$0x1]  ;;  %v2290_v16 = vshrl.u32 %v5497_v13, 16  ;;  %v2293_v17 = vshll.u32 %v5497_v13, 16  ;;  %v2299_v19 = vshll.u32 %v7128_v14, 16  ;;  %v2303_v20 = vshrl.u32 %v7128_v14, 16 }
  0x14   : > { %6115 = vmatpush3.bf16.msra.mxu1 %v6875_v6  ;;  %v2309_v21 = vshll.u32 %v7131_v15, 16  ;;  %v5500_v30 = vld [vmem:[%s7117_s16 + $0x18] sm:$0xf]  ;;  %v7147_v31 = vld [vmem:[%s7117_s16 + $0x1c] sm:$0xf]  ;;  %v3064_v48 = vrot.slane %v7131_v15, 5 }
  0x15   : > { %6307 = vmatpush3.bf16.msra.mxu0 %v6876_v7  ;;  %6116 = vmatprep.subr.bf16.mxu1 %v6877_v8  ;;  %v2292_v22 = vrot.slane %v2290_v16, 4  ;;  %v2295_v23 = vrot.slane %v2293_v17, 5  ;;  %v2301_v25 = vrot.slane %v2299_v19, 5  ;;  %v2305_v26 = vrot.slane %v2303_v20, 4  ;;  %v7158_v35 = vld [vmem:[%s7117_s16 + $0x20] sm:$0x1] }
  0x16   : > { %6308 = vmatprep.subr.bf16.mxu0 %v6878_v9  ;;  %v2311_v27 = vrot.slane %v2309_v21, 5  ;;  %v2314_v36 = vshrl.u32 %v5500_v30, 16  ;;  %v2317_v37 = vshll.u32 %v5500_v30, 16  ;;  %v2323_v38 = vshll.u32 %v7147_v31, 16  ;;  %v6886_v57 = vld [vmem:[%s7117_s16 + $0xc] sm:$0xff]   ;;  %v6890_v3 = vld [vmem:[%s7117_s16 + $0x18] sm:$0xff]  }
  0x17   : > { %v2296_v29 = vor.u32 %v2295_v23, %v2292_v22  ;;  %v2306_v34 = vor.u32 %v2305_v26, %v2301_v25  ;;  %v2327_v40 = vshrl.u32 %v7147_v31, 16  ;;  %v2333_v41 = vshll.u32 %v7158_v35, 16  ;;  %v5503_v59 = vld [vmem:[%s7117_s16 + $0x24] sm:$0xf]  ;;  %v7182_v60 = vld [vmem:[%s7117_s16 + $0x28] sm:$0xf] }
  0x18   : > { %6117 = vmatpush3.bf16.msra.mxu1 %v6877_v8  ;;  %v3068_v42 = vrot.slane %v7147_v31, 5  ;;  %v2316_v44 = vrot.slane %v2314_v36, 4  ;;  %v2319_v45 = vrot.slane %v2317_v37, 5  ;;  %v2325_v46 = vrot.slane %v2323_v38, 5  ;;  %v7185_v62 = vld [vmem:[%s7117_s16 + $0x2c] sm:$0x1] }
  0x19   : > { %6309 = vmatpush3.bf16.msra.mxu0 %v6878_v9  ;;  %6118 = vmatprep.subr.bf16.mxu1 %v6879_v10  ;;  %v2297_v39 = vrot.slane %v2296_v29, 4  ;;  %v2307_v43 = vrot.slane %v2306_v34, 4  ;;  %v2329_v50 = vrot.slane %v2327_v40, 4  ;;  %v2335_v53 = vrot.slane %v2333_v41, 5  ;;  %v6889_v7 = vld [vmem:[%s8676_s1 + $0x148] sm:$0xff]   ;;  %v6893_v29 = vld [vmem:[%s8676_s1 + $0x150] sm:$0xff]  }
  0x1a   : > { %6310 = vmatprep.subr.bf16.mxu0 %v6880_v12  ;;  %v2320_v52 = vor.u32 %v2319_v45, %v2316_v44  ;;  %v7174_v54 = vrot.slane %v3068_v42, 4  ;;  %v2338_v63 = vshrl.u32 %v5503_v59, 16  ;;  %v2341_v0 = vshll.u32 %v5503_v59, 16  ;;  %v6892_v11 = vld [vmem:[%s8676_s1 + $0x48] sm:$0xff]   ;;  %v5506_v19 = vld [vmem:[%s7117_s16 + $0x30] sm:$0xf] }
  0x1b   : > { %v2302_v47 = vsel %vm7153_vm2, %v2297_v39, %v2301_v25  ;;  %v2312_v51 = vsel %vm7153_vm2, %v2307_v43, %v2311_v27  ;;  %v2330_v58 = vor.u32 %v2329_v50, %v2325_v46  ;;  %v2347_v1 = vshll.u32 %v7182_v60, 16  ;;  %v7203_v20 = vld [vmem:[%s7117_s16 + $0x34] sm:$0xf]  ;;  %v7206_v21 = vld [vmem:[%s7117_s16 + $0x38] sm:$0x1]  ;;  %v6911_v15 = vld [vmem:[%s8676_s1 + $0x68] sm:$0xff]  }
  0x1c   : > { %6119 = vmatpush3.bf16.msra.mxu1 %v6879_v10  ;;  %v5561_v56 = vcombine.low %v2302_v47, %v2312_v51  ;;  %v2321_v61 = vrot.slane %v2320_v52, 4  ;;  %v2351_v4 = vshrl.u32 %v7182_v60, 16  ;;  %v2357_v5 = vshll.u32 %v7185_v62, 16  ;;  %v6895_v41 = vld [vmem:[%s7117_s16 + $0x30] sm:$0xff]   ;;  %v5509_v45 = vld [vmem:[%s7117_s16 + $0x3c] sm:$0xf] }
  0x1d   : > { %6311 = vmatpush3.bf16.msra.mxu0 %v6880_v12  ;;  %6120 = vmatprep.subr.bf16.mxu1 %v6881_v18  ;;  %v2331_v2 = vrot.slane %v2330_v58, 4  ;;  %v2340_v8 = vrot.slane %v2338_v63, 4  ;;  %v2343_v9 = vrot.slane %v2341_v0, 5  ;;  %v2349_v10 = vrot.slane %v2347_v1, 5  ;;  %v7225_v50 = vld [vmem:[%s7117_s16 + $0x44] sm:$0x1] }
  0x1e   : > { %6312 = vmatprep.subr.bf16.mxu0 %v6882_v24  ;;  %6316 = vmatprep.mubr.bf16.mxu0 %v5561_v56  ;;  %v2326_v6 = vsel %vm7153_vm2, %v2321_v61, %v2325_v46  ;;  %v2353_v13 = vrot.slane %v2351_v4, 4  ;;  %v2359_v16 = vrot.slane %v2357_v5, 5  ;;  %v2362_v23 = vshrl.u32 %v5506_v19, 16  ;;  %v7222_v46 = vld [vmem:[%s7117_s16 + $0x40] sm:$0xf]  ;;  %v6894_v59 = vld [vmem:[%s8676_s1 + $0x158] sm:$0xff]  }
  0x1f   : > { %v2336_v12 = vsel %vm7153_vm2, %v2331_v2, %v2335_v53  ;;  %v2371_v25 = vshll.u32 %v7203_v20, 16  ;;  %v2375_v27 = vshrl.u32 %v7203_v20, 16  ;;  %v2386_v51 = vshrl.u32 %v5509_v45, 16  ;;  %v6897_v4 = vld [vmem:[%s8676_s1 + $0x50] sm:$0xff]  }
  0x20   : > { %6121 = vmatpush3.bf16.msra.mxu1 %v6881_v18  ;;  %v5562_v17 = vcombine.low %v2326_v6, %v2336_v12  ;;  %v2344_v18 = vor.u32 %v2343_v9, %v2340_v8  ;;  %v2354_v22 = vor.u32 %v2353_v13, %v2349_v10  ;;  %v2364_v34 = vrot.slane %v2362_v23, 4  ;;  %v7242_v8 = vld [vmem:[%s7117_s16 + $0x4c] sm:$0xf]  ;;  %v7245_v9 = vld [vmem:[%s7117_s16 + $0x50] sm:$0x1] }
  0x21   : > { %6313 = vmatpush3.bf16.msra.mxu0 %v6882_v24  ;;  %6122 = vmatprep.subr.bf16.mxu1 %v6883_v28  ;;  %v2365_v24 = vshll.u32 %v5506_v19, 16  ;;  %v2373_v37 = vrot.slane %v2371_v25, 5  ;;  %v2377_v39 = vrot.slane %v2375_v27, 4  ;;  %v2389_v52 = vshll.u32 %v5509_v45, 16 }
  0x22   : > { %6314 = vmatprep.subr.bf16.mxu0 %v6884_v32  ;;  %v2345_v26 = vrot.slane %v2344_v18, 4  ;;  %v2355_v30 = vrot.slane %v2354_v22, 4  ;;  %v2399_v56 = vshrl.u32 %v7222_v46, 16  ;;  %v2388_v61 = vrot.slane %v2386_v51, 4  ;;  %v6898_v22 = vld [vmem:[%s8676_s1 + $0x160] sm:$0xff]  }
  0x23   : > { %v2367_v36 = vrot.slane %v2365_v24, 5  ;;  %v2391_v63 = vrot.slane %v2389_v52, 5  ;;  %v2423_v18 = vshrl.u32 %v7242_v8, 16  ;;  %v2429_v19 = vshll.u32 %v7245_v9, 16  ;;  %v6896_v24 = vld [vmem:[%s7117_s16 + $0x3c] sm:$0xff]  }
  0x24   : > { %6123 = vmatpush3.bf16.msra.mxu1 %v6883_v28  ;;  %v2381_v28 = vshll.u32 %v7206_v21, 16  ;;  %v2350_v38 = vsel %vm7153_vm2, %v2345_v26, %v2349_v10  ;;  %v2360_v43 = vsel %vm7153_vm2, %v2355_v30, %v2359_v16  ;;  %v2401_v2 = vrot.slane %v2399_v56, 4 }
  0x25   : > { %6315 = vmatpush3.bf16.msra.mxu0 %v6884_v32  ;;  %6156 = vmatprep.subr.bf16.mxu1 %v6887_v49  ;;  %v6891_v32 = vld [vmem:[%s7117_s16 + $0x24] sm:$0xff]   ;;  %v2368_v44 = vor.u32 %v2367_v36, %v2364_v34  ;;  %v5563_v47 = vcombine.low %v2350_v38, %v2360_v43  ;;  %v2392_v6 = vor.u32 %v2391_v63, %v2388_v61  ;;  %v2431_v30 = vrot.slane %v2429_v19, 5  ;;  %v5515_v38 = vld [vmem:[%s7117_s16 + $0x54] sm:$0xf]  ;;  %v7267_v43 = vld [vmem:[%s7117_s16 + $0x5c] sm:$0x1] }
  0x26   : > { %6348 = vmatprep.subr.bf16.mxu0 %v6888_v55  ;;  %v2383_v40 = vrot.slane %v2381_v28, 5  ;;  %v6900_v34 = vld [vmem:[%s7117_s16 + $0x48] sm:$0xff]   ;;  %v2437_v45 = vshll.u32 %v5515_v38, 16  ;;  %v2453_v52 = vshll.u32 %v7267_v43, 16  ;;  %v3085_v31 = vrot.slane %v7206_v21, 5  ;;  %v6915_v21 = vld [vmem:[%s8676_s1 + $0x70] sm:$0xff]  }
  0x27   : > { %6125 = vmatmul.mubr.bf16.vlgmr.msra.gmra.mrb[0].mxu1 %v6886_v57  ;;  %v2369_v53 = vrot.slane %v2368_v44, 4  ;;  %v2405_v57 = vshll.u32 %v7225_v50, 16  ;;  %v2393_v16 = vrot.slane %v2392_v6, 4  ;;  %v2434_v44 = vshrl.u32 %v5515_v38, 16 }
  0x28   : > { %6317 = vmatmul.mubr.bf16.vlgmr.msra.gmra.mrb[0].mxu0 %v5562_v17  ;;  %6157 = vmatpush3.bf16.msra.mxu1 %v6887_v49  ;;  %v2378_v49 = vor.u32 %v2377_v39, %v2373_v37  ;;  %v2419_v17 = vshll.u32 %v7242_v8, 16  ;;  %v2439_v56 = vrot.slane %v2437_v45, 5  ;;  %v2455_v63 = vrot.slane %v2453_v52, 5  ;;  %v6906_v52 = vld [vmem:[%s7117_s16 + $0x6c] sm:$0xff]  }
  0x29   : > { %6349 = vmatpush3.bf16.msra.mxu0 %v6888_v55  ;;  %6128 = vmatprep.mubr.bf16.mxu1 %v6890_v3  ;;  %v2395_v55 = vshll.u32 %v7222_v46, 16  ;;  %v2374_v0 = vsel %vm7153_vm2, %v2369_v53, %v2373_v37  ;;  %v2407_v3 = vrot.slane %v2405_v57, 5  ;;  %v6902_v57 = vld [vmem:[%s8676_s1 + $0x58] sm:$0xff]  }
  0x2a   : > { %6350 = vmatprep.subr.bf16.mxu0 %v6889_v7  ;;  %6158 = vmatprep.subr.bf16.mxu1 %v6892_v11  ;;  %v2379_v58 = vrot.slane %v2378_v49, 4  ;;  %v2421_v28 = vrot.slane %v2419_v17, 5 }
  0x2b   : > { %6320 = vmatprep.mubr.bf16.mxu0 %v5563_v47  ;;  %v2397_v1 = vrot.slane %v2395_v55, 5  ;;  %v2436_v55 = vrot.slane %v2434_v44, 4  ;;  %v3071_v44 = vrot.slane %v7158_v35, 5 }
  0x2c   : > { %6159 = vmatpush3.bf16.msra.mxu1 %v6892_v11  ;;  %v2384_v5 = vsel %vm7153_vm2, %v2379_v58, %v2383_v40 }
  0x2d   : > { %6351 = vmatpush3.bf16.msra.mxu0 %v6889_v7  ;;  %v5512_v7 = vld [vmem:[%s7117_s16 + $0x48] sm:$0xf]  ;;  %v5564_v10 = vcombine.low %v2374_v0, %v2384_v5  ;;  %v2402_v11 = vor.u32 %v2401_v2, %v2397_v1  ;;  %6160 = vmatprep.subr.bf16.mxu1 %v6897_v4  ;;  %v2398_v27 = vsel %vm7153_vm2, %v2393_v16, %v2397_v1  ;;  %v6901_v0 = vld [vmem:[%s7117_s16 + $0x54] sm:$0xff]   ;;  %v7285_v5 = vld [vmem:[%s7117_s16 + $0x64] sm:$0xf] }
  0x2e   : > { %6352 = vmatprep.subr.bf16.mxu0 %v6893_v29  ;;  %v2410_v12 = vshrl.u32 %v5512_v7, 16  ;;  %v2413_v13 = vshll.u32 %v5512_v7, 16  ;;  %v6903_v1 = vld [vmem:[%s8676_s1 + $0x170] sm:$0xff]   ;;  %v2467_v16 = vshll.u32 %v7285_v5, 16  ;;  %v2471_v17 = vshrl.u32 %v7285_v5, 16 }
  0x2f   : > { %6129 = vmatmul.mubr.bf16.gmra.mrb[4].mxu1 %v6891_v32  ;;  %v2403_v23 = vrot.slane %v2402_v11, 4  ;;  %v6899_v32 = vld [vmem:[%s8676_s1 + $0x168] sm:$0xff]  }
  0x30   : > { %6132 = vmatprep.mubr.bf16.mxu1 %v6895_v41  ;;  %6161 = vmatpush3.bf16.msra.mxu1 %v6897_v4  ;;  %v2412_v25 = vrot.slane %v2410_v12, 4  ;;  %v2415_v26 = vrot.slane %v2413_v13, 5  ;;  %v7264_v41 = vld [vmem:[%s7117_s16 + $0x58] sm:$0xf]  ;;  %v5518_v4 = vld [vmem:[%s7117_s16 + $0x60] sm:$0xf] }
  0x31   : > { %6353 = vmatpush3.bf16.msra.mxu0 %v6893_v29  ;;  %v2425_v29 = vrot.slane %v2423_v18, 4  ;;  %v2408_v36 = vsel %vm7153_vm2, %v2403_v23, %v2407_v3  ;;  %v2443_v49 = vshll.u32 %v7264_v41, 16  ;;  %v2447_v51 = vshrl.u32 %v7264_v41, 16  ;;  %6162 = vmatprep.subr.bf16.mxu1 %v6902_v57 }
  0x32   : > { %6354 = vmatprep.subr.bf16.mxu0 %v6894_v59  ;;  %6321 = vmatmul.mubr.bf16.gmra.mrb[4].mxu0 %v5564_v10  ;;  %v2416_v37 = vor.u32 %v2415_v26, %v2412_v25  ;;  %v5565_v39 = vcombine.low %v2398_v27, %v2408_v36  ;;  %v2440_v3 = vor.u32 %v2439_v56, %v2436_v55  ;;  %v7288_v10 = vld [vmem:[%s7117_s16 + $0x68] sm:$0x1]  ;;  %v2458_v11 = vshrl.u32 %v5518_v4, 16  ;;  %v5586_v55 = vld [vmem:[%s7117_s16 + $0x18] sm:$0xe]  ;;  %v6908_v56 = vld [vmem:[%s8676_s1 + $0x180] sm:$0xff]  }
  0x33   : > { %v2426_v40 = vor.u32 %v2425_v29, %v2421_v28  ;;  %v2449_v61 = vrot.slane %v2447_v51, 4  ;;  %v2461_v12 = vshll.u32 %v5518_v4, 16  ;;  %v2477_v18 = vshll.u32 %v7288_v10, 16  ;;  %v6905_v29 = vld [vmem:[%s7117_s16 + $0x60] sm:$0xff]  }
  0x34   : > { %v2417_v47 = vrot.slane %v2416_v37, 4  ;;  %6324 = vmatprep.mubr.bf16.mxu0 %v5565_v39  ;;  %6163 = vmatpush3.bf16.msra.mxu1 %v6902_v57  ;;  %v2441_v13 = vrot.slane %v2440_v3, 4  ;;  %v2469_v26 = vrot.slane %v2467_v16, 5  ;;  %v2473_v27 = vrot.slane %v2471_v17, 4  ;;  %v6912_v17 = vld [vmem:[%s8676_s1 + $0x188] sm:$0xff]  }
  0x35   : > { %6355 = vmatpush3.bf16.msra.mxu0 %v6894_v59  ;;  %v2427_v53 = vrot.slane %v2426_v40, 4  ;;  %v2445_v59 = vrot.slane %v2443_v49, 5  ;;  %v2463_v23 = vrot.slane %v2461_v12, 5  ;;  %v3061_v40 = vrot.slane %v7128_v14, 5 }
  0x36   : > { %6356 = vmatprep.subr.bf16.mxu0 %v6898_v22  ;;  %v2422_v58 = vsel %vm7153_vm2, %v2417_v47, %v2421_v28  ;;  %v2479_v28 = vrot.slane %v2477_v18, 5  ;;  %v2474_v38 = vor.u32 %v2473_v27, %v2469_v26  ;;  %v5602_v35 = vrot.slane %v5586_v55, 9  ;;  %v6913_v18 = vld [vmem:[%s7117_s16 + $0x90] sm:$0xff]  }
  0x37   : > { %6133 = vmatmul.mubr.bf16.gmra.mrb[8].mxu1 %v6896_v24  ;;  %v2432_v2 = vsel %vm7153_vm2, %v2427_v53, %v2431_v30  ;;  %v2450_v7 = vor.u32 %v2449_v61, %v2445_v59  ;;  %v6904_v24 = vld [vmem:[%s8676_s1 + $0x178] sm:$0xff]   ;;  %v2446_v25 = vsel %vm7153_vm2, %v2441_v13, %v2445_v59  ;;  %v3063_v51 = vrot.slane %v3061_v40, 4  ;;  %v6907_v53 = vld [vmem:[%s8676_s1 + $0x60] sm:$0xff]  }
  0x38   : > { %6136 = vmatprep.mubr.bf16.mxu1 %v6900_v34  ;;  %v5566_v6 = vcombine.low %v2422_v58, %v2432_v2  ;;  %v2475_v47 = vrot.slane %v2474_v38, 4  ;;  %6164 = vmatprep.subr.bf16.mxu1 %v6907_v53  ;;  %v5587_v59 = vld [vmem:[%s7117_s16 + $0x24] sm:$0xe]  ;;  %v3075_v2 = vrot.slane %v7182_v60, 5  ;;  %v3078_v3 = vrot.slane %v7185_v62, 5 }
  0x39   : > { %6357 = vmatpush3.bf16.msra.mxu0 %v6898_v22  ;;  %v2451_v19 = vrot.slane %v2450_v7, 4  ;;  %v2460_v22 = vrot.slane %v2458_v11, 4  ;;  %v3065_v58 = vsel %vm7301_vm5, %v3063_v51, %v3064_v48  ;;  %6165 = vmatpush3.bf16.msra.mxu1 %v6907_v53  ;;  %v5588_v48 = vld [vmem:[%s7117_s16 + $0x30] sm:$0xe]  ;;  %v3082_v4 = vrot.slane %v7203_v20, 5  ;;  %v6910_v11 = vld [vmem:[%s7117_s16 + $0x84] sm:$0xff]  }
  0x3a   : > { %6358 = vmatprep.subr.bf16.mxu0 %v6899_v32  ;;  %6325 = vmatmul.mubr.bf16.gmra.mrb[8].mxu0 %v5566_v6  ;;  %v2480_v57 = vsel %vm7153_vm2, %v2475_v47, %v2479_v28  ;;  %v3069_v6 = vsel %vm7301_vm5, %v5602_v35, %v3068_v42  ;;  %v3072_v60 = vsel %vm7301_vm5, %v7174_v54, %v3071_v44  ;;  %v3077_v62 = vrot.slane %v3075_v2, 4  ;;  %v5589_v13 = vld [vmem:[%s7117_s16 + $0x3c] sm:$0xe] }
  0x3b   : > { %v2456_v34 = vsel %vm7153_vm2, %v2451_v19, %v2455_v63  ;;  %v2464_v36 = vor.u32 %v2463_v23, %v2460_v22  ;;  %6166 = vmatprep.subr.bf16.mxu1 %v6911_v15  ;;  %v5604_v20 = vrot.slane %v5588_v48, 9  ;;  %v3084_v12 = vrot.slane %v3082_v4, 4  ;;  %v6920_v35 = vld [vmem:[%s8676_s1 + $0x198] sm:$0xff]  }
  0x3c   : > { %v5567_v37 = vcombine.low %v2446_v25, %v2456_v34  ;;  %v3079_v42 = vsel %vm7301_vm5, %v3077_v62, %v3078_v3  ;;  %v3089_v54 = vrot.slane %v7222_v46, 5  ;;  %v5634_v16 = vcombine.low %v3069_v6, %v3072_v60  ;;  %v5591_v34 = vld [vmem:[%s7117_s16 + $0x54] sm:$0xe]  ;;  %v5522_v3 = vld [vmem:[%s7117_s16 + $0x70] sm:$0xf] }
  0x3d   : > { %6359 = vmatpush3.bf16.msra.mxu0 %v6899_v32  ;;  %v5585_v32 = vld [vmem:[%s7117_s16 + $0xc] sm:$0xe]  ;;  %v2465_v45 = vrot.slane %v2464_v36, 4  ;;  %6167 = vmatpush3.bf16.msra.mxu1 %v6911_v15  ;;  %v3092_v19 = vrot.slane %v7225_v50, 5  ;;  %v5605_v23 = vrot.slane %v5589_v13, 9  ;;  %v3096_v46 = vrot.slane %v7242_v8, 5 }
  0x3e   : > { %6360 = vmatprep.subr.bf16.mxu0 %v6903_v1  ;;  %v5601_v39 = vrot.slane %v5585_v32, 9  ;;  %6328 = vmatprep.mubr.bf16.mxu0 %v5567_v37  ;;  %v3091_v25 = vrot.slane %v3089_v54, 4  ;;  %v3099_v27 = vrot.slane %v7245_v9, 5  ;;  %v3083_v50 = vsel %vm7301_vm5, %v5604_v20, %v3082_v4  ;;  %v7417_v15 = vld [vmem:[%s8676_s1 + $0x80] sm:$0xff]   ;;  %v5523_v62 = vld [vmem:[%s7117_s16 + $0x74] sm:$0x1] }
  0x3f   : > { %6137 = vmatmul.mubr.bf16.gmra.mrb[12].mxu1 %v6901_v0  ;;  %v2470_v14 = vsel %vm7153_vm2, %v2465_v45, %v2469_v26  ;;  %v6909_v0 = vld [vmem:[%s7117_s16 + $0x78] sm:$0xff]   ;;  %6168 = vmatprep.subr.bf16.mxu1 %v6915_v21  ;;  %v3098_v28 = vrot.slane %v3096_v46, 4  ;;  %v3103_v36 = vrot.slane %v7264_v41, 5  ;;  %v3086_v8 = vsel %vm7301_vm5, %v3084_v12, %v3085_v31  ;;  %v5592_v45 = vld [vmem:[%s7117_s16 + $0x60] sm:$0xe] }
  0x40   : > { %6140 = vmatprep.mubr.bf16.mxu1 %v6905_v29  ;;  %v3062_v49 = vsel %vm7301_vm5, %v5601_v39, %v3061_v40  ;;  %v5568_v61 = vcombine.low %v2470_v14, %v2480_v57  ;;  %v6916_v29 = vld [vmem:[%s8676_s1 + $0x190] sm:$0xff]   ;;  %v3090_v9 = vsel %vm7301_vm5, %v5605_v23, %v3089_v54  ;;  %v5607_v32 = vrot.slane %v5591_v34, 9  ;;  %v6914_v39 = vld [vmem:[%s7117_s16 + $0x9c] sm:$0xff]   ;;  %v596_v12 = vld [vmem:[%s7117_s16 + $0xc] sm:$0xf] }
  0x41   : > { %6361 = vmatpush3.bf16.msra.mxu0 %v6903_v1  ;;  %v5633_v63 = vcombine.low %v3062_v49, %v3065_v58  ;;  %v5603_v1 = vrot.slane %v5587_v59, 9  ;;  %v3106_v37 = vrot.slane %v7267_v43, 5  ;;  %v3093_v38 = vsel %vm7301_vm5, %v3091_v25, %v3092_v19  ;;  %v6919_v43 = vld [vmem:[%s8676_s1 + $0x78] sm:$0xff]   ;;  %6169 = vmatpush3.bf16.msra.mxu1 %v6915_v21  ;;  %v594_v58 = vld [vmem:[%s7117_s16 + $0x4] sm:$0xf] }
  0x42   : > { %6362 = vmatprep.subr.bf16.mxu0 %v6904_v24  ;;  %6329 = vmatmul.mubr.bf16.gmra.mrb[12].mxu0 %v5568_v61  ;;  %v7384_v40 = vsel %vm7301_vm5, %v3098_v28, %v3099_v27  ;;  %v3105_v44 = vrot.slane %v3103_v36, 4  ;;  %v3110_v47 = vrot.slane %v7285_v5, 5  ;;  %v3113_v49 = vrot.slane %v7288_v10, 5  ;;  %v593_v5 = vld [vmem:[%s7117_s16] sm:$0xf] }
  0x43   : > { %6364 = vmatprep.mubr.bf16.mxu0 %v5633_v63  ;;  %v3076_v7 = vsel %vm7301_vm5, %v5603_v1, %v3075_v2  ;;  %v5636_v51 = vcombine.low %v3083_v50, %v3086_v8  ;;  %v7395_v53 = vsel %vm7301_vm5, %v5607_v32, %v3103_v36  ;;  %6170 = vmatprep.subr.bf16.mxu1 %v6919_v43  ;;  %v5608_v14 = vrot.slane %v5592_v45, 9  ;;  %v595_v59 = vld [vmem:[%s7117_s16 + $0x8] sm:$0x1]  ;;  %v6922_v13 = vld [vmem:[%s8676_s1 + $0x1a0] sm:$0xff]   ;;  %v597_v19 = vld [vmem:[%s7117_s16 + $0x10] sm:$0xf] }
  0x44   : > { %v5635_v22 = vcombine.low %v3076_v7, %v3079_v42  ;;  %v7399_v55 = vsel %vm7301_vm5, %v3105_v44, %v3106_v37  ;;  %v5637_v10 = vcombine.low %v3090_v9, %v3093_v38  ;;  %v3112_v57 = vrot.slane %v3110_v47, 4  ;;  %v5593_v7 = vld [vmem:[%s7117_s16 + $0x6c] sm:$0xe]  ;;  %v598_v21 = vld [vmem:[%s7117_s16 + $0x14] sm:$0x1] }
  0x45   : > { %6363 = vmatpush3.bf16.msra.mxu0 %v6904_v24  ;;  %v5590_v24 = vld [vmem:[%s7117_s16 + $0x48] sm:$0xe]  ;;  %v645_v61 = vshrl.u32 %v593_v5, 16  ;;  %v7411_v63 = vsel %vm7301_vm5, %v5608_v14, %v3110_v47  ;;  %v654_v1 = vshll.u32 %v594_v58, 16  ;;  %v658_v2 = vshrl.u32 %v594_v58, 16  ;;  %6171 = vmatpush3.bf16.msra.mxu1 %v6919_v43 }
  0x46   : > { %6396 = vmatprep.subr.bf16.mxu0 %v6908_v56  ;;  %v5606_v26 = vrot.slane %v5590_v24, 9  ;;  %v5639_v48 = vcombine.low %v7395_v53, %v7399_v55  ;;  %v7423_v4 = vsel %vm7301_vm5, %v3112_v57, %v3113_v49  ;;  %v664_v60 = vshll.u32 %v595_v59, 16  ;;  %6204 = vmatprep.subr.bf16.mxu1 %v7417_v15  ;;  %v5525_v9 = vld [vmem:[%s7117_s16 + $0x7c] sm:$0xf]  ;;  %v5526_v44 = vld [vmem:[%s7117_s16 + $0x80] sm:$0x1] }
  0x47   : > { %6141 = vmatmul.mubr.bf16.gmra.mrb[16].mxu1 %v6906_v52  ;;  %v6917_v52 = vld [vmem:[%s7117_s16 + $0xa8] sm:$0xff]   ;;  %v647_v6 = vrot.slane %v645_v61, 4  ;;  %v656_v31 = vrot.slane %v654_v1, 5  ;;  %v660_v42 = vrot.slane %v658_v2, 4  ;;  %v669_v24 = vshrl.u32 %v596_v12, 16 }
  0x48   : > { %6144 = vmatprep.mubr.bf16.mxu1 %v6909_v0  ;;  %v7380_v41 = vsel %vm7301_vm5, %v5606_v26, %v3096_v46  ;;  %v648_v0 = vshll.u32 %v593_v5, 16  ;;  %v666_v54 = vrot.slane %v664_v60, 5  ;;  %v672_v25 = vshll.u32 %v596_v12, 16  ;;  %v6918_v26 = vld [vmem:[%s7117_s16 + $0xb4] sm:$0xff]   ;;  %v6924_v57 = vld [vmem:[%s8676_s1 + $0x1a8] sm:$0xff]  }
  0x49   : > { %v661_v23 = vor.u32 %v660_v42, %v656_v31  ;;  %v678_v50 = vshll.u32 %v597_v19, 16  ;;  %v682_v28 = vshrl.u32 %v597_v19, 16  ;;  %v671_v36 = vrot.slane %v669_v24, 4  ;;  %v600_v1 = vld [vmem:[%s7117_s16 + $0x1c] sm:$0xf] }
  0x4a   : > { %6365 = vmatmul.mubr.bf16.vlgmr.msra.gmra.mrb[0].mxu0 %v5634_v16  ;;  %v650_v20 = vrot.slane %v648_v0, 5  ;;  %v5609_v16 = vrot.slane %v5593_v7, 9  ;;  %v674_v8 = vrot.slane %v672_v25, 5  ;;  %v2515_v5 = vshll.u32 %v5525_v9, 16  ;;  %v5528_v55 = vld [vmem:[%s7117_s16 + $0x88] sm:$0xf] }
  0x4b   : > { %6397 = vmatpush3.bf16.msra.mxu0 %v6908_v56  ;;  %6368 = vmatprep.mubr.bf16.mxu0 %v5635_v22  ;;  %v5638_v56 = vcombine.low %v7380_v41, %v7384_v40  ;;  %v662_v34 = vrot.slane %v661_v23, 4  ;;  %v680_v37 = vrot.slane %v678_v50, 5  ;;  %v684_v38 = vrot.slane %v682_v28, 4  ;;  %v601_v40 = vld [vmem:[%s7117_s16 + $0x20] sm:$0x1]  ;;  %v6926_v25 = vld [vmem:[%s8676_s1 + $0x1b0] sm:$0xff]  }
  0x4c   : > { %6398 = vmatprep.subr.bf16.mxu0 %v6912_v17  ;;  %v651_v22 = vor.u32 %v650_v20, %v647_v6  ;;  %v675_v49 = vor.u32 %v674_v8, %v671_v36  ;;  %v2519_v59 = vshrl.u32 %v5525_v9, 16  ;;  %v2525_v61 = vshll.u32 %v5526_v44, 16  ;;  %v5529_v42 = vld [vmem:[%s7117_s16 + $0x8c] sm:$0x1]  ;;  %v5595_v12 = vld [vmem:[%s7117_s16 + $0x84] sm:$0xe] }
  0x4d   : > { %v667_v45 = vsel %vm7153_vm2, %v662_v34, %v666_v54  ;;  %v685_v14 = vor.u32 %v684_v38, %v680_v37  ;;  %v3124_v6 = vrot.slane %v5525_v9, 5  ;;  %v3127_v41 = vrot.slane %v5526_v44, 5  ;;  %v7484_v19 = vld [vmem:[%s7117_s16 + $0x28] sm:$0xf]  ;;  %v6928_v38 = vld [vmem:[%s8676_s1 + $0x1b8] sm:$0xff]  }
  0x4e   : > { %v676_v58 = vrot.slane %v675_v49, 4  ;;  %v2521_v60 = vrot.slane %v2519_v59, 4  ;;  %v712_v24 = vshll.u32 %v601_v40, 16  ;;  %v5611_v28 = vrot.slane %v5595_v12, 9  ;;  %v5531_v49 = vld [vmem:[%s7117_s16 + $0x94] sm:$0xf] }
  0x4f   : > { %6145 = vmatmul.mubr.bf16.gmra.mrb[20].mxu1 %v6910_v11  ;;  %6399 = vmatpush3.bf16.msra.mxu0 %v6912_v17  ;;  %v5640_v11 = vcombine.low %v7411_v63, %v7423_v4  ;;  %v3117_v17 = vrot.slane %v5522_v3, 5  ;;  %v686_v2 = vrot.slane %v685_v14, 4  ;;  %v7465_v3 = vrot.slane %v2515_v5, 5  ;;  %v605_v59 = vld [vmem:[%s7117_s16 + $0x30] sm:$0xf] }
  0x50   : > { %6148 = vmatprep.mubr.bf16.mxu1 %v6913_v18  ;;  %6400 = vmatprep.subr.bf16.mxu0 %v6916_v29  ;;  %v3120_v18 = vrot.slane %v5523_v62, 5  ;;  %v7470_v62 = vrot.slane %v2525_v61, 5  ;;  %v3126_v20 = vrot.slane %v3124_v6, 4  ;;  %v714_v8 = vrot.slane %v712_v24, 5  ;;  %v5534_v12 = vld [vmem:[%s7117_s16 + $0xa0] sm:$0xf] }
  0x51   : > { %v7438_v46 = vsel %vm7301_vm5, %v5609_v16, %v3117_v17  ;;  %v3119_v27 = vrot.slane %v3117_v17, 4  ;;  %v2522_v16 = vor.u32 %v2521_v60, %v7465_v3  ;;  %v3131_v9 = vrot.slane %v5528_v55, 5 }
  0x52   : > { %6369 = vmatmul.mubr.bf16.gmra.mrb[4].mxu0 %v5636_v51  ;;  %v5594_v51 = vld [vmem:[%s7117_s16 + $0x78] sm:$0xe] }
  0x53   : > { %6372 = vmatprep.mubr.bf16.mxu0 %v5637_v10  ;;  %6401 = vmatpush3.bf16.msra.mxu0 %v6916_v29  ;;  %v652_v29 = vrot.slane %v651_v22, 4  ;;  %v7444_v32 = vsel %vm7301_vm5, %v3119_v27, %v3120_v18  ;;  %v599_v10 = vld [vmem:[%s7117_s16 + $0x18] sm:$0xf]  ;;  %v5610_v0 = vrot.slane %v5594_v51, 9  ;;  %v702_v18 = vshll.u32 %v600_v1, 16 }
  0x54   : > { %6402 = vmatprep.subr.bf16.mxu0 %v6920_v35  ;;  %v5641_v47 = vcombine.low %v7438_v46, %v7444_v32  ;;  %v693_v53 = vshrl.u32 %v599_v10, 16  ;;  %v7488_v22 = vsel %vm7301_vm5, %v3126_v20, %v3127_v41  ;;  %v5532_v51 = vld [vmem:[%s7117_s16 + $0x98] sm:$0x1]  ;;  %v3133_v14 = vrot.slane %v3131_v9, 4 }
  0x55   : > { %v657_v43 = vsel %vm7153_vm2, %v652_v29, %v656_v31  ;;  %v7477_v7 = vsel %vm7301_vm5, %v5610_v0, %v3124_v6  ;;  %v696_v31 = vshll.u32 %v599_v10, 16  ;;  %v704_v50 = vrot.slane %v702_v18, 5  ;;  %v6923_v29 = vld [vmem:[%s8676_s1 + $0x88] sm:$0xff]   ;;  %v7530_v6 = vld [vmem:[%s7117_s16 + $0x34] sm:$0xf] }
  0x56   : > { %v695_v17 = vrot.slane %v693_v53, 4  ;;  %v5642_v27 = vcombine.low %v7477_v7, %v7488_v22  ;;  %v3141_v60 = vrot.slane %v5532_v51, 5  ;;  %v6927_v53 = vld [vmem:[%s8676_s1 + $0x98] sm:$0xff]   ;;  %v750_v18 = vshll.u32 %v7530_v6, 16  ;;  %v7559_v22 = vld [vmem:[%s8676_s1 + $0x1c0] sm:$0xff]  }
  0x57   : > { %6149 = vmatmul.mubr.bf16.gmra.mrb[24].mxu1 %v6914_v39  ;;  %6403 = vmatpush3.bf16.msra.mxu0 %v6920_v35  ;;  %v688_v39 = vshll.u32 %v598_v21, 16  ;;  %v698_v23 = vrot.slane %v696_v31, 5  ;;  %v706_v21 = vshrl.u32 %v600_v1, 16  ;;  %v7538_v31 = vld [vmem:[%s7117_s16 + $0x38] sm:$0x1] }
  0x58   : > { %6152 = vmatprep.mubr.bf16.mxu1 %v6917_v52  ;;  %6404 = vmatprep.subr.bf16.mxu0 %v6922_v13  ;;  %v5345_v52 = vcombine.low %v657_v43, %v667_v45  ;;  %v726_v45 = vshll.u32 %v7484_v19, 16  ;;  %v760_v7 = vshll.u32 %v7538_v31, 16  ;;  %v7567_v51 = vld [vmem:[%s7117_s16 + $0x44] sm:$0x1] }
  0x59   : > { %v690_v35 = vrot.slane %v688_v39, 5  ;;  %v699_v34 = vor.u32 %v698_v23, %v695_v17  ;;  %v708_v36 = vrot.slane %v706_v21, 4  ;;  %v3134_v39 = vrot.slane %v5529_v42, 5  ;;  %v5597_v23 = vld [vmem:[%s7117_s16 + $0x9c] sm:$0xe] }
  0x5a   : > { %6373 = vmatmul.mubr.bf16.gmra.mrb[8].mxu0 %v5638_v56  ;;  %v681_v56 = vsel %vm7153_vm2, %v676_v58, %v680_v37  ;;  %v7501_v37 = vld [vmem:[%s7117_s16 + $0x2c] sm:$0x1]  ;;  %v730_v58 = vshrl.u32 %v7484_v19, 16  ;;  %v741_v42 = vshrl.u32 %v605_v59, 16  ;;  %v744_v17 = vshll.u32 %v605_v59, 16 }
  0x5b   : > { %6376 = vmatprep.mubr.bf16.mxu0 %v5639_v48  ;;  %6405 = vmatpush3.bf16.msra.mxu0 %v6922_v13  ;;  %v691_v48 = vsel %vm7153_vm2, %v686_v2, %v690_v35  ;;  %v602_v13 = vld [vmem:[%s7117_s16 + $0x24] sm:$0xf]  ;;  %v700_v63 = vrot.slane %v699_v34, 4  ;;  %v709_v4 = vor.u32 %v708_v36, %v704_v50  ;;  %v5596_v35 = vld [vmem:[%s7117_s16 + $0x90] sm:$0xe]  ;;  %v3135_v32 = vsel %vm7301_vm5, %v3133_v14, %v3134_v39 }
  0x5c   : > { %6406 = vmatprep.subr.bf16.mxu0 %v6924_v57  ;;  %v5346_v54 = vcombine.low %v681_v56, %v691_v48  ;;  %v717_v44 = vshrl.u32 %v602_v13, 16  ;;  %v720_v43 = vshll.u32 %v602_v13, 16  ;;  %v732_v1 = vrot.slane %v730_v58, 4  ;;  %v5535_v13 = vld [vmem:[%s7117_s16 + $0xa4] sm:$0x1] }
  0x5d   : > { %v705_v46 = vsel %vm7153_vm2, %v700_v63, %v704_v50  ;;  %v5612_v2 = vrot.slane %v5596_v35, 9  ;;  %v3138_v56 = vrot.slane %v5531_v49, 5  ;;  %v754_v50 = vshrl.u32 %v7530_v6, 16  ;;  %v7564_v39 = vld [vmem:[%s7117_s16 + $0x40] sm:$0xf] }
  0x5e   : > { %v719_v5 = vrot.slane %v717_v44, 4  ;;  %v722_v10 = vrot.slane %v720_v43, 5  ;;  %v746_v34 = vrot.slane %v744_v17, 5  ;;  %v752_v36 = vrot.slane %v750_v18, 5  ;;  %v5537_v35 = vld [vmem:[%s7117_s16 + $0xac] sm:$0xf] }
  0x5f   : > { %6153 = vmatmul.mubr.bf16.gmra.mrb[28].mxu1 %v6918_v26  ;;  %v7493_v26 = vrot.slane %v2522_v16, 4  ;;  %6407 = vmatpush3.bf16.msra.mxu0 %v6924_v57  ;;  %v728_v57 = vrot.slane %v726_v45, 5  ;;  %v3140_v16 = vrot.slane %v3138_v56, 4  ;;  %v762_v45 = vrot.slane %v760_v7, 5  ;;  %v7595_v17 = vld [vmem:[%s7117_s16 + $0x50] sm:$0x1] }
  0x60   : > { %6172 = vmatprep.mubr.bf16.mxu1 %v5345_v52  ;;  %6408 = vmatprep.subr.bf16.mxu0 %v6926_v25  ;;  %v6925_v52 = vld [vmem:[%s8676_s1 + $0x90] sm:$0xff]   ;;  %v723_v0 = vor.u32 %v722_v10, %v719_v5  ;;  %v3145_v49 = vrot.slane %v5534_v12, 5  ;;  %v774_v58 = vshll.u32 %v7564_v39, 16  ;;  %v778_v59 = vshrl.u32 %v7564_v39, 16 }
  0x61   : > { %v733_v20 = vor.u32 %v732_v1, %v728_v57  ;;  %v6938_v7 = vld [vmem:[%s8676_s1 + $0xb0] sm:$0xff]  }
  0x62   : > { %6377 = vmatmul.mubr.bf16.gmra.mrb[12].mxu0 %v5640_v11  ;;  %v3132_v11 = vsel %vm7301_vm5, %v5611_v28, %v3131_v9  ;;  %v724_v48 = vrot.slane %v723_v0, 4  ;;  %v608_v28 = vld [vmem:[%s7117_s16 + $0x3c] sm:$0xf]  ;;  %v756_v9 = vrot.slane %v754_v50, 4 }
  0x63   : > { %6380 = vmatprep.mubr.bf16.mxu0 %v5641_v47  ;;  %6409 = vmatpush3.bf16.msra.mxu0 %v6926_v25  ;;  %v736_v47 = vshll.u32 %v7501_v37, 16  ;;  %v5643_v61 = vcombine.low %v3132_v11, %v3135_v32  ;;  %v734_v24 = vrot.slane %v733_v20, 4  ;;  %v743_v25 = vrot.slane %v741_v42, 4  ;;  %v7592_v20 = vld [vmem:[%s7117_s16 + $0x4c] sm:$0xf] }
  0x64   : > { %6410 = vmatprep.subr.bf16.mxu0 %v6928_v38  ;;  %v729_v21 = vsel %vm7153_vm2, %v724_v48, %v728_v57  ;;  %v757_v63 = vor.u32 %v756_v9, %v752_v36  ;;  %v765_v11 = vshrl.u32 %v608_v28, 16  ;;  %v768_v14 = vshll.u32 %v608_v28, 16 }
  0x65   : > { %v738_v40 = vrot.slane %v736_v47, 5  ;;  %v747_v43 = vor.u32 %v746_v34, %v743_v25  ;;  %v3147_v57 = vrot.slane %v3145_v49, 4  ;;  %v780_v48 = vrot.slane %v778_v59, 4  ;;  %v5541_v34 = vld [vmem:[%s7117_s16 + $0xbc] sm:$0x1] }
  0x66   : > { %v767_v32 = vrot.slane %v765_v11, 4  ;;  %v770_v47 = vrot.slane %v768_v14, 5 }
  0x67   : > { %6173 = vmatmul.mubr.bf16.vlgmr.msra.gmra.mrb[0].mxu1 %v5346_v54  ;;  %6411 = vmatpush3.bf16.msra.mxu0 %v6928_v38  ;;  %v3139_v54 = vsel %vm7301_vm5, %v5612_v2, %v3138_v56  ;;  %v5613_v38 = vrot.slane %v5597_v23, 9  ;;  %v748_v5 = vrot.slane %v747_v43, 4  ;;  %v776_v2 = vrot.slane %v774_v58, 5  ;;  %v6934_v56 = vld [vmem:[%s8676_s1 + $0xa8] sm:$0xff]  }
  0x68   : > { %6205 = vmatpush3.bf16.msra.mxu1 %v7417_v15  ;;  %v710_v15 = vrot.slane %v709_v4, 4  ;;  %6444 = vmatprep.subr.bf16.mxu0 %v7559_v22  ;;  %v3148_v4 = vrot.slane %v5535_v13, 5 }
  0x69   : > { %6206 = vmatprep.subr.bf16.mxu1 %v6923_v29  ;;  %v3146_v10 = vsel %vm7301_vm5, %v5613_v38, %v3145_v49  ;;  %v753_v0 = vsel %vm7153_vm2, %v748_v5, %v752_v36  ;;  %v781_v13 = vor.u32 %v780_v48, %v776_v2  ;;  %v5599_v36 = vld [vmem:[%s7117_s16 + $0xb4] sm:$0xe]  ;;  %v802_v38 = vshrl.u32 %v7592_v20, 16 }
  0x6a   : > { %v715_v41 = vsel %vm7153_vm2, %v710_v15, %v714_v8  ;;  %6381 = vmatmul.mubr.bf16.gmra.mrb[16].mxu0 %v5642_v27  ;;  %v739_v27 = vsel %vm7153_vm2, %v734_v24, %v738_v40  ;;  %v758_v15 = vrot.slane %v757_v63, 4  ;;  %v3149_v1 = vsel %vm7301_vm5, %v3147_v57, %v3148_v4  ;;  %v611_v40 = vld [vmem:[%s7117_s16 + $0x48] sm:$0xf]  ;;  %v5540_v24 = vld [vmem:[%s7117_s16 + $0xb8] sm:$0xf] }
  0x6b   : > { %v5347_v55 = vcombine.low %v705_v46, %v715_v41  ;;  %6384 = vmatprep.mubr.bf16.mxu0 %v5643_v61  ;;  %v5348_v44 = vcombine.low %v729_v21, %v739_v27  ;;  %v5538_v46 = vld [vmem:[%s7117_s16 + $0xb0] sm:$0x1]  ;;  %v5598_v61 = vld [vmem:[%s7117_s16 + $0xa8] sm:$0xe]  ;;  %v784_v41 = vshll.u32 %v7567_v51, 16  ;;  %v789_v21 = vshrl.u32 %v611_v40, 16 }
  0x6c   : > { %6207 = vmatpush3.bf16.msra.mxu1 %v6923_v29  ;;  %v3142_v29 = vsel %vm7301_vm5, %v3140_v16, %v3141_v60  ;;  %v763_v60 = vsel %vm7153_vm2, %v758_v15, %v762_v45  ;;  %v3152_v16 = vrot.slane %v5537_v35, 5  ;;  %v3155_v23 = vrot.slane %v5538_v46, 5  ;;  %v7616_v35 = vld [vmem:[%s7117_s16 + $0x58] sm:$0xf]  ;;  %v7619_v46 = vld [vmem:[%s7117_s16 + $0x5c] sm:$0x1] }
  0x6d   : > { %6208 = vmatprep.subr.bf16.mxu1 %v6925_v52  ;;  %6176 = vmatprep.mubr.bf16.mxu1 %v5347_v55  ;;  %v5644_v8 = vcombine.low %v3139_v54, %v3142_v29  ;;  %v771_v55 = vor.u32 %v770_v47, %v767_v32  ;;  %v5349_v42 = vcombine.low %v753_v0, %v763_v60  ;;  %v786_v12 = vrot.slane %v784_v41, 5 }
  0x6e   : > { %v5614_v54 = vrot.slane %v5598_v61, 9  ;;  %v3154_v50 = vrot.slane %v3152_v16, 4  ;;  %v792_v28 = vshll.u32 %v611_v40, 16  ;;  %v798_v29 = vshll.u32 %v7592_v20, 16  ;;  %v5543_v61 = vld [vmem:[%s7117_s16 + $0xc4] sm:$0xf] }
  0x6f   : > { %6177 = vmatmul.mubr.bf16.gmra.mrb[4].mxu1 %v5348_v44  ;;  %v772_v18 = vrot.slane %v771_v55, 4  ;;  %v791_v9 = vrot.slane %v789_v21, 4  ;;  %v614_v44 = vld [vmem:[%s7117_s16 + $0x54] sm:$0xf]  ;;  %v804_v11 = vrot.slane %v802_v38, 4  ;;  %v5615_v14 = vrot.slane %v5599_v36, 9 }
  0x70   : > { %6209 = vmatpush3.bf16.msra.mxu1 %v6925_v52  ;;  %v6930_v52 = vld [vmem:[%s8676_s1 + $0xa0] sm:$0xff]   ;;  %6180 = vmatprep.mubr.bf16.mxu1 %v5349_v42  ;;  %v3153_v25 = vsel %vm7301_vm5, %v5614_v54, %v3152_v16  ;;  %v3156_v43 = vsel %vm7301_vm5, %v3154_v50, %v3155_v23  ;;  %v794_v45 = vrot.slane %v792_v28, 5  ;;  %v800_v49 = vrot.slane %v798_v29, 5  ;;  %v5544_v40 = vld [vmem:[%s7117_s16 + $0xc8] sm:$0x1] }
  0x71   : > { %6210 = vmatprep.subr.bf16.mxu1 %v6927_v53  ;;  %v777_v27 = vsel %vm7153_vm2, %v772_v18, %v776_v2  ;;  %v5646_v4 = vcombine.low %v3153_v25, %v3156_v43  ;;  %v3159_v58 = vrot.slane %v5540_v24, 5  ;;  %v3162_v32 = vrot.slane %v5541_v34, 5  ;;  %v5600_v42 = vld [vmem:[%s7117_s16 + $0xc0] sm:$0xe]  ;;  %v7638_v23 = vld [vmem:[%s7117_s16 + $0x64] sm:$0xf] }
  0x72   : > { %6385 = vmatmul.mubr.bf16.gmra.mrb[20].mxu0 %v5644_v8  ;;  %v782_v8 = vrot.slane %v781_v13, 4  ;;  %v805_v15 = vor.u32 %v804_v11, %v800_v49  ;;  %v813_v47 = vshrl.u32 %v614_v44, 16  ;;  %v816_v59 = vshll.u32 %v614_v44, 16  ;;  %v617_v13 = vld [vmem:[%s7117_s16 + $0x60] sm:$0xf] }
  0x73   : > { %v3161_v2 = vrot.slane %v3159_v58, 4  ;;  %v822_v41 = vshll.u32 %v7616_v35, 16  ;;  %v826_v48 = vshrl.u32 %v7616_v35, 16  ;;  %v832_v18 = vshll.u32 %v7619_v46, 16  ;;  %v620_v44 = vld [vmem:[%s7117_s16 + $0x6c] sm:$0xf] }
  0x74   : > { %6211 = vmatpush3.bf16.msra.mxu1 %v6927_v53  ;;  %v5645_v53 = vcombine.low %v3146_v10, %v3149_v1  ;;  %v787_v63 = vsel %vm7153_vm2, %v782_v8, %v786_v12  ;;  %v795_v10 = vor.u32 %v794_v45, %v791_v9  ;;  %v3160_v1 = vsel %vm7301_vm5, %v5615_v14, %v3159_v58 }
  0x75   : > { %6212 = vmatprep.subr.bf16.mxu1 %v6930_v52  ;;  %v5350_v5 = vcombine.low %v777_v27, %v787_v63  ;;  %v806_v60 = vrot.slane %v805_v15, 4  ;;  %v818_v55 = vrot.slane %v816_v59, 5  ;;  %v3163_v54 = vsel %vm7301_vm5, %v3161_v2, %v3162_v32  ;;  %v7650_v63 = vld [vmem:[%s7117_s16 + $0x70] sm:$0xf]  ;;  %v6929_v59 = vld [vmem:[%s7117_s16 + $0x18] sm:$0xff]  }
  0x76   : > { %6388 = vmatprep.mubr.bf16.mxu0 %v5645_v53  ;;  %v796_v0 = vrot.slane %v795_v10, 4  ;;  %v815_v53 = vrot.slane %v813_v47, 4  ;;  %v824_v16 = vrot.slane %v822_v41, 5  ;;  %v5647_v24 = vcombine.low %v3160_v1, %v3163_v54 }
  0x77   : > { %6181 = vmatmul.mubr.bf16.gmra.mrb[8].mxu1 %v5350_v5  ;;  %v828_v50 = vrot.slane %v826_v48, 4  ;;  %v834_v29 = vrot.slane %v832_v18, 5  ;;  %v5616_v34 = vrot.slane %v5600_v42, 9  ;;  %v3166_v36 = vrot.slane %v5543_v61, 5 }
  0x78   : > { %6213 = vmatpush3.bf16.msra.mxu1 %v6930_v52  ;;  %v808_v52 = vshll.u32 %v7595_v17, 16  ;;  %v801_v12 = vsel %vm7153_vm2, %v796_v0, %v800_v49  ;;  %v819_v25 = vor.u32 %v818_v55, %v815_v53  ;;  %v3169_v9 = vrot.slane %v5544_v40, 5 }
  0x79   : > { %6214 = vmatprep.subr.bf16.mxu1 %v6934_v56  ;;  %v829_v8 = vor.u32 %v828_v50, %v824_v16  ;;  %v837_v38 = vshrl.u32 %v617_v13, 16  ;;  %v3167_v43 = vsel %vm7301_vm5, %v5616_v34, %v3166_v36  ;;  %v3168_v45 = vrot.slane %v3166_v36, 4 }
  0x7a   : > { %v810_v57 = vrot.slane %v808_v52, 5  ;;  %6389 = vmatmul.mubr.bf16.gmra.mrb[24].mxu0 %v5646_v4  ;;  %v820_v27 = vrot.slane %v819_v25, 4  ;;  %v840_v49 = vshll.u32 %v617_v13, 16  ;;  %v846_v52 = vshll.u32 %v7638_v23, 16  ;;  %v7655_v4 = vld [vmem:[%s8676_s1 + $0xc0] sm:$0xff]  }
  0x7b   : > { %6392 = vmatprep.mubr.bf16.mxu0 %v5647_v24  ;;  %v830_v14 = vrot.slane %v829_v8, 4  ;;  %v839_v5 = vrot.slane %v837_v38, 4  ;;  %v850_v10 = vshrl.u32 %v7638_v23, 16  ;;  %v3170_v58 = vsel %vm7301_vm5, %v3168_v45, %v3169_v9  ;;  %v7675_v13 = vld [vmem:[%s7117_s16 + $0x7c] sm:$0xf] }
  0x7c   : > { %6215 = vmatpush3.bf16.msra.mxu1 %v6934_v56  ;;  %v6942_v56 = vld [vmem:[%s8676_s1 + $0xb8] sm:$0xff]   ;;  %v811_v21 = vsel %vm7153_vm2, %v806_v60, %v810_v57  ;;  %v825_v11 = vsel %vm7153_vm2, %v820_v27, %v824_v16  ;;  %v7661_v57 = vld [vmem:[%s7117_s16 + $0x74] sm:$0x1]  ;;  %v842_v15 = vrot.slane %v840_v49, 5  ;;  %v848_v32 = vrot.slane %v846_v52, 5 }
  0x7d   : > { %6216 = vmatprep.subr.bf16.mxu1 %v6938_v7  ;;  %v5351_v28 = vcombine.low %v801_v12, %v811_v21  ;;  %v835_v61 = vsel %vm7153_vm2, %v830_v14, %v834_v29  ;;  %v5648_v0 = vcombine.low %v3167_v43, %v3170_v58  ;;  %v852_v1 = vrot.slane %v850_v10, 4  ;;  %v623_v12 = vld [vmem:[%s7117_s16 + $0x78] sm:$0xf]  ;;  %v7679_v29 = vld [vmem:[%s7117_s16 + $0x80] sm:$0x1]  ;;  %v6933_v58 = vld [vmem:[%s7117_s16 + $0x30] sm:$0xff]  }
  0x7e   : > { %v861_v2 = vshrl.u32 %v620_v44, 16  ;;  %v5352_v41 = vcombine.low %v825_v11, %v835_v61  ;;  %v843_v40 = vor.u32 %v842_v15, %v839_v5  ;;  %v864_v60 = vshll.u32 %v620_v44, 16  ;;  %v626_v49 = vld [vmem:[%s7117_s16 + $0x84] sm:$0xf]  ;;  %v7688_v52 = vld [vmem:[%s7117_s16 + $0x88] sm:$0xf] }
  0x7f   : > { %6184 = vmatprep.mubr.bf16.mxu1 %v5351_v28  ;;  %v853_v53 = vor.u32 %v852_v1, %v848_v32  ;;  %v870_v48 = vshll.u32 %v7650_v63, 16  ;;  %v874_v42 = vshrl.u32 %v7650_v63, 16  ;;  %v880_v18 = vshll.u32 %v7661_v57, 16  ;;  %v6931_v28 = vld [vmem:[%s7117_s16 + $0x24] sm:$0xff]   ;;  %v7694_v15 = vld [vmem:[%s7117_s16 + $0x8c] sm:$0x1] }
  0x80   : > { %6217 = vmatpush3.bf16.msra.mxu1 %v6938_v7  ;;  %v7643_v7 = vld [vmem:[%s7117_s16 + $0x68] sm:$0x1]  ;;  %v863_v55 = vrot.slane %v861_v2, 4  ;;  %v844_v54 = vrot.slane %v843_v40, 4  ;;  %v866_v16 = vrot.slane %v864_v60, 5  ;;  %v885_v21 = vshrl.u32 %v623_v12, 16 }
  0x81   : > { %6218 = vmatprep.subr.bf16.mxu1 %v6942_v56  ;;  %v856_v47 = vshll.u32 %v7643_v7, 16  ;;  %6185 = vmatmul.mubr.bf16.gmra.mrb[12].mxu1 %v5352_v41  ;;  %v854_v24 = vrot.slane %v853_v53, 4  ;;  %v872_v25 = vrot.slane %v870_v48, 5  ;;  %v876_v50 = vrot.slane %v874_v42, 4  ;;  %v6940_v48 = vld [vmem:[%s8676_s1 + $0x1d0] sm:$0xff]  }
  0x82   : > { %6393 = vmatmul.mubr.bf16.gmra.mrb[28].mxu0 %v5648_v0  ;;  %v888_v34 = vshll.u32 %v623_v12, 16  ;;  %v849_v36 = vsel %vm7153_vm2, %v844_v54, %v848_v32  ;;  %v867_v27 = vor.u32 %v866_v16, %v863_v55  ;;  %v882_v8 = vrot.slane %v880_v18, 5  ;;  %v6936_v0 = vld [vmem:[%s8676_s1 + $0x1c8] sm:$0xff]  }
  0x83   : > { %6412 = vmatprep.mubr.bf16.mxu0 %v6929_v59  ;;  %v887_v9 = vrot.slane %v885_v21, 4  ;;  %v877_v44 = vor.u32 %v876_v50, %v872_v25  ;;  %v894_v45 = vshll.u32 %v7675_v13, 16  ;;  %v898_v5 = vshrl.u32 %v7675_v13, 16 }
  0x84   : > { %6219 = vmatpush3.bf16.msra.mxu1 %v6942_v56  ;;  %v858_v56 = vrot.slane %v856_v47, 5  ;;  %v890_v43 = vrot.slane %v888_v34, 5  ;;  %v868_v14 = vrot.slane %v867_v27, 4  ;;  %v904_v10 = vshll.u32 %v7679_v29, 16  ;;  %v7718_v27 = vld [vmem:[%s7117_s16 + $0x98] sm:$0x1] }
  0x85   : > { %6252 = vmatprep.subr.bf16.mxu1 %v7655_v4  ;;  %v878_v32 = vrot.slane %v877_v44, 4  ;;  %v896_v59 = vrot.slane %v894_v45, 5  ;;  %v909_v61 = vshrl.u32 %v626_v49, 16  ;;  %v900_v2 = vrot.slane %v898_v5, 4  ;;  %v632_v5 = vld [vmem:[%s7117_s16 + $0x9c] sm:$0xf] }
  0x86   : > { %v859_v38 = vsel %vm7153_vm2, %v854_v24, %v858_v56  ;;  %v891_v47 = vor.u32 %v890_v43, %v887_v9  ;;  %v873_v1 = vsel %vm7153_vm2, %v868_v14, %v872_v25  ;;  %v906_v41 = vrot.slane %v904_v10, 5  ;;  %v6935_v24 = vld [vmem:[%s7117_s16 + $0x3c] sm:$0xff]   ;;  %v629_v25 = vld [vmem:[%s7117_s16 + $0x90] sm:$0xf] }
  0x87   : > { %v5353_v11 = vcombine.low %v849_v36, %v859_v38  ;;  %v912_v40 = vshll.u32 %v626_v49, 16  ;;  %v883_v56 = vsel %vm7153_vm2, %v878_v32, %v882_v8  ;;  %v911_v53 = vrot.slane %v909_v61, 4  ;;  %v7715_v36 = vld [vmem:[%s7117_s16 + $0x94] sm:$0xf]  ;;  %v6937_v8 = vld [vmem:[%s7117_s16 + $0x48] sm:$0xff]   ;;  %v6944_v61 = vld [vmem:[%s8676_s1 + $0x1d8] sm:$0xff]  }
  0x88   : > { %v892_v60 = vrot.slane %v891_v47, 4  ;;  %v918_v55 = vshll.u32 %v7688_v52, 16  ;;  %v5354_v42 = vcombine.low %v873_v1, %v883_v56  ;;  %v901_v12 = vor.u32 %v900_v2, %v896_v59 }
  0x89   : > { %6188 = vmatprep.mubr.bf16.mxu1 %v5353_v11  ;;  %v914_v54 = vrot.slane %v912_v40, 5  ;;  %v922_v16 = vshrl.u32 %v7688_v52, 16  ;;  %v928_v21 = vshll.u32 %v7694_v15, 16  ;;  %v933_v38 = vshrl.u32 %v629_v25, 16  ;;  %v7736_v40 = vld [vmem:[%s7117_s16 + $0xa4] sm:$0x1] }
  0x8a   : > { %6413 = vmatmul.mubr.bf16.vlgmr.msra.gmra.mrb[0].mxu0 %v6931_v28  ;;  %v920_v18 = vrot.slane %v918_v55, 5  ;;  %6189 = vmatmul.mubr.bf16.gmra.mrb[16].mxu1 %v5354_v42  ;;  %v897_v50 = vsel %vm7153_vm2, %v892_v60, %v896_v59  ;;  %v902_v28 = vrot.slane %v901_v12, 4  ;;  %v936_v44 = vshll.u32 %v629_v25, 16  ;;  %v7727_v59 = vld [vmem:[%s7117_s16 + $0xa0] sm:$0xf] }
  0x8b   : > { %6445 = vmatpush3.bf16.msra.mxu0 %v7559_v22  ;;  %6416 = vmatprep.mubr.bf16.mxu0 %v6933_v58  ;;  %v915_v22 = vor.u32 %v914_v54, %v911_v53  ;;  %v924_v34 = vrot.slane %v922_v16, 4  ;;  %v930_v9 = vrot.slane %v928_v21, 5  ;;  %v942_v43 = vshll.u32 %v7715_v36, 16 }
  0x8c   : > { %6446 = vmatprep.subr.bf16.mxu0 %v6936_v0  ;;  %v907_v45 = vsel %vm7153_vm2, %v902_v28, %v906_v41  ;;  %v946_v14 = vshrl.u32 %v7715_v36, 16  ;;  %v935_v58 = vrot.slane %v933_v38, 4  ;;  %v938_v32 = vrot.slane %v936_v44, 5  ;;  %v6948_v28 = vld [vmem:[%s8676_s1 + $0x1e0] sm:$0xff]  }
  0x8d   : > { %v916_v49 = vrot.slane %v915_v22, 4  ;;  %v925_v11 = vor.u32 %v924_v34, %v920_v18  ;;  %v5355_v10 = vcombine.low %v897_v50, %v907_v45  ;;  %v944_v47 = vrot.slane %v942_v43, 5  ;;  %v6939_v50 = vld [vmem:[%s7117_s16 + $0x54] sm:$0xff]   ;;  %v6941_v38 = vld [vmem:[%s7117_s16 + $0x60] sm:$0xff]   ;;  %v635_v43 = vld [vmem:[%s7117_s16 + $0xa8] sm:$0xf] }
  0x8e   : > { %v948_v41 = vrot.slane %v946_v14, 4  ;;  %v939_v56 = vor.u32 %v938_v32, %v935_v58  ;;  %v957_v60 = vshrl.u32 %v632_v5, 16  ;;  %v960_v53 = vshll.u32 %v632_v5, 16  ;;  %v7752_v45 = vld [vmem:[%s7117_s16 + $0xac] sm:$0xf] }
  0x8f   : > { %6447 = vmatpush3.bf16.msra.mxu0 %v6936_v0  ;;  %v921_v1 = vsel %vm7153_vm2, %v916_v49, %v920_v18  ;;  %v926_v2 = vrot.slane %v925_v11, 4  ;;  %v952_v0 = vshll.u32 %v7718_v27, 16  ;;  %6192 = vmatprep.mubr.bf16.mxu1 %v5355_v10  ;;  %v966_v55 = vshll.u32 %v7727_v59, 16  ;;  %v7757_v5 = vld [vmem:[%s7117_s16 + $0xb0] sm:$0x1] }
  0x90   : > { %6448 = vmatprep.subr.bf16.mxu0 %v6940_v48  ;;  %v949_v12 = vor.u32 %v948_v41, %v944_v47  ;;  %v970_v16 = vshrl.u32 %v7727_v59, 16  ;;  %v940_v21 = vrot.slane %v939_v56, 4  ;;  %v962_v25 = vrot.slane %v960_v53, 5  ;;  %v638_v53 = vld [vmem:[%s7117_s16 + $0xb4] sm:$0xf] }
  0x91   : > { %v931_v42 = vsel %vm7153_vm2, %v926_v2, %v930_v9  ;;  %v954_v54 = vrot.slane %v952_v0, 5  ;;  %v968_v34 = vrot.slane %v966_v55, 5  ;;  %v981_v10 = vshrl.u32 %v635_v43, 16  ;;  %v6952_v2 = vld [vmem:[%s8676_s1 + $0x1e8] sm:$0xff]  }
  0x92   : > { %6417 = vmatmul.mubr.bf16.gmra.mrb[4].mxu0 %v6935_v24  ;;  %v5356_v18 = vcombine.low %v921_v1, %v931_v42  ;;  %v959_v24 = vrot.slane %v957_v60, 4  ;;  %v950_v22 = vrot.slane %v949_v12, 4  ;;  %v972_v9 = vrot.slane %v970_v16, 4  ;;  %v7769_v12 = vld [vmem:[%s7117_s16 + $0xb8] sm:$0xf] }
  0x93   : > { %6420 = vmatprep.mubr.bf16.mxu0 %v6937_v8  ;;  %6449 = vmatpush3.bf16.msra.mxu0 %v6940_v48  ;;  %v976_v8 = vshll.u32 %v7736_v40, 16  ;;  %v945_v48 = vsel %vm7153_vm2, %v940_v21, %v944_v47  ;;  %v984_v1 = vshll.u32 %v635_v43, 16  ;;  %v990_v47 = vshll.u32 %v7752_v45, 16 }
  0x94   : > { %6450 = vmatprep.subr.bf16.mxu0 %v6944_v61  ;;  %6193 = vmatmul.mubr.bf16.gmra.mrb[20].mxu1 %v5356_v18  ;;  %v963_v44 = vor.u32 %v962_v25, %v959_v24  ;;  %v955_v49 = vsel %vm7153_vm2, %v950_v22, %v954_v54  ;;  %v973_v11 = vor.u32 %v972_v9, %v968_v34  ;;  %v983_v0 = vrot.slane %v981_v10, 4  ;;  %v7772_v54 = vld [vmem:[%s7117_s16 + $0xbc] sm:$0x1]  ;;  %v6956_v25 = vld [vmem:[%s8676_s1 + $0x1f0] sm:$0xff]   ;;  %v6989_v10 = vld [vmem:[%s7117_s16 + $0x4] sm:$0xf] }
  0x95   : > { %v978_v14 = vrot.slane %v976_v8, 5  ;;  %v5357_v58 = vcombine.low %v945_v48, %v955_v49  ;;  %v994_v56 = vshrl.u32 %v7752_v45, 16  ;;  %v1000_v60 = vshll.u32 %v7757_v5, 16  ;;  %v6943_v8 = vld [vmem:[%s7117_s16 + $0x6c] sm:$0xff]  }
  0x96   : > { %v964_v32 = vrot.slane %v963_v44, 4  ;;  %v974_v41 = vrot.slane %v973_v11, 4  ;;  %v986_v55 = vrot.slane %v984_v1, 5  ;;  %v992_v42 = vrot.slane %v990_v47, 5 }
  0x97   : > { %6451 = vmatpush3.bf16.msra.mxu0 %v6944_v61  ;;  %6196 = vmatprep.mubr.bf16.mxu1 %v5357_v58  ;;  %v996_v18 = vrot.slane %v994_v56, 4  ;;  %v1002_v21 = vrot.slane %v1000_v60, 5  ;;  %v1005_v24 = vshrl.u32 %v638_v53, 16  ;;  %v1014_v9 = vshll.u32 %v7769_v12, 16 }
  0x98   : > { %6452 = vmatprep.subr.bf16.mxu0 %v6948_v28  ;;  %v969_v61 = vsel %vm7153_vm2, %v964_v32, %v968_v34  ;;  %v979_v16 = vsel %vm7153_vm2, %v974_v41, %v978_v14  ;;  %v987_v22 = vor.u32 %v986_v55, %v983_v0  ;;  %v1008_v34 = vshll.u32 %v638_v53, 16  ;;  %v6960_v32 = vld [vmem:[%s8676_s1 + $0x1f8] sm:$0xff]   ;;  %v6990_v0 = vld [vmem:[%s7117_s16 + $0x8] sm:$0x1] }
  0x99   : > { %v997_v48 = vor.u32 %v996_v18, %v992_v42  ;;  %v1007_v44 = vrot.slane %v1005_v24, 4  ;;  %v1018_v43 = vshrl.u32 %v7769_v12, 16  ;;  %v1016_v14 = vrot.slane %v1014_v9, 5  ;;  %v6992_v9 = vld [vmem:[%s7117_s16 + $0x14] sm:$0x1] }
  0x9a   : > { %6421 = vmatmul.mubr.bf16.gmra.mrb[8].mxu0 %v6939_v50  ;;  %v5358_v50 = vcombine.low %v969_v61, %v979_v16  ;;  %v988_v49 = vrot.slane %v987_v22, 4  ;;  %v1010_v11 = vrot.slane %v1008_v34, 5  ;;  %v1419_v58 = vrot.slane %v6989_v10, 5  ;;  %v1350_v61 = vld [vmem:[%s7117_s16] sm:$0xe] }
  0x9b   : > { %6424 = vmatprep.mubr.bf16.mxu0 %v6941_v38  ;;  %6453 = vmatpush3.bf16.msra.mxu0 %v6948_v28  ;;  %v1024_v38 = vshll.u32 %v7772_v54, 16  ;;  %v6945_v28 = vld [vmem:[%s7117_s16 + $0x78] sm:$0xff]   ;;  %v998_v1 = vrot.slane %v997_v48, 4  ;;  %v1020_v47 = vrot.slane %v1018_v43, 4  ;;  %v1422_v56 = vrot.slane %v6990_v0, 5 }
  0x9c   : > { %6454 = vmatprep.subr.bf16.mxu0 %v6952_v2  ;;  %6197 = vmatmul.mubr.bf16.gmra.mrb[24].mxu1 %v5358_v50  ;;  %v993_v60 = vsel %vm7153_vm2, %v988_v49, %v992_v42  ;;  %v1011_v53 = vor.u32 %v1010_v11, %v1007_v44  ;;  %v1421_v55 = vrot.slane %v1419_v58, 4  ;;  %v6991_v16 = vld [vmem:[%s7117_s16 + $0x10] sm:$0xf]  ;;  %v5369_v22 = vrot.slane %v1350_v61, 9  ;;  %v1351_v34 = vld [vmem:[%s7117_s16 + $0xc] sm:$0xe] }
  0x9d   : > { %v1026_v41 = vrot.slane %v1024_v38, 5  ;;  %v1426_v18 = vrot.slane %v6991_v16, 5  ;;  %v1003_v24 = vsel %vm7153_vm2, %v998_v1, %v1002_v21  ;;  %v1021_v50 = vor.u32 %v1020_v47, %v1016_v14  ;;  %v1352_v10 = vld [vmem:[%s7117_s16 + $0x18] sm:$0xe]  ;;  %v6949_v16 = vld [vmem:[%s7117_s16 + $0x90] sm:$0xff]  }
  0x9e   : > { %v1429_v48 = vrot.slane %v6992_v9, 5  ;;  %v1012_v43 = vrot.slane %v1011_v53, 4  ;;  %v1423_v42 = vsel %vm7301_vm5, %v1421_v55, %v1422_v56  ;;  %v5370_v44 = vrot.slane %v1351_v34, 9  ;;  %v6993_v56 = vld [vmem:[%s7117_s16 + $0x1c] sm:$0xf] }
  0x9f   : > { %6455 = vmatpush3.bf16.msra.mxu0 %v6952_v2  ;;  %v5359_v2 = vcombine.low %v993_v60, %v1003_v24  ;;  %v1022_v38 = vrot.slane %v1021_v50, 4  ;;  %v1420_v21 = vsel %vm7301_vm5, %v5369_v22, %v1419_v58  ;;  %v1428_v49 = vrot.slane %v1426_v18, 4 }
  0xa0   : > { %6456 = vmatprep.subr.bf16.mxu0 %v6956_v25  ;;  %v1017_v11 = vsel %vm7153_vm2, %v1012_v43, %v1016_v14  ;;  %v5401_v47 = vcombine.low %v1420_v21, %v1423_v42  ;;  %v5371_v0 = vrot.slane %v1352_v10, 9  ;;  %v1433_v60 = vrot.slane %v6993_v56, 5  ;;  %v1355_v43 = vld [vmem:[%s7117_s16 + $0x3c] sm:$0xe]  ;;  %v7830_v42 = vld [vmem:[%s8676_s1 + $0x200] sm:$0xff]  }
  0xa1   : > { %6200 = vmatprep.mubr.bf16.mxu1 %v5359_v2  ;;  %v1027_v1 = vsel %vm7153_vm2, %v1022_v38, %v1026_v41  ;;  %v1440_v61 = vrot.slane %v7484_v19, 5  ;;  %v1443_v24 = vrot.slane %v7501_v37, 5  ;;  %v1447_v50 = vrot.slane %v7530_v6, 5  ;;  %v1354_v19 = vld [vmem:[%s7117_s16 + $0x30] sm:$0xe]  ;;  %v6950_v38 = vld [vmem:[%s8676_s1 + $0xc8] sm:$0xff]  }
  0xa2   : > { %6425 = vmatmul.mubr.bf16.gmra.mrb[12].mxu0 %v6943_v8  ;;  %v6947_v8 = vld [vmem:[%s7117_s16 + $0x84] sm:$0xff]   ;;  %v5360_v58 = vcombine.low %v1017_v11, %v1027_v1  ;;  %v1435_v55 = vrot.slane %v1433_v60, 4  ;;  %v1427_v22 = vsel %vm7301_vm5, %v5370_v44, %v1426_v18  ;;  %v1430_v34 = vsel %vm7301_vm5, %v1428_v49, %v1429_v48  ;;  %v6951_v21 = vld [vmem:[%s7117_s16 + $0x9c] sm:$0xff]  }
  0xa3   : > { %6428 = vmatprep.mubr.bf16.mxu0 %v6945_v28  ;;  %6457 = vmatpush3.bf16.msra.mxu0 %v6956_v25  ;;  %v6994_v28 = vld [vmem:[%s7117_s16 + $0x20] sm:$0x1]  ;;  %v1353_v25 = vld [vmem:[%s7117_s16 + $0x24] sm:$0xe]  ;;  %v1442_v41 = vrot.slane %v1440_v61, 4  ;;  %v1434_v9 = vsel %vm7301_vm5, %v5371_v0, %v1433_v60  ;;  %v1449_v2 = vrot.slane %v1447_v50, 4  ;;  %v5402_v44 = vcombine.low %v1427_v22, %v1430_v34 }
  0xa4   : > { %6458 = vmatprep.subr.bf16.mxu0 %v6960_v32  ;;  %v1436_v53 = vrot.slane %v6994_v28, 5  ;;  %v5372_v14 = vrot.slane %v1353_v25, 9  ;;  %6201 = vmatmul.mubr.bf16.gmra.mrb[28].mxu1 %v5360_v58  ;;  %v1450_v6 = vrot.slane %v7538_v31, 5  ;;  %v1454_v18 = vrot.slane %v7564_v39, 5  ;;  %v1356_v0 = vld [vmem:[%s7117_s16 + $0x48] sm:$0xe] }
  0xa5   : > { %6220 = vmatprep.mubr.bf16.mxu1 %v5401_v47  ;;  %v1457_v48 = vrot.slane %v7567_v51, 5  ;;  %v5374_v49 = vrot.slane %v1355_v43, 9  ;;  %v1461_v31 = vrot.slane %v7592_v20, 5  ;;  %v1464_v51 = vrot.slane %v7595_v17, 5  ;;  %v6954_v25 = vld [vmem:[%s8676_s1 + $0xd0] sm:$0xff]  }
  0xa6   : > { %v1437_v37 = vsel %vm7301_vm5, %v1435_v55, %v1436_v53  ;;  %v1456_v39 = vrot.slane %v1454_v18, 4  ;;  %v1441_v10 = vsel %vm7301_vm5, %v5372_v14, %v1440_v61  ;;  %v1444_v1 = vsel %vm7301_vm5, %v1442_v41, %v1443_v24  ;;  %v1357_v61 = vld [vmem:[%s7117_s16 + $0x54] sm:$0xe]  ;;  %v5730_v43 = vld [vmem:[%s7117_s16 + $0x1c] sm:$0xf] }
  0xa7   : > { %6459 = vmatpush3.bf16.msra.mxu0 %v6960_v32  ;;  %v5373_v32 = vrot.slane %v1354_v19, 9  ;;  %v5403_v11 = vcombine.low %v1434_v9, %v1437_v37  ;;  %v7846_v47 = vsel %vm7301_vm5, %v5374_v49, %v1454_v18  ;;  %v2528_v20 = vsel %vm7153_vm2, %v7493_v26, %v7470_v62  ;;  %v1358_v19 = vld [vmem:[%s7117_s16 + $0x60] sm:$0xe]  ;;  %v7009_v62 = vld [vmem:[%s7117_s16 + $0x94] sm:$0xf] }
  0xa8   : > { %6492 = vmatprep.subr.bf16.mxu0 %v7830_v42  ;;  %v7857_v56 = vsel %vm7301_vm5, %v1456_v39, %v1457_v48  ;;  %v5375_v60 = vrot.slane %v1356_v0, 9  ;;  %v1463_v58 = vrot.slane %v1461_v31, 4  ;;  %v1451_v28 = vsel %vm7301_vm5, %v1449_v2, %v1450_v6 }
  0xa9   : > { %v1448_v17 = vsel %vm7301_vm5, %v5373_v32, %v1447_v50  ;;  %v5406_v53 = vcombine.low %v7846_v47, %v7857_v56  ;;  %v1468_v55 = vrot.slane %v7616_v35, 5  ;;  %v5376_v41 = vrot.slane %v1357_v61, 9  ;;  %v6955_v32 = vld [vmem:[%s7117_s16 + $0xb4] sm:$0xff]  }
  0xaa   : > { %6429 = vmatmul.mubr.bf16.gmra.mrb[16].mxu0 %v6947_v8  ;;  %v6953_v8 = vld [vmem:[%s7117_s16 + $0xa8] sm:$0xff]   ;;  %v7872_v14 = vsel %vm7301_vm5, %v5375_v60, %v1461_v31  ;;  %v7876_v24 = vsel %vm7301_vm5, %v1463_v58, %v1464_v51  ;;  %v1475_v50 = vrot.slane %v7638_v23, 5  ;;  %v5404_v22 = vcombine.low %v1441_v10, %v1444_v1  ;;  %v6957_v51 = vld [vmem:[%s7117_s16 + $0xc0] sm:$0xff]  }
  0xab   : > { %6432 = vmatprep.mubr.bf16.mxu0 %v6949_v16  ;;  %v1471_v16 = vrot.slane %v7619_v46, 5  ;;  %v5407_v35 = vcombine.low %v7872_v14, %v7876_v24  ;;  %v1470_v46 = vrot.slane %v1468_v55, 4  ;;  %v7884_v34 = vsel %vm7301_vm5, %v5376_v41, %v1468_v55  ;;  %v1359_v31 = vld [vmem:[%s7117_s16 + $0x6c] sm:$0xe]  ;;  %v6961_v55 = vld [vmem:[%s8676_s1 + $0xe0] sm:$0xff]  }
  0xac   : > { %6221 = vmatmul.mubr.bf16.vlgmr.msra.gmra.mrb[0].mxu1 %v5402_v44  ;;  %v1477_v23 = vrot.slane %v1475_v50, 4  ;;  %v1482_v9 = vrot.slane %v7650_v63, 5  ;;  %v5405_v37 = vcombine.low %v1448_v17, %v1451_v28  ;;  %v5377_v6 = vrot.slane %v1358_v19, 9  ;;  %v5731_v63 = vld [vmem:[%s7117_s16 + $0x20] sm:$0x1] }
  0xad   : > { %6253 = vmatpush3.bf16.msra.mxu1 %v7655_v4  ;;  %6224 = vmatprep.mubr.bf16.mxu1 %v5403_v11  ;;  %v1478_v4 = vrot.slane %v7643_v7, 5  ;;  %v7891_v2 = vsel %vm7301_vm5, %v1470_v46, %v1471_v16  ;;  %v5729_v7 = vld [vmem:[%s7117_s16 + $0x18] sm:$0xf]  ;;  %v1485_v18 = vrot.slane %v7661_v57, 5  ;;  %v3951_v39 = vshll.u32 %v5731_v63, 16 }
  0xae   : > { %6254 = vmatprep.subr.bf16.mxu1 %v6950_v38  ;;  %v5408_v48 = vcombine.low %v7884_v34, %v7891_v2  ;;  %v3935_v49 = vshll.u32 %v5729_v7, 16  ;;  %v6958_v11 = vld [vmem:[%s8676_s1 + $0xd8] sm:$0xff]   ;;  %v7909_v57 = vsel %vm7301_vm5, %v5377_v6, %v1475_v50  ;;  %v5378_v17 = vrot.slane %v1359_v31, 9  ;;  %v5732_v16 = vld [vmem:[%s7117_s16 + $0x24] sm:$0xf] }
  0xaf   : > { %v7900_v44 = vsel %vm7301_vm5, %v1477_v23, %v1478_v4  ;;  %v3953_v28 = vrot.slane %v3951_v39, 5  ;;  %v1484_v61 = vrot.slane %v1482_v9, 4  ;;  %v7923_v46 = vld [vmem:[%s7117_s16 + $0x28] sm:$0xf]  ;;  %v7926_v4 = vld [vmem:[%s7117_s16 + $0x2c] sm:$0x1] }
  0xb0   : > { %v5409_v10 = vcombine.low %v7909_v57, %v7900_v44  ;;  %v3937_v0 = vrot.slane %v3935_v49, 5  ;;  %v7920_v50 = vsel %vm7301_vm5, %v5378_v17, %v1482_v9  ;;  %v3959_v19 = vshll.u32 %v5732_v16, 16  ;;  %v5735_v17 = vld [vmem:[%s7117_s16 + $0x30] sm:$0xf] }
  0xb1   : > { %6255 = vmatpush3.bf16.msra.mxu1 %v6950_v38  ;;  %v3941_v38 = vshll.u32 %v5730_v43, 16  ;;  %v3969_v9 = vshrl.u32 %v7923_v46, 16  ;;  %v1506_v57 = vrot.slane %v7718_v27, 5  ;;  %v6966_v27 = vld [vmem:[%s8676_s1 + $0x210] sm:$0xff]   ;;  %v2563_v26 = vshll.u32 %v7009_v62, 16 }
  0xb2   : > { %6433 = vmatmul.mubr.bf16.gmra.mrb[20].mxu0 %v6951_v21  ;;  %v3932_v21 = vshrl.u32 %v5729_v7, 16  ;;  %6256 = vmatprep.subr.bf16.mxu1 %v6954_v25  ;;  %v3961_v63 = vrot.slane %v3959_v19, 5 }
  0xb3   : > { %6436 = vmatprep.mubr.bf16.mxu0 %v6953_v8  ;;  %v3945_v8 = vshrl.u32 %v5730_v43, 16  ;;  %v3943_v60 = vrot.slane %v3941_v38, 5  ;;  %v3975_v38 = vshll.u32 %v7926_v4, 16 }
  0xb4   : > { %v3934_v1 = vrot.slane %v3932_v21, 4  ;;  %6225 = vmatmul.mubr.bf16.gmra.mrb[4].mxu1 %v5404_v22  ;;  %v3956_v22 = vshrl.u32 %v5732_v16, 16  ;;  %v6959_v21 = vld [vmem:[%s7117_s16 + $0xcc] sm:$0xff]  }
  0xb5   : > { %v3947_v58 = vrot.slane %v3945_v8, 4  ;;  %6228 = vmatprep.mubr.bf16.mxu1 %v5405_v37  ;;  %6257 = vmatpush3.bf16.msra.mxu1 %v6954_v25  ;;  %v7930_v37 = vsel %vm7301_vm5, %v1484_v61, %v1485_v18  ;;  %v3965_v25 = vshll.u32 %v7923_v46, 16  ;;  %v3971_v18 = vrot.slane %v3969_v9, 4  ;;  %v6963_v8 = vld [vmem:[%s8676_s1 + $0xe8] sm:$0xff]  }
  0xb6   : > { %v3938_v41 = vor.u32 %v3937_v0, %v3934_v1  ;;  %6258 = vmatprep.subr.bf16.mxu1 %v6958_v11  ;;  %v5410_v7 = vcombine.low %v7920_v50, %v7930_v37  ;;  %v3958_v43 = vrot.slane %v3956_v22, 4  ;;  %v1489_v0 = vrot.slane %v7675_v13, 5  ;;  %v1364_v37 = vld [vmem:[%s7117_s16 + $0xa8] sm:$0xe] }
  0xb7   : > { %v3948_v23 = vor.u32 %v3947_v58, %v3943_v60  ;;  %v3967_v31 = vrot.slane %v3965_v25, 5  ;;  %v7947_v58 = vld [vmem:[%s7117_s16 + $0x34] sm:$0xf]  ;;  %v1492_v22 = vrot.slane %v7679_v29, 5  ;;  %v3980_v25 = vshrl.u32 %v5735_v17, 16 }
  0xb8   : > { %v3939_v6 = vrot.slane %v3938_v41, 4  ;;  %v3977_v41 = vrot.slane %v3975_v38, 5  ;;  %v3983_v9 = vshll.u32 %v5735_v17, 16  ;;  %v1361_v29 = vld [vmem:[%s7117_s16 + $0x84] sm:$0xe]  ;;  %v3993_v56 = vshrl.u32 %v7947_v58, 16 }
  0xb9   : > { %v3949_v49 = vrot.slane %v3948_v23, 4  ;;  %6259 = vmatpush3.bf16.msra.mxu1 %v6958_v11  ;;  %v3972_v16 = vor.u32 %v3971_v18, %v3967_v31  ;;  %v7953_v11 = vld [vmem:[%s7117_s16 + $0x38] sm:$0x1]  ;;  %v1491_v23 = vrot.slane %v1489_v0, 4  ;;  %v3982_v24 = vrot.slane %v3980_v25, 4 }
  0xba   : > { %6437 = vmatmul.mubr.bf16.gmra.mrb[24].mxu0 %v6955_v32  ;;  %v1360_v32 = vld [vmem:[%s7117_s16 + $0x78] sm:$0xe]  ;;  %v3944_v39 = vsel %vm7153_vm2, %v3939_v6, %v3943_v60  ;;  %6260 = vmatprep.subr.bf16.mxu1 %v6961_v55  ;;  %v3989_v6 = vshll.u32 %v7947_v58, 16  ;;  %v3995_v38 = vrot.slane %v3993_v56, 4 }
  0xbb   : > { %6440 = vmatprep.mubr.bf16.mxu0 %v6957_v51  ;;  %v3962_v51 = vor.u32 %v3961_v63, %v3958_v43  ;;  %v5379_v1 = vrot.slane %v1360_v32, 9  ;;  %v3954_v61 = vsel %vm7153_vm2, %v3949_v49, %v3953_v28  ;;  %v3973_v28 = vrot.slane %v3972_v16, 4  ;;  %v6965_v43 = vld [vmem:[%s8676_s1 + $0xf0] sm:$0xff]   ;;  %v5738_v32 = vld [vmem:[%s7117_s16 + $0x3c] sm:$0xf] }
  0xbc   : > { %v5793_v19 = vcombine.low %v3944_v39, %v3954_v61  ;;  %6229 = vmatmul.mubr.bf16.gmra.mrb[8].mxu1 %v5406_v53  ;;  %v7974_v47 = vsel %vm7301_vm5, %v1491_v23, %v1492_v22  ;;  %v3999_v53 = vshll.u32 %v7953_v11, 16  ;;  %v3991_v18 = vrot.slane %v3989_v6, 5  ;;  %v7989_v61 = vld [vmem:[%s7117_s16 + $0x44] sm:$0x1]  ;;  %v6967_v25 = vld [vmem:[%s8676_s1 + $0xf8] sm:$0xff]  }
  0xbd   : > { %v3963_v60 = vrot.slane %v3962_v51, 4  ;;  %v7957_v13 = vsel %vm7301_vm5, %v5379_v1, %v1489_v0  ;;  %6232 = vmatprep.mubr.bf16.mxu1 %v5407_v35  ;;  %6261 = vmatpush3.bf16.msra.mxu1 %v6961_v55  ;;  %v3978_v49 = vsel %vm7153_vm2, %v3973_v28, %v3977_v41  ;;  %v3985_v35 = vrot.slane %v3983_v9, 5  ;;  %v7984_v55 = vld [vmem:[%s7117_s16 + $0x40] sm:$0xf] }
  0xbe   : > { %v5411_v14 = vcombine.low %v7957_v13, %v7974_v47  ;;  %6262 = vmatprep.subr.bf16.mxu1 %v6963_v8  ;;  %v4001_v39 = vrot.slane %v3999_v53, 5  ;;  %v1496_v1 = vrot.slane %v7688_v52, 5  ;;  %v1499_v0 = vrot.slane %v7694_v15, 5  ;;  %v6964_v52 = vld [vmem:[%s8676_s1 + $0x208] sm:$0xff]   ;;  %v1362_v15 = vld [vmem:[%s7117_s16 + $0x90] sm:$0xe] }
  0xbf   : > { %v3968_v63 = vsel %vm7153_vm2, %v3963_v60, %v3967_v31  ;;  %v3986_v51 = vor.u32 %v3985_v35, %v3982_v24  ;;  %v3996_v17 = vor.u32 %v3995_v38, %v3991_v18  ;;  %v4004_v16 = vshrl.u32 %v5738_v32, 16  ;;  %v8023_v35 = vld [vmem:[%s7117_s16 + $0x4c] sm:$0xf] }
  0xc0   : > { %v5794_v31 = vcombine.low %v3968_v63, %v3978_v49  ;;  %v4007_v41 = vshll.u32 %v5738_v32, 16  ;;  %v4013_v22 = vshll.u32 %v7984_v55, 16  ;;  %v1498_v23 = vrot.slane %v1496_v1, 4  ;;  %v5741_v49 = vld [vmem:[%s7117_s16 + $0x48] sm:$0xf] }
  0xc1   : > { %6263 = vmatpush3.bf16.msra.mxu1 %v6963_v8  ;;  %v4017_v28 = vshrl.u32 %v7984_v55, 16  ;;  %v3997_v8 = vrot.slane %v3996_v17, 4  ;;  %v4006_v9 = vrot.slane %v4004_v16, 4  ;;  %v4023_v32 = vshll.u32 %v7989_v61, 16 }
  0xc2   : > { %6441 = vmatmul.mubr.bf16.gmra.mrb[28].mxu0 %v6959_v21  ;;  %v5380_v21 = vrot.slane %v1361_v29, 9  ;;  %6264 = vmatprep.subr.bf16.mxu1 %v6965_v43  ;;  %v4009_v6 = vrot.slane %v4007_v41, 5  ;;  %v4015_v29 = vrot.slane %v4013_v22, 5  ;;  %v8011_v56 = vsel %vm7301_vm5, %v1498_v23, %v1499_v0  ;;  %v1363_v22 = vld [vmem:[%s7117_s16 + $0x9c] sm:$0xe] }
  0xc3   : > { %6460 = vmatprep.mubr.bf16.mxu0 %v5793_v19  ;;  %v3987_v19 = vrot.slane %v3986_v51, 4  ;;  %v4019_v53 = vrot.slane %v4017_v28, 4  ;;  %v4002_v34 = vsel %vm7153_vm2, %v3997_v8, %v4001_v39  ;;  %v5381_v24 = vrot.slane %v1362_v15, 9  ;;  %v5744_v8 = vld [vmem:[%s7117_s16 + $0x54] sm:$0xf] }
  0xc4   : > { %v7994_v60 = vsel %vm7301_vm5, %v5380_v21, %v1496_v1  ;;  %6233 = vmatmul.mubr.bf16.gmra.mrb[12].mxu1 %v5408_v48  ;;  %v4010_v48 = vor.u32 %v4009_v6, %v4006_v9  ;;  %v4025_v51 = vrot.slane %v4023_v32, 5  ;;  %v1503_v21 = vrot.slane %v7715_v36, 5  ;;  %v8052_v9 = vld [vmem:[%s7117_s16 + $0x58] sm:$0xf]  ;;  %v8057_v6 = vld [vmem:[%s8676_s1 + $0x100] sm:$0xff]  }
  0xc5   : > { %v3992_v63 = vsel %vm7153_vm2, %v3987_v19, %v3991_v18  ;;  %6236 = vmatprep.mubr.bf16.mxu1 %v5409_v10  ;;  %v5412_v2 = vcombine.low %v7994_v60, %v8011_v56  ;;  %6265 = vmatpush3.bf16.msra.mxu1 %v6965_v43  ;;  %v4020_v38 = vor.u32 %v4019_v53, %v4015_v29  ;;  %v8029_v10 = vld [vmem:[%s7117_s16 + $0x50] sm:$0x1]  ;;  %v4028_v39 = vshrl.u32 %v5741_v49, 16  ;;  %v6968_v32 = vld [vmem:[%s8676_s1 + $0x218] sm:$0xff]  }
  0xc6   : > { %v5795_v18 = vcombine.low %v3992_v63, %v4002_v34  ;;  %6266 = vmatprep.subr.bf16.mxu1 %v6967_v25  ;;  %v4011_v44 = vrot.slane %v4010_v48, 4  ;;  %v4031_v1 = vshll.u32 %v5741_v49, 16  ;;  %v8033_v43 = vsel %vm7301_vm5, %v5381_v24, %v1503_v21  ;;  %v8071_v24 = vld [vmem:[%s7117_s16 + $0x5c] sm:$0x1] }
  0xc7   : > { %v4021_v0 = vrot.slane %v4020_v38, 4  ;;  %v1505_v36 = vrot.slane %v1503_v21, 4  ;;  %v4030_v17 = vrot.slane %v4028_v39, 4  ;;  %v4041_v41 = vshrl.u32 %v8023_v35, 16  ;;  %v8087_v39 = vld [vmem:[%s7117_s16 + $0x64] sm:$0xf] }
  0xc8   : > { %v4033_v16 = vrot.slane %v4031_v1, 5  ;;  %v4047_v15 = vshll.u32 %v8029_v10, 16  ;;  %v5382_v34 = vrot.slane %v1363_v22, 9  ;;  %v1510_v48 = vrot.slane %v7727_v59, 5 }
  0xc9   : > { %6267 = vmatpush3.bf16.msra.mxu1 %v6967_v25  ;;  %v4026_v19 = vsel %vm7153_vm2, %v4021_v0, %v4025_v51  ;;  %v8047_v23 = vsel %vm7301_vm5, %v1505_v36, %v1506_v57  ;;  %v4043_v53 = vrot.slane %v4041_v41, 4  ;;  %v4052_v51 = vshrl.u32 %v5744_v8, 16 }
  0xca   : > { %6461 = vmatmul.mubr.bf16.vlgmr.msra.gmra.mrb[0].mxu0 %v5794_v31  ;;  %v4016_v31 = vsel %vm7153_vm2, %v4011_v44, %v4015_v29  ;;  %6540 = vmatprep.subr.bf16.mxu1 %v8057_v6  ;;  %v5413_v29 = vcombine.low %v8033_v43, %v8047_v23  ;;  %v4034_v63 = vor.u32 %v4033_v16, %v4030_v17  ;;  %v4049_v49 = vrot.slane %v4047_v15, 5  ;;  %v5747_v44 = vld [vmem:[%s7117_s16 + $0x60] sm:$0xf] }
  0xcb   : > { %6493 = vmatpush3.bf16.msra.mxu0 %v7830_v42  ;;  %6464 = vmatprep.mubr.bf16.mxu0 %v5795_v18  ;;  %v4037_v42 = vshll.u32 %v8023_v35, 16  ;;  %v5796_v25 = vcombine.low %v4016_v31, %v4026_v19  ;;  %v4055_v50 = vshll.u32 %v5744_v8, 16  ;;  %v1512_v59 = vrot.slane %v1510_v48, 4  ;;  %v6971_v16 = vld [vmem:[%s8676_s1 + $0x220] sm:$0xff]  }
  0xcc   : > { %6494 = vmatprep.subr.bf16.mxu0 %v6964_v52  ;;  %6237 = vmatmul.mubr.bf16.gmra.mrb[16].mxu1 %v5410_v7  ;;  %v4035_v18 = vrot.slane %v4034_v63, 4  ;;  %v8079_v7 = vsel %vm7301_vm5, %v5382_v34, %v1510_v48  ;;  %v4065_v21 = vshrl.u32 %v8052_v9, 16  ;;  %v4071_v36 = vshll.u32 %v8071_v24, 16 }
  0xcd   : > { %v4039_v28 = vrot.slane %v4037_v42, 5  ;;  %6240 = vmatprep.mubr.bf16.mxu1 %v5411_v14  ;;  %v4054_v14 = vrot.slane %v4052_v51, 4  ;;  %v4057_v57 = vrot.slane %v4055_v50, 5  ;;  %v5383_v17 = vrot.slane %v1364_v37, 9  ;;  %v8126_v50 = vld [vmem:[%s7117_s16 + $0x70] sm:$0xf] }
  0xce   : > { %v4067_v43 = vrot.slane %v4065_v21, 4  ;;  %v4073_v19 = vrot.slane %v4071_v36, 5  ;;  %v1517_v23 = vrot.slane %v7752_v45, 5  ;;  %v1520_v8 = vrot.slane %v7757_v5, 5  ;;  %v6974_v5 = vld [vmem:[%s8676_s1 + $0x228] sm:$0xff]  }
  0xcf   : > { %6495 = vmatpush3.bf16.msra.mxu0 %v6964_v52  ;;  %v1513_v52 = vrot.slane %v7736_v40, 5  ;;  %v4044_v38 = vor.u32 %v4043_v53, %v4039_v28  ;;  %v4061_v40 = vshll.u32 %v8052_v9, 16  ;;  %v4040_v13 = vsel %vm7153_vm2, %v4035_v18, %v4039_v28  ;;  %v8103_v28 = vld [vmem:[%s7117_s16 + $0x68] sm:$0x1]  ;;  %v1365_v53 = vld [vmem:[%s7117_s16 + $0xb4] sm:$0xe] }
  0xd0   : > { %6496 = vmatprep.subr.bf16.mxu0 %v6966_v27  ;;  %v4079_v63 = vshll.u32 %v5747_v44, 16  ;;  %v1518_v45 = vsel %vm7301_vm5, %v5383_v17, %v1517_v23  ;;  %v1519_v34 = vrot.slane %v1517_v23, 4  ;;  %v4085_v48 = vshll.u32 %v8087_v39, 16  ;;  %v8129_v21 = vld [vmem:[%s7117_s16 + $0x74] sm:$0x1] }
  0xd1   : > { %v4045_v47 = vrot.slane %v4044_v38, 4  ;;  %v8091_v1 = vsel %vm7301_vm5, %v1512_v59, %v1513_v52  ;;  %v4063_v0 = vrot.slane %v4061_v40, 5  ;;  %v4095_v51 = vshll.u32 %v8103_v28, 16  ;;  %v8144_v23 = vld [vmem:[%s7117_s16 + $0x7c] sm:$0xf] }
  0xd2   : > { %6465 = vmatmul.mubr.bf16.gmra.mrb[4].mxu0 %v5796_v25  ;;  %v5414_v31 = vcombine.low %v8079_v7, %v8091_v1  ;;  %v4076_v25 = vshrl.u32 %v5747_v44, 16  ;;  %v1521_v18 = vsel %vm7301_vm5, %v1519_v34, %v1520_v8  ;;  %v4087_v38 = vrot.slane %v4085_v48, 5  ;;  %v6977_v44 = vld [vmem:[%s8676_s1 + $0x230] sm:$0xff]   ;;  %v5753_v1 = vld [vmem:[%s7117_s16 + $0x78] sm:$0xf] }
  0xd3   : > { %6497 = vmatpush3.bf16.msra.mxu0 %v6966_v27  ;;  %v4050_v42 = vsel %vm7153_vm2, %v4045_v47, %v4049_v49  ;;  %v4058_v27 = vor.u32 %v4057_v57, %v4054_v14  ;;  %v4068_v22 = vor.u32 %v4067_v43, %v4063_v0  ;;  %v5415_v7 = vcombine.low %v1518_v45, %v1521_v18 }
  0xd4   : > { %6498 = vmatprep.subr.bf16.mxu0 %v6968_v32  ;;  %v5797_v41 = vcombine.low %v4040_v13, %v4050_v42  ;;  %6241 = vmatmul.mubr.bf16.gmra.mrb[20].mxu1 %v5412_v2  ;;  %v4078_v56 = vrot.slane %v4076_v25, 4  ;;  %v4081_v2 = vrot.slane %v4079_v63, 5  ;;  %v4097_v13 = vrot.slane %v4095_v51, 5 }
  0xd5   : > { %v4059_v15 = vrot.slane %v4058_v27, 4  ;;  %v4069_v49 = vrot.slane %v4068_v22, 4  ;;  %6244 = vmatprep.mubr.bf16.mxu1 %v5413_v29  ;;  %v5750_v29 = vld [vmem:[%s7117_s16 + $0x6c] sm:$0xf]  ;;  %v5384_v47 = vrot.slane %v1365_v53, 9  ;;  %v1524_v14 = vrot.slane %v7769_v12, 5 }
  0xd6   : > { %6468 = vmatprep.mubr.bf16.mxu0 %v5797_v41  ;;  %v4082_v59 = vor.u32 %v4081_v2, %v4078_v56  ;;  %v1527_v57 = vrot.slane %v7772_v54, 5  ;;  %v4100_v36 = vshrl.u32 %v5750_v29, 16  ;;  %v4103_v42 = vshll.u32 %v5750_v29, 16  ;;  %v8150_v53 = vld [vmem:[%s7117_s16 + $0x80] sm:$0x1] }
  0xd7   : > { %6499 = vmatpush3.bf16.msra.mxu0 %v6968_v32  ;;  %v4064_v60 = vsel %vm7153_vm2, %v4059_v15, %v4063_v0  ;;  %v4089_v32 = vshrl.u32 %v8087_v39, 16  ;;  %v4074_v52 = vsel %vm7153_vm2, %v4069_v49, %v4073_v19  ;;  %v1525_v27 = vsel %vm7301_vm5, %v5384_v47, %v1524_v14  ;;  %v6980_v49 = vld [vmem:[%s8676_s1 + $0x238] sm:$0xff]   ;;  %v5759_v47 = vld [vmem:[%s7117_s16 + $0x90] sm:$0xf] }
  0xd8   : > { %6500 = vmatprep.subr.bf16.mxu0 %v6971_v16  ;;  %v5798_v37 = vcombine.low %v4064_v60, %v4074_v52  ;;  %v4083_v0 = vrot.slane %v4082_v59, 4  ;;  %v1526_v17 = vrot.slane %v1524_v14, 4  ;;  %v4113_v41 = vshrl.u32 %v8126_v50, 16  ;;  %v8159_v52 = vld [vmem:[%s7117_s16 + $0x88] sm:$0xf] }
  0xd9   : > { %v4091_v40 = vrot.slane %v4089_v32, 4  ;;  %v4102_v22 = vrot.slane %v4100_v36, 4  ;;  %v4105_v19 = vrot.slane %v4103_v42, 5  ;;  %v4119_v63 = vshll.u32 %v8129_v21, 16 }
  0xda   : > { %6469 = vmatmul.mubr.bf16.gmra.mrb[8].mxu0 %v5798_v37  ;;  %v4088_v12 = vsel %vm7153_vm2, %v4083_v0, %v4087_v38  ;;  %v1528_v15 = vsel %vm7301_vm5, %v1526_v17, %v1527_v57  ;;  %v4115_v25 = vrot.slane %v4113_v41, 4  ;;  %v4124_v48 = vshrl.u32 %v5753_v1, 16  ;;  %v8164_v37 = vld [vmem:[%s7117_s16 + $0x8c] sm:$0x1] }
  0xdb   : > { %6501 = vmatpush3.bf16.msra.mxu0 %v6971_v16  ;;  %v4092_v43 = vor.u32 %v4091_v40, %v4087_v38  ;;  %v4109_v16 = vshll.u32 %v8126_v50, 16  ;;  %v5416_v45 = vcombine.low %v1525_v27, %v1528_v15  ;;  %v4106_v34 = vor.u32 %v4105_v19, %v4102_v22  ;;  %v6969_v57 = vld [vmem:[%s7117_s16 + $0xc] sm:$0xff]  }
  0xdc   : > { %6502 = vmatprep.subr.bf16.mxu0 %v6974_v5  ;;  %6245 = vmatmul.mubr.bf16.gmra.mrb[24].mxu1 %v5414_v31  ;;  %v4121_v2 = vrot.slane %v4119_v63, 5  ;;  %v4127_v32 = vshll.u32 %v5753_v1, 16  ;;  %v4126_v38 = vrot.slane %v4124_v48, 4  ;;  %v4133_v51 = vshll.u32 %v8144_v23, 16 }
  0xdd   : > { %v4093_v54 = vrot.slane %v4092_v43, 4  ;;  %v4111_v8 = vrot.slane %v4109_v16, 5  ;;  %6248 = vmatprep.mubr.bf16.mxu1 %v5415_v7  ;;  %v4107_v18 = vrot.slane %v4106_v34, 4  ;;  %v4137_v29 = vshrl.u32 %v8144_v23, 16 }
  0xde   : > { %v4129_v59 = vrot.slane %v4127_v32, 5  ;;  %v4143_v40 = vshll.u32 %v8150_v53, 16  ;;  %v4135_v1 = vrot.slane %v4133_v51, 5  ;;  %v4161_v19 = vshrl.u32 %v8159_v52, 16 }
  0xdf   : > { %6503 = vmatpush3.bf16.msra.mxu0 %v6974_v5  ;;  %v4098_v31 = vsel %vm7153_vm2, %v4093_v54, %v4097_v13  ;;  %v5756_v5 = vld [vmem:[%s7117_s16 + $0x84] sm:$0xf]  ;;  %v4116_v56 = vor.u32 %v4115_v25, %v4111_v8  ;;  %v4112_v14 = vsel %vm7153_vm2, %v4107_v18, %v4111_v8  ;;  %v4139_v0 = vrot.slane %v4137_v29, 4  ;;  %v8175_v54 = vld [vmem:[%s7117_s16 + $0x94] sm:$0xf] }
  0xe0   : > { %6504 = vmatprep.subr.bf16.mxu0 %v6977_v44  ;;  %v5799_v60 = vcombine.low %v4088_v12, %v4098_v31  ;;  %v4148_v13 = vshrl.u32 %v5756_v5, 16  ;;  %v4151_v43 = vshll.u32 %v5756_v5, 16  ;;  %v4130_v36 = vor.u32 %v4129_v59, %v4126_v38  ;;  %v8180_v8 = vld [vmem:[%s7117_s16 + $0x98] sm:$0x1]  ;;  %v5762_v5 = vld [vmem:[%s7117_s16 + $0x9c] sm:$0xf] }
  0xe1   : > { %v4117_v7 = vrot.slane %v4116_v56, 4  ;;  %v4145_v42 = vrot.slane %v4143_v40, 5  ;;  %v4140_v16 = vor.u32 %v4139_v0, %v4135_v1  ;;  %v4157_v12 = vshll.u32 %v8159_v52, 16  ;;  %v6972_v38 = vld [vmem:[%s7117_s16 + $0x24] sm:$0xff]  }
  0xe2   : > { %6472 = vmatprep.mubr.bf16.mxu0 %v5799_v60  ;;  %v4150_v27 = vrot.slane %v4148_v13, 4  ;;  %v4153_v41 = vrot.slane %v4151_v43, 5  ;;  %v4131_v22 = vrot.slane %v4130_v36, 4  ;;  %v4167_v15 = vshll.u32 %v8164_v37, 16 }
  0xe3   : > { %6505 = vmatpush3.bf16.msra.mxu0 %v6977_v44  ;;  %v4122_v44 = vsel %vm7153_vm2, %v4117_v7, %v4121_v2  ;;  %v4172_v25 = vshrl.u32 %v5759_v47, 16  ;;  %v4141_v63 = vrot.slane %v4140_v16, 4  ;;  %v4159_v34 = vrot.slane %v4157_v12, 5 }
  0xe4   : > { %6506 = vmatprep.subr.bf16.mxu0 %v6980_v49  ;;  %v5800_v17 = vcombine.low %v4112_v14, %v4122_v44  ;;  %6249 = vmatmul.mubr.bf16.gmra.mrb[28].mxu1 %v5416_v45  ;;  %v4154_v31 = vor.u32 %v4153_v41, %v4150_v27  ;;  %v4175_v48 = vshll.u32 %v5759_v47, 16  ;;  %v6970_v45 = vld [vmem:[%s7117_s16 + $0x18] sm:$0xff]   ;;  %v4163_v60 = vrot.slane %v4161_v19, 4  ;;  %v8193_v47 = vld [vmem:[%s7117_s16 + $0xa0] sm:$0xf] }
  0xe5   : > { %6268 = vmatprep.mubr.bf16.mxu1 %v6969_v57  ;;  %v4169_v56 = vrot.slane %v4167_v15, 5  ;;  %v4174_v2 = vrot.slane %v4172_v25, 4  ;;  %v4146_v32 = vsel %vm7153_vm2, %v4141_v63, %v4145_v42  ;;  %v4181_v29 = vshll.u32 %v8175_v54, 16  ;;  %v8196_v14 = vld [vmem:[%s7117_s16 + $0xa4] sm:$0x1] }
  0xe6   : > { %6473 = vmatmul.mubr.bf16.gmra.mrb[12].mxu0 %v5800_v17  ;;  %v4155_v18 = vrot.slane %v4154_v31, 4  ;;  %v4177_v51 = vrot.slane %v4175_v48, 5  ;;  %v4164_v59 = vor.u32 %v4163_v60, %v4159_v34  ;;  %v4185_v40 = vshrl.u32 %v8175_v54, 16  ;;  %v5765_v44 = vld [vmem:[%s7117_s16 + $0xa8] sm:$0xf] }
  0xe7   : > { %6507 = vmatpush3.bf16.msra.mxu0 %v6980_v49  ;;  %v4136_v49 = vsel %vm7153_vm2, %v4131_v22, %v4135_v1  ;;  %v4191_v13 = vshll.u32 %v8180_v8, 16  ;;  %v4183_v0 = vrot.slane %v4181_v29, 5  ;;  %v4196_v43 = vshrl.u32 %v5762_v5, 16  ;;  %v8207_v31 = vld [vmem:[%s7117_s16 + $0xac] sm:$0xf] }
  0xe8   : > { %v5801_v7 = vcombine.low %v4136_v49, %v4146_v32  ;;  %v4160_v57 = vsel %vm7153_vm2, %v4155_v18, %v4159_v34  ;;  %v4178_v1 = vor.u32 %v4177_v51, %v4174_v2  ;;  %v4165_v36 = vrot.slane %v4164_v59, 4  ;;  %v5768_v60 = vld [vmem:[%s7117_s16 + $0xb4] sm:$0xf]  ;;  %v6996_v2 = vld [vmem:[%s8676_s1 + $0x108] sm:$0xff]  }
  0xe9   : > { %v4187_v42 = vrot.slane %v4185_v40, 4  ;;  %v4193_v27 = vrot.slane %v4191_v13, 5  ;;  %v4199_v17 = vshll.u32 %v5762_v5, 16  ;;  %v4198_v41 = vrot.slane %v4196_v43, 4  ;;  %v6973_v13 = vld [vmem:[%s7117_s16 + $0x30] sm:$0xff]  }
  0xea   : > { %6476 = vmatprep.mubr.bf16.mxu0 %v5801_v7  ;;  %v4179_v16 = vrot.slane %v4178_v1, 4  ;;  %v4205_v12 = vshll.u32 %v8193_v47, 16  ;;  %v4209_v22 = vshrl.u32 %v8193_v47, 16  ;;  %v4170_v19 = vsel %vm7153_vm2, %v4165_v36, %v4169_v56  ;;  %v8229_v43 = vld [vmem:[%s7117_s16 + $0xbc] sm:$0x1] }
  0xeb   : > { %v4188_v15 = vor.u32 %v4187_v42, %v4183_v0  ;;  %v4201_v25 = vrot.slane %v4199_v17, 5  ;;  %v4215_v63 = vshll.u32 %v8196_v14, 16  ;;  %v5802_v34 = vcombine.low %v4160_v57, %v4170_v19  ;;  %v6975_v17 = vld [vmem:[%s7117_s16 + $0x3c] sm:$0xff]   ;;  %v6997_v19 = vld [vmem:[%s8676_s1 + $0x110] sm:$0xff]  }
  0xec   : > { %6269 = vmatmul.mubr.bf16.vlgmr.msra.gmra.mrb[0].mxu1 %v6970_v45  ;;  %v4184_v48 = vsel %vm7153_vm2, %v4179_v16, %v4183_v0  ;;  %v4207_v5 = vrot.slane %v4205_v12, 5  ;;  %v4211_v49 = vrot.slane %v4209_v22, 4  ;;  %v8213_v45 = vld [vmem:[%s7117_s16 + $0xb0] sm:$0x1]  ;;  %v4223_v29 = vshll.u32 %v5765_v44, 16 }
  0xed   : > { %6548 = vmatpush3.bf16.msra.mxu1 %v8057_v6  ;;  %6272 = vmatprep.mubr.bf16.mxu1 %v6972_v38  ;;  %v4189_v56 = vrot.slane %v4188_v15, 4  ;;  %v4202_v32 = vor.u32 %v4201_v25, %v4198_v41  ;;  %v4217_v18 = vrot.slane %v4215_v63, 5  ;;  %v4220_v6 = vshrl.u32 %v5765_v44, 16  ;;  %v8220_v38 = vld [vmem:[%s7117_s16 + $0xb8] sm:$0xf] }
  0xee   : > { %6541 = vmatprep.subr.bf16.mxu1 %v6996_v2  ;;  %6477 = vmatmul.mubr.bf16.gmra.mrb[16].mxu0 %v5802_v34  ;;  %v4212_v51 = vor.u32 %v4211_v49, %v4207_v5  ;;  %v4229_v7 = vshll.u32 %v8207_v31, 16  ;;  %v4233_v59 = vshrl.u32 %v8207_v31, 16  ;;  %v4239_v0 = vshll.u32 %v8213_v45, 16  ;;  %v5771_v41 = vld [vmem:[%s7117_s16 + $0xc0] sm:$0xf] }
  0xef   : > { %v4194_v40 = vsel %vm7153_vm2, %v4189_v56, %v4193_v27  ;;  %v4203_v57 = vrot.slane %v4202_v32, 4  ;;  %v4222_v1 = vrot.slane %v4220_v6, 4  ;;  %v4225_v44 = vrot.slane %v4223_v29, 5  ;;  %v8239_v25 = vld [vmem:[%s7117_s16 + $0xc4] sm:$0xf] }
  0xf0   : > { %v5803_v36 = vcombine.low %v4184_v48, %v4194_v40  ;;  %v4213_v42 = vrot.slane %v4212_v51, 4  ;;  %v4231_v16 = vrot.slane %v4229_v7, 5  ;;  %v4235_v22 = vrot.slane %v4233_v59, 4  ;;  %v6976_v40 = vld [vmem:[%s7117_s16 + $0x48] sm:$0xff]  }
  0xf1   : > { %6549 = vmatpush3.bf16.msra.mxu1 %v6996_v2  ;;  %v4208_v12 = vsel %vm7153_vm2, %v4203_v57, %v4207_v5  ;;  %v4241_v27 = vrot.slane %v4239_v0, 5  ;;  %v4244_v15 = vshrl.u32 %v5768_v60, 16  ;;  %v4226_v34 = vor.u32 %v4225_v44, %v4222_v1  ;;  %v6998_v0 = vld [vmem:[%s8676_s1 + $0x118] sm:$0xff]  }
  0xf2   : > { %6542 = vmatprep.subr.bf16.mxu1 %v6997_v19  ;;  %6480 = vmatprep.mubr.bf16.mxu0 %v5803_v36  ;;  %v4218_v63 = vsel %vm7153_vm2, %v4213_v42, %v4217_v18  ;;  %v4247_v48 = vshll.u32 %v5768_v60, 16  ;;  %v4253_v5 = vshll.u32 %v8220_v38, 16  ;;  %v4236_v56 = vor.u32 %v4235_v22, %v4231_v16  ;;  %v8247_v18 = vld [vmem:[%s7117_s16 + $0xc8] sm:$0x1]  ;;  %v5774_v60 = vld [vmem:[%s7117_s16 + $0xcc] sm:$0xf] }
  0xf3   : > { %v5804_v49 = vcombine.low %v4208_v12, %v4218_v63  ;;  %v4246_v2 = vrot.slane %v4244_v15, 4  ;;  %v4257_v32 = vshrl.u32 %v8220_v38, 16  ;;  %v4227_v6 = vrot.slane %v4226_v34, 4  ;;  %v8258_v12 = vld [vmem:[%s7117_s16 + $0xd0] sm:$0xf] }
  0xf4   : > { %6273 = vmatmul.mubr.bf16.gmra.mrb[4].mxu1 %v6973_v13  ;;  %v4249_v51 = vrot.slane %v4247_v48, 5  ;;  %v4255_v29 = vrot.slane %v4253_v5, 5  ;;  %v4263_v7 = vshll.u32 %v8229_v43, 16  ;;  %v4237_v59 = vrot.slane %v4236_v56, 4  ;;  %v6978_v48 = vld [vmem:[%s7117_s16 + $0x54] sm:$0xff]  }
  0xf5   : > { %6276 = vmatprep.mubr.bf16.mxu1 %v6975_v17  ;;  %6550 = vmatpush3.bf16.msra.mxu1 %v6997_v19  ;;  %v4259_v57 = vrot.slane %v4257_v32, 4  ;;  %v4268_v13 = vshrl.u32 %v5771_v41, 16  ;;  %v4271_v1 = vshll.u32 %v5771_v41, 16  ;;  %v4232_v36 = vsel %vm7153_vm2, %v4227_v6, %v4231_v16  ;;  %v8265_v16 = vld [vmem:[%s7117_s16 + $0xd4] sm:$0x1] }
  0xf6   : > { %6543 = vmatprep.subr.bf16.mxu1 %v6998_v0  ;;  %6481 = vmatmul.mubr.bf16.gmra.mrb[20].mxu0 %v5804_v49  ;;  %v4250_v42 = vor.u32 %v4249_v51, %v4246_v2  ;;  %v4265_v17 = vrot.slane %v4263_v7, 5  ;;  %v4277_v44 = vshll.u32 %v8239_v25, 16  ;;  %v4242_v41 = vsel %vm7153_vm2, %v4237_v59, %v4241_v27  ;;  %v5817_v56 = vld [vmem:[%s7117_s16 + $0x18] sm:$0xe]  ;;  %v6999_v27 = vld [vmem:[%s8676_s1 + $0x120] sm:$0xff]  }
  0xf7   : > { %v4260_v22 = vor.u32 %v4259_v57, %v4255_v29  ;;  %v4270_v19 = vrot.slane %v4268_v13, 4  ;;  %v4273_v15 = vrot.slane %v4271_v1, 5  ;;  %v5805_v63 = vcombine.low %v4232_v36, %v4242_v41 }
  0xf8   : > { %v4251_v34 = vrot.slane %v4250_v42, 4  ;;  %v4279_v5 = vrot.slane %v4277_v44, 5  ;;  %v4281_v49 = vshrl.u32 %v8239_v25, 16  ;;  %v4287_v6 = vshll.u32 %v8247_v18, 16  ;;  %v5818_v44 = vld [vmem:[%s7117_s16 + $0x24] sm:$0xe] }
  0xf9   : > { %6551 = vmatpush3.bf16.msra.mxu1 %v6998_v0  ;;  %v4261_v2 = vrot.slane %v4260_v22, 4  ;;  %v4274_v32 = vor.u32 %v4273_v15, %v4270_v19  ;;  %v4292_v51 = vshrl.u32 %v5774_v60, 16  ;;  %6484 = vmatprep.mubr.bf16.mxu0 %v5805_v63  ;;  %v4295_v57 = vshll.u32 %v5774_v60, 16  ;;  %v5819_v63 = vld [vmem:[%s7117_s16 + $0x30] sm:$0xe] }
  0xfa   : > { %6544 = vmatprep.subr.bf16.mxu1 %v6999_v27  ;;  %v4256_v7 = vsel %vm7153_vm2, %v4251_v34, %v4255_v29  ;;  %v4283_v59 = vrot.slane %v4281_v49, 4  ;;  %v4301_v13 = vshll.u32 %v8258_v12, 16  ;;  %v4289_v36 = vrot.slane %v4287_v6, 5  ;;  %v7000_v34 = vld [vmem:[%s8676_s1 + $0x128] sm:$0xff]   ;;  %v6979_v49 = vld [vmem:[%s7117_s16 + $0x60] sm:$0xff]  }
  0xfb   : > { %v4266_v1 = vsel %vm7153_vm2, %v4261_v2, %v4265_v17  ;;  %v4275_v0 = vrot.slane %v4274_v32, 4  ;;  %v4294_v42 = vrot.slane %v4292_v51, 4  ;;  %v4297_v19 = vrot.slane %v4295_v57, 5  ;;  %v7001_v32 = vld [vmem:[%s7117_s16 + $0x1c] sm:$0xf] }
  0xfc   : > { %6277 = vmatmul.mubr.bf16.gmra.mrb[8].mxu1 %v6976_v40  ;;  %v5806_v41 = vcombine.low %v4256_v7, %v4266_v1  ;;  %v4284_v22 = vor.u32 %v4283_v59, %v4279_v5  ;;  %v4303_v29 = vrot.slane %v4301_v13, 5  ;;  %v4305_v40 = vshrl.u32 %v8258_v12, 16  ;;  %v7002_v51 = vld [vmem:[%s7117_s16 + $0x20] sm:$0x1]  ;;  %v6981_v1 = vld [vmem:[%s7117_s16 + $0x6c] sm:$0xff]  }
  0xfd   : > { %6280 = vmatprep.mubr.bf16.mxu1 %v6978_v48  ;;  %6552 = vmatpush3.bf16.msra.mxu1 %v6999_v27  ;;  %v4280_v60 = vsel %vm7153_vm2, %v4275_v0, %v4279_v5  ;;  %v4311_v17 = vshll.u32 %v8265_v16, 16  ;;  %v5833_v15 = vrot.slane %v5817_v56, 9  ;;  %v4298_v2 = vor.u32 %v4297_v19, %v4294_v42 }
  0xfe   : > { %6545 = vmatprep.subr.bf16.mxu1 %v7000_v34  ;;  %6485 = vmatmul.mubr.bf16.gmra.mrb[24].mxu0 %v5806_v41  ;;  %v4285_v48 = vrot.slane %v4284_v22, 4  ;;  %v4703_v6 = vrot.slane %v7001_v32, 5  ;;  %v4706_v5 = vrot.slane %v7002_v51, 5  ;;  %v4307_v27 = vrot.slane %v4305_v40, 4  ;;  %v5820_v40 = vld [vmem:[%s7117_s16 + $0x3c] sm:$0xe] }
  0xff   : > { %v4313_v7 = vrot.slane %v4311_v17, 5  ;;  %v5834_v59 = vrot.slane %v5818_v44, 9  ;;  %v4710_v56 = vrot.slane %v7923_v46, 5  ;;  %v4299_v13 = vrot.slane %v4298_v2, 4  ;;  %v7003_v46 = vld [vmem:[%s8676_s1 + $0x130] sm:$0xff]  }
 0x100   : > { %v4290_v57 = vsel %vm7153_vm2, %v4285_v48, %v4289_v36  ;;  %v4704_v0 = vsel %vm7301_vm5, %v5833_v15, %v4703_v6  ;;  %v4705_v41 = vrot.slane %v4703_v6, 4  ;;  %v4308_v22 = vor.u32 %v4307_v27, %v4303_v29  ;;  %v5821_v6 = vld [vmem:[%s7117_s16 + $0x48] sm:$0xe] }
 0x101   : > { %6553 = vmatpush3.bf16.msra.mxu1 %v7000_v34  ;;  %v5807_v42 = vcombine.low %v4280_v60, %v4290_v57  ;;  %v8297_v19 = vsel %vm7301_vm5, %v5834_v59, %v4710_v56  ;;  %v4712_v44 = vrot.slane %v4710_v56, 4  ;;  %v4304_v36 = vsel %vm7153_vm2, %v4299_v13, %v4303_v29  ;;  %v5823_v57 = vld [vmem:[%s7117_s16 + $0x60] sm:$0xe]  ;;  %v6982_v13 = vld [vmem:[%s7117_s16 + $0x78] sm:$0xff]  }
 0x102   : > { %6546 = vmatprep.subr.bf16.mxu1 %v7003_v46  ;;  %v4707_v60 = vsel %vm7301_vm5, %v4705_v41, %v4706_v5  ;;  %v4713_v17 = vrot.slane %v7926_v4, 5  ;;  %v5835_v15 = vrot.slane %v5819_v63, 9  ;;  %v4309_v34 = vrot.slane %v4308_v22, 4  ;;  %v6983_v22 = vld [vmem:[%s7117_s16 + $0x84] sm:$0xff]  }
 0x103   : > { %6488 = vmatprep.mubr.bf16.mxu0 %v5807_v42  ;;  %v5865_v48 = vcombine.low %v4704_v0, %v4707_v60  ;;  %v4717_v2 = vrot.slane %v7947_v58, 5  ;;  %v4720_v32 = vrot.slane %v7953_v11, 5  ;;  %v5836_v51 = vrot.slane %v5820_v40, 9 }
 0x104   : > { %6281 = vmatmul.mubr.bf16.gmra.mrb[12].mxu1 %v6979_v49  ;;  %v8313_v29 = vsel %vm7301_vm5, %v4712_v44, %v4713_v17  ;;  %v4724_v4 = vrot.slane %v7984_v55, 5  ;;  %v4727_v63 = vrot.slane %v7989_v61, 5  ;;  %v5822_v49 = vld [vmem:[%s7117_s16 + $0x54] sm:$0xe]  ;;  %v4314_v58 = vsel %vm7153_vm2, %v4309_v34, %v4313_v7  ;;  %v7004_v55 = vld [vmem:[%s8676_s1 + $0x138] sm:$0xff]  }
 0x105   : > { %6284 = vmatprep.mubr.bf16.mxu1 %v6981_v1  ;;  %6554 = vmatpush3.bf16.msra.mxu1 %v7003_v46  ;;  %v5866_v11 = vcombine.low %v8297_v19, %v8313_v29  ;;  %v8324_v5 = vsel %vm7301_vm5, %v5835_v15, %v4717_v2  ;;  %v4719_v27 = vrot.slane %v4717_v2, 4  ;;  %v5808_v61 = vcombine.low %v4304_v36, %v4314_v58  ;;  %v5824_v36 = vld [vmem:[%s7117_s16 + $0x6c] sm:$0xe] }
 0x106   : > { %6547 = vmatprep.subr.bf16.mxu1 %v7004_v55  ;;  %v8331_v59 = vsel %vm7301_vm5, %v5836_v51, %v4724_v4  ;;  %v4726_v7 = vrot.slane %v4724_v4, 4  ;;  %v5837_v56 = vrot.slane %v5821_v6, 9  ;;  %v4731_v0 = vrot.slane %v8023_v35, 5  ;;  %v5521_v2 = vld [vmem:[%s7117_s16 + $0x6c] sm:$0xf] }
 0x107   : > { %v4721_v1 = vsel %vm7301_vm5, %v4719_v27, %v4720_v32  ;;  %v4734_v41 = vrot.slane %v8029_v10, 5  ;;  %v5838_v42 = vrot.slane %v5822_v49, 9  ;;  %6489 = vmatmul.mubr.bf16.gmra.mrb[28].mxu0 %v5808_v61  ;;  %v4738_v40 = vrot.slane %v8052_v9, 5  ;;  %v7005_v27 = vld [vmem:[%s7117_s16 + $0x70] sm:$0xf] }
 0x108   : > { %v5867_v19 = vcombine.low %v8324_v5, %v4721_v1  ;;  %v8343_v44 = vsel %vm7301_vm5, %v4726_v7, %v4727_v63  ;;  %v4741_v46 = vrot.slane %v8071_v24, 5  ;;  %6508 = vmatprep.mubr.bf16.mxu0 %v5865_v48  ;;  %v8352_v10 = vsel %vm7301_vm5, %v5837_v56, %v4731_v0  ;;  %v5825_v7 = vld [vmem:[%s7117_s16 + $0x78] sm:$0xe]  ;;  %v6984_v56 = vld [vmem:[%s7117_s16 + $0x90] sm:$0xff]  }
 0x109   : > { %6555 = vmatpush3.bf16.msra.mxu1 %v7004_v55  ;;  %v5868_v35 = vcombine.low %v8331_v59, %v8343_v44  ;;  %v4733_v60 = vrot.slane %v4731_v0, 4  ;;  %v5839_v17 = vrot.slane %v5823_v57, 9  ;;  %v8356_v15 = vsel %vm7301_vm5, %v5838_v42, %v4738_v40  ;;  %v7006_v0 = vld [vmem:[%s7117_s16 + $0x74] sm:$0x1]  ;;  %v5524_v42 = vld [vmem:[%s7117_s16 + $0x78] sm:$0xf] }
 0x10a   : > { %v4740_v34 = vrot.slane %v4738_v40, 4  ;;  %v4745_v9 = vrot.slane %v8087_v39, 5  ;;  %v4748_v24 = vrot.slane %v8103_v28, 5  ;;  %v5840_v32 = vrot.slane %v5824_v36, 9 }
 0x10b   : > { %v8363_v48 = vsel %vm7301_vm5, %v4733_v60, %v4734_v41  ;;  %v4752_v6 = vrot.slane %v8126_v50, 5  ;;  %v4755_v29 = vrot.slane %v8129_v21, 5  ;;  %v2482_v49 = vshrl.u32 %v5521_v2, 16 }
 0x10c   : > { %6285 = vmatmul.mubr.bf16.gmra.mrb[16].mxu1 %v6982_v13  ;;  %v5869_v39 = vcombine.low %v8352_v10, %v8363_v48  ;;  %v8371_v28 = vsel %vm7301_vm5, %v4740_v34, %v4741_v46  ;;  %v8375_v51 = vsel %vm7301_vm5, %v5839_v17, %v4745_v9  ;;  %v4747_v4 = vrot.slane %v4745_v9, 4  ;;  %v5826_v17 = vld [vmem:[%s7117_s16 + $0x84] sm:$0xe] }
 0x10d   : > { %6288 = vmatprep.mubr.bf16.mxu1 %v6983_v22  ;;  %v5870_v50 = vcombine.low %v8356_v15, %v8371_v28  ;;  %v8381_v21 = vsel %vm7301_vm5, %v5840_v32, %v4752_v6  ;;  %v4754_v63 = vrot.slane %v4752_v6, 4  ;;  %v2485_v5 = vshll.u32 %v5521_v2, 16  ;;  %v6985_v22 = vld [vmem:[%s7117_s16 + $0x9c] sm:$0xff]  }
 0x10e   : > { %v8385_v58 = vsel %vm7301_vm5, %v4747_v4, %v4748_v24  ;;  %v2491_v55 = vshll.u32 %v7005_v27, 16  ;;  %v2495_v61 = vshrl.u32 %v7005_v27, 16  ;;  %v2484_v1 = vrot.slane %v2482_v49, 4 }
 0x10f   : > { %v5871_v57 = vcombine.low %v8375_v51, %v8385_v58  ;;  %v8394_v13 = vsel %vm7301_vm5, %v4754_v63, %v4755_v29  ;;  %v2501_v41 = vshll.u32 %v7006_v0, 16  ;;  %6509 = vmatmul.mubr.bf16.vlgmr.msra.gmra.mrb[0].mxu0 %v5866_v11  ;;  %v2487_v46 = vrot.slane %v2485_v5, 5 }
 0x110   : > { %v5872_v40 = vcombine.low %v8381_v21, %v8394_v13  ;;  %v2493_v36 = vrot.slane %v2491_v55, 5  ;;  %v2497_v60 = vrot.slane %v2495_v61, 4  ;;  %6512 = vmatprep.mubr.bf16.mxu0 %v5867_v19  ;;  %v5841_v9 = vrot.slane %v5825_v7, 9  ;;  %v5527_v55 = vld [vmem:[%s7117_s16 + $0x84] sm:$0xf] }
 0x111   : > { %v2503_v34 = vrot.slane %v2501_v41, 5  ;;  %v4759_v24 = vrot.slane %v8144_v23, 5  ;;  %v4762_v2 = vrot.slane %v8150_v53, 5  ;;  %v2488_v32 = vor.u32 %v2487_v46, %v2484_v1  ;;  %v6986_v46 = vld [vmem:[%s7117_s16 + $0xa8] sm:$0xff]  }
 0x112   : > { %v2498_v6 = vor.u32 %v2497_v60, %v2493_v36  ;;  %v2506_v29 = vshrl.u32 %v5524_v42, 16  ;;  %v2509_v11 = vshll.u32 %v5524_v42, 16  ;;  %v5842_v49 = vrot.slane %v5826_v17, 9  ;;  %v7013_v21 = vld [vmem:[%s7117_s16 + $0xac] sm:$0xf] }
 0x113   : > { %v8406_v4 = vsel %vm7301_vm5, %v5841_v9, %v4759_v24  ;;  %v4761_v63 = vrot.slane %v4759_v24, 4  ;;  %v4766_v19 = vrot.slane %v8159_v52, 5  ;;  %v2489_v23 = vrot.slane %v2488_v32, 4 }
 0x114   : > { %6289 = vmatmul.mubr.bf16.gmra.mrb[20].mxu1 %v6984_v56  ;;  %v2499_v5 = vrot.slane %v2498_v6, 4  ;;  %v2508_v27 = vrot.slane %v2506_v29, 4  ;;  %v2511_v53 = vrot.slane %v2509_v11, 5  ;;  %v4769_v52 = vrot.slane %v8164_v37, 5 }
 0x115   : > { %6292 = vmatprep.mubr.bf16.mxu1 %v6985_v22  ;;  %v8412_v61 = vsel %vm7301_vm5, %v4761_v63, %v4762_v2  ;;  %v8416_v7 = vsel %vm7301_vm5, %v5842_v49, %v4766_v19  ;;  %v4768_v56 = vrot.slane %v4766_v19, 4  ;;  %v2494_v1 = vsel %vm7153_vm2, %v2489_v23, %v2493_v36  ;;  %v5827_v22 = vld [vmem:[%s7117_s16 + $0x90] sm:$0xe]  ;;  %v6987_v36 = vld [vmem:[%s7117_s16 + $0xb4] sm:$0xff]   ;;  %v7007_v2 = vld [vmem:[%s7117_s16 + $0x88] sm:$0xf] }
 0x116   : > { %v2504_v0 = vsel %vm7153_vm2, %v2499_v5, %v2503_v34  ;;  %v5873_v41 = vcombine.low %v8406_v4, %v8412_v61  ;;  %v2512_v42 = vor.u32 %v2511_v53, %v2508_v27  ;;  %v2530_v37 = vshrl.u32 %v5527_v55, 16  ;;  %v7008_v63 = vld [vmem:[%s7117_s16 + $0x8c] sm:$0x1]  ;;  %v5530_v23 = vld [vmem:[%s7117_s16 + $0x90] sm:$0xf] }
 0x117   : > { %v8427_v60 = vcombine.low %v2494_v1, %v2504_v0  ;;  %v8431_v17 = vsel %vm7301_vm5, %v4768_v56, %v4769_v52  ;;  %v2533_v9 = vshll.u32 %v5527_v55, 16  ;;  %6513 = vmatmul.mubr.bf16.gmra.mrb[4].mxu0 %v5868_v35  ;;  %v2539_v32 = vshll.u32 %v7007_v2, 16  ;;  %v5828_v1 = vld [vmem:[%s7117_s16 + $0x9c] sm:$0xe] }
 0x118   : > { %v2513_v34 = vrot.slane %v2512_v42, 4  ;;  %v5874_v24 = vcombine.low %v8416_v7, %v8431_v17  ;;  %v2543_v6 = vshrl.u32 %v7007_v2, 16  ;;  %6516 = vmatprep.mubr.bf16.mxu0 %v5869_v39  ;;  %v2532_v29 = vrot.slane %v2530_v37, 4  ;;  %v6988_v37 = vld [vmem:[%s7117_s16 + $0xc0] sm:$0xff]  }
 0x119   : > { %v2535_v11 = vrot.slane %v2533_v9, 5  ;;  %v2549_v49 = vshll.u32 %v7008_v63, 16  ;;  %v5843_v19 = vrot.slane %v5827_v22, 9  ;;  %v2541_v44 = vrot.slane %v2539_v32, 5  ;;  %v7010_v22 = vld [vmem:[%s7117_s16 + $0x98] sm:$0x1] }
 0x11a   : > { %v2518_v59 = vsel %vm7153_vm2, %v2513_v34, %v7465_v3  ;;  %v2545_v35 = vrot.slane %v2543_v6, 4  ;;  %v4773_v5 = vrot.slane %v8175_v54, 5  ;;  %v4776_v27 = vrot.slane %v8180_v8, 5  ;;  %v5533_v32 = vld [vmem:[%s7117_s16 + $0x9c] sm:$0xf] }
 0x11b   : > { %v8454_v10 = vcombine.low %v2518_v59, %v2528_v20  ;;  %v2536_v48 = vor.u32 %v2535_v11, %v2532_v29  ;;  %v2551_v39 = vrot.slane %v2549_v49, 5  ;;  %v2554_v55 = vshrl.u32 %v5530_v23, 16 }
 0x11c   : > { %6293 = vmatmul.mubr.bf16.gmra.mrb[24].mxu1 %v6986_v46  ;;  %v2546_v3 = vor.u32 %v2545_v35, %v2541_v44  ;;  %v8459_v54 = vsel %vm7301_vm5, %v5843_v19, %v4773_v5  ;;  %v4775_v53 = vrot.slane %v4773_v5, 4  ;;  %v2557_v52 = vshll.u32 %v5530_v23, 16 }
 0x11d   : > { %6296 = vmatprep.mubr.bf16.mxu1 %v6987_v36  ;;  %v2537_v56 = vrot.slane %v2536_v48, 4  ;;  %v2567_v20 = vshrl.u32 %v7009_v62, 16  ;;  %v2556_v42 = vrot.slane %v2554_v55, 4  ;;  %v2573_v46 = vshll.u32 %v7010_v22, 16  ;;  %v5829_v48 = vld [vmem:[%s7117_s16 + $0xa8] sm:$0xe] }
 0x11e   : > { %v2547_v0 = vrot.slane %v2546_v3, 4  ;;  %v8465_v8 = vsel %vm7301_vm5, %v4775_v53, %v4776_v27  ;;  %v2559_v34 = vrot.slane %v2557_v52, 5  ;;  %v2565_v2 = vrot.slane %v2563_v26, 5  ;;  %v5536_v62 = vld [vmem:[%s7117_s16 + $0xa8] sm:$0xf] }
 0x11f   : > { %v2542_v9 = vsel %vm7153_vm2, %v2537_v56, %v2541_v44  ;;  %v5875_v36 = vcombine.low %v8459_v54, %v8465_v8  ;;  %6517 = vmatmul.mubr.bf16.gmra.mrb[8].mxu0 %v5870_v50  ;;  %v2569_v29 = vrot.slane %v2567_v20, 4  ;;  %v2575_v11 = vrot.slane %v2573_v46, 5  ;;  %v7011_v50 = vld [vmem:[%s7117_s16 + $0xa0] sm:$0xf]  ;;  %v7012_v56 = vld [vmem:[%s7117_s16 + $0xa4] sm:$0x1] }
 0x120   : > { %v2552_v6 = vsel %vm7153_vm2, %v2547_v0, %v2551_v39  ;;  %v5844_v63 = vrot.slane %v5828_v1, 9  ;;  %6520 = vmatprep.mubr.bf16.mxu0 %v5871_v57  ;;  %v2560_v19 = vor.u32 %v2559_v34, %v2556_v42  ;;  %v4780_v23 = vrot.slane %v8193_v47, 5 }
 0x121   : > { %v5571_v49 = vcombine.low %v2542_v9, %v2552_v6  ;;  %v4783_v59 = vrot.slane %v8196_v14, 5  ;;  %v2570_v44 = vor.u32 %v2569_v29, %v2565_v2  ;;  %v2578_v15 = vshrl.u32 %v5533_v32, 16 }
 0x122   : > { %v2581_v28 = vshll.u32 %v5533_v32, 16  ;;  %v2587_v35 = vshll.u32 %v7011_v50, 16  ;;  %v2561_v5 = vrot.slane %v2560_v19, 4  ;;  %v8487_v51 = vsel %vm7301_vm5, %v5844_v63, %v4780_v23  ;;  %v5830_v63 = vld [vmem:[%s7117_s16 + $0xb4] sm:$0xe] }
 0x123   : > { %v4782_v58 = vrot.slane %v4780_v23, 4  ;;  %v2591_v57 = vshrl.u32 %v7011_v50, 16  ;;  %v2571_v47 = vrot.slane %v2570_v44, 4  ;;  %v2580_v14 = vrot.slane %v2578_v15, 4  ;;  %v7014_v19 = vld [vmem:[%s7117_s16 + $0xb0] sm:$0x1] }
 0x124   : > { %6297 = vmatmul.mubr.bf16.gmra.mrb[28].mxu1 %v6988_v37  ;;  %v2583_v39 = vrot.slane %v2581_v28, 5  ;;  %v2589_v27 = vrot.slane %v2587_v35, 5  ;;  %v2566_v3 = vsel %vm7153_vm2, %v2561_v5, %v2565_v2  ;;  %v2597_v52 = vshll.u32 %v7012_v56, 16  ;;  %v5831_v56 = vld [vmem:[%s7117_s16 + $0xc0] sm:$0xe] }
 0x125   : > { %6332 = vmatprep.mubr.bf16.mxu1 %v8427_v60  ;;  %v8495_v53 = vsel %vm7301_vm5, %v4782_v58, %v4783_v59  ;;  %v2593_v55 = vrot.slane %v2591_v57, 4  ;;  %v2576_v26 = vsel %vm7153_vm2, %v2571_v47, %v2575_v11  ;;  %v5845_v1 = vrot.slane %v5829_v48, 9  ;;  %v5539_v59 = vld [vmem:[%s7117_s16 + $0xb4] sm:$0xf] }
 0x126   : > { %v5876_v60 = vcombine.low %v8487_v51, %v8495_v53  ;;  %v2584_v20 = vor.u32 %v2583_v39, %v2580_v14  ;;  %v5572_v0 = vcombine.low %v2566_v3, %v2576_v26  ;;  %v2599_v22 = vrot.slane %v2597_v52, 5 }
 0x127   : > { %v2594_v42 = vor.u32 %v2593_v55, %v2589_v27  ;;  %v4787_v46 = vrot.slane %v8207_v31, 5  ;;  %6521 = vmatmul.mubr.bf16.gmra.mrb[12].mxu0 %v5872_v40  ;;  %v4790_v9 = vrot.slane %v8213_v45, 5  ;;  %v2602_v34 = vshrl.u32 %v5536_v62, 16 }
 0x128   : > { %v2585_v37 = vrot.slane %v2584_v20, 4  ;;  %v2605_v2 = vshll.u32 %v5536_v62, 16  ;;  %6524 = vmatprep.mubr.bf16.mxu0 %v5873_v41  ;;  %v2611_v13 = vshll.u32 %v7013_v21, 16  ;;  %v2615_v11 = vshrl.u32 %v7013_v21, 16 }
 0x129   : > { %v2595_v32 = vrot.slane %v2594_v42, 4  ;;  %v8513_v31 = vsel %vm7301_vm5, %v5845_v1, %v4787_v46  ;;  %v4789_v6 = vrot.slane %v4787_v46, 4  ;;  %v2604_v45 = vrot.slane %v2602_v34, 4  ;;  %v7016_v42 = vld [vmem:[%s7117_s16 + $0xbc] sm:$0x1] }
 0x12a   : > { %v2590_v40 = vsel %vm7153_vm2, %v2585_v37, %v2589_v27  ;;  %v2607_v29 = vrot.slane %v2605_v2, 5  ;;  %v2613_v41 = vrot.slane %v2611_v13, 5  ;;  %v2621_v23 = vshll.u32 %v7014_v19, 16  ;;  %v7015_v27 = vld [vmem:[%s7117_s16 + $0xb8] sm:$0xf] }
 0x12b   : > { %v2600_v4 = vsel %vm7153_vm2, %v2595_v32, %v2599_v22  ;;  %v8524_v61 = vsel %vm7301_vm5, %v4789_v6, %v4790_v9  ;;  %v5846_v35 = vrot.slane %v5830_v63, 9  ;;  %v4794_v5 = vrot.slane %v8220_v38, 5  ;;  %v5542_v46 = vld [vmem:[%s7117_s16 + $0xc0] sm:$0xf]  ;;  %v5832_v63 = vld [vmem:[%s7117_s16 + $0xcc] sm:$0xe] }
 0x12c   : > { %6333 = vmatmul.mubr.bf16.vlgmr.msra.gmra.mrb[16].mxu1 %v8454_v10  ;;  %v5573_v44 = vcombine.low %v2590_v40, %v2600_v4  ;;  %v5877_v15 = vcombine.low %v8513_v31, %v8524_v61  ;;  %v2608_v28 = vor.u32 %v2607_v29, %v2604_v45  ;;  %v2617_v10 = vrot.slane %v2615_v11, 4  ;;  %v7017_v40 = vld [vmem:[%s7117_s16 + $0xc4] sm:$0xf] }
 0x12d   : > { %6336 = vmatprep.mubr.bf16.mxu1 %v5571_v49  ;;  %v2623_v50 = vrot.slane %v2621_v23, 5  ;;  %v4797_v58 = vrot.slane %v8229_v43, 5  ;;  %v2626_v47 = vshrl.u32 %v5539_v59, 16  ;;  %v2629_v14 = vshll.u32 %v5539_v59, 16 }
 0x12e   : > { %v2609_v57 = vrot.slane %v2608_v28, 4  ;;  %v2618_v48 = vor.u32 %v2617_v10, %v2613_v41  ;;  %v8534_v49 = vsel %vm7301_vm5, %v5846_v35, %v4794_v5  ;;  %v4796_v39 = vrot.slane %v4794_v5, 4 }
 0x12f   : > { %v2635_v3 = vshll.u32 %v7015_v27, 16  ;;  %v2639_v55 = vshrl.u32 %v7015_v27, 16  ;;  %6525 = vmatmul.mubr.bf16.gmra.mrb[16].mxu0 %v5874_v24  ;;  %v2628_v52 = vrot.slane %v2626_v47, 4  ;;  %v2631_v62 = vrot.slane %v2629_v14, 5 }
 0x130   : > { %v2614_v38 = vsel %vm7153_vm2, %v2609_v57, %v2613_v41  ;;  %v2619_v43 = vrot.slane %v2618_v48, 4  ;;  %6528 = vmatprep.mubr.bf16.mxu0 %v5875_v36  ;;  %v4798_v26 = vsel %vm7301_vm5, %v4796_v39, %v4797_v58  ;;  %v2645_v22 = vshll.u32 %v7016_v42, 16  ;;  %v7018_v41 = vld [vmem:[%s7117_s16 + $0xc8] sm:$0x1]  ;;  %v8590_v42 = vld [vmem:[%s8677_s2] ss:$0 sm:$0xff] }
 0x131   : > { %v2637_v20 = vrot.slane %v2635_v3, 5  ;;  %v2641_v1 = vrot.slane %v2639_v55, 4  ;;  %v5878_v17 = vcombine.low %v8534_v49, %v4798_v26  ;;  %v2632_v24 = vor.u32 %v2631_v62, %v2628_v52 }
 0x132   : > { %v2624_v7 = vsel %vm7153_vm2, %v2619_v43, %v2623_v50  ;;  %v5847_v37 = vrot.slane %v5831_v56, 9  ;;  %v2647_v8 = vrot.slane %v2645_v22, 5  ;;  %v4801_v36 = vrot.slane %v8239_v25, 5 }
 0x133   : > { %v5574_v9 = vcombine.low %v2614_v38, %v2624_v7  ;;  %v2642_v54 = vor.u32 %v2641_v1, %v2637_v20  ;;  %v2633_v34 = vrot.slane %v2632_v24, 4  ;;  %v4804_v2 = vrot.slane %v8247_v18, 5 }
 0x134   : > { %6337 = vmatmul.mubr.bf16.gmra.mrb[20].mxu1 %v5572_v0  ;;  %v2650_v32 = vshrl.u32 %v5542_v46, 16  ;;  %v2653_v31 = vshll.u32 %v5542_v46, 16  ;;  %v4802_v21 = vsel %vm7301_vm5, %v5847_v37, %v4801_v36  ;;  %v4803_v13 = vrot.slane %v4801_v36, 4 }
 0x135   : > { %6340 = vmatprep.mubr.bf16.mxu1 %v5573_v44  ;;  %v2643_v6 = vrot.slane %v2642_v54, 4  ;;  %v2659_v0 = vshll.u32 %v7017_v40, 16  ;;  %v2638_v45 = vsel %vm7153_vm2, %v2633_v34, %v2637_v20  ;;  %v2663_v25 = vshrl.u32 %v7017_v40, 16 }
 0x136   : > { %v2652_v29 = vrot.slane %v2650_v32, 4  ;;  %v2655_v11 = vrot.slane %v2653_v31, 5  ;;  %v4805_v4 = vsel %vm7301_vm5, %v4803_v13, %v4804_v2  ;;  %v2669_v19 = vshll.u32 %v7018_v41, 16 }
 0x137   : > { %v2648_v18 = vsel %vm7153_vm2, %v2643_v6, %v2647_v8  ;;  %v2661_v61 = vrot.slane %v2659_v0, 5  ;;  %6529 = vmatmul.mubr.bf16.gmra.mrb[20].mxu0 %v5876_v60  ;;  %v5879_v59 = vcombine.low %v4802_v21, %v4805_v4  ;;  %v2665_v28 = vrot.slane %v2663_v25, 4 }
 0x138   : > { %v5575_v23 = vcombine.low %v2638_v45, %v2648_v18  ;;  %v2656_v44 = vor.u32 %v2655_v11, %v2652_v29  ;;  %6532 = vmatprep.mubr.bf16.mxu0 %v5877_v15  ;;  %v5848_v10 = vrot.slane %v5832_v63, 9  ;;  %v4808_v50 = vrot.slane %v8258_v12, 5 }
 0x139   : > { %v4811_v35 = vrot.slane %v8265_v16, 5  ;;  %v2666_v58 = vor.u32 %v2665_v28, %v2661_v61  ;;  %v2671_v57 = vrot.slane %v2669_v19, 5 }
 0x13a   : > { %v2657_v5 = vrot.slane %v2656_v44, 4  ;;  %v4809_v48 = vsel %vm7301_vm5, %v5848_v10, %v4808_v50  ;;  %v4810_v47 = vrot.slane %v4808_v50, 4 }
 0x13b   : > { %v2667_v53 = vrot.slane %v2666_v58, 4 }
 0x13c   : > { %6341 = vmatmul.mubr.bf16.gmra.mrb[24].mxu1 %v5574_v9  ;;  %v2662_v51 = vsel %vm7153_vm2, %v2657_v5, %v2661_v61  ;;  %v4812_v60 = vsel %vm7301_vm5, %v4810_v47, %v4811_v35 }
 0x13d   : > { %6344 = vmatprep.mubr.bf16.mxu1 %v5575_v23  ;;  %v2672_v12 = vsel %vm7153_vm2, %v2667_v53, %v2671_v57  ;;  %v5880_v16 = vcombine.low %v4809_v48, %v4812_v60 }
 0x13e   : > { %v5576_v15 = vcombine.low %v2662_v51, %v2672_v12 }
 0x13f   : > { %6533 = vmatmul.mubr.bf16.gmra.mrb[24].mxu0 %v5878_v17 }
 0x140   : > { %6536 = vmatprep.mubr.bf16.mxu0 %v5879_v59 }
 0x144   : > { %6345 = vmatmul.mubr.bf16.gmra.mrb[28].mxu1 %v5576_v15 }
 0x147   : > { %6537 = vmatmul.mubr.bf16.gmra.mrb[28].mxu0 %v5880_v16 }
 0x1bf   : > { %v6270_v14 = vpop.f32.mrb[0].mxu1 }
 0x1c0   : > { %v2082_v49 = vpop.f32.mrb[1].mxu1  ;;  %v6556_v22 = vadd.f32 %v6270_v14, %v8590_v42 }
 0x1c1   : > { %v6271_v39 = vpop.f32.mrb[2].mxu1  ;;  %v6558_v46 = vadd.f32 %v8590_v42, %v2082_v49 }
 0x1c2   : > { %v2085_v27 = vpop.f32.mrb[3].mxu1  ;;  %v6560_v17 = vadd.f32 %v6271_v39, %v8590_v42 }
 0x1c3   : > { %v6562_v9 = vadd.f32 %v8590_v42, %v2085_v27 }
 0x1c7   : > { %v6274_v3 = vpop.f32.mrb[4].mxu1 }
 0x1c8   : > { %v2098_v55 = vpop.f32.mrb[5].mxu1  ;;  %v6564_v13 = vadd.f32 %v6274_v3, %v8590_v42 }
 0x1c9   : > { %v6275_v56 = vpop.f32.mrb[6].mxu1  ;;  %v6566_v40 = vadd.f32 %v8590_v42, %v2098_v55 }
 0x1ca   : > { %v2101_v38 = vpop.f32.mrb[7].mxu1  ;;  %v6568_v45 = vadd.f32 %v6275_v56, %v8590_v42 }
 0x1cb   : > { %v6570_v25 = vadd.f32 %v8590_v42, %v2101_v38 }
 0x1cf   : > { %v6278_v30 = vpop.f32.mrb[8].mxu1 }
 0x1d0   : > { %v2114_v43 = vpop.f32.mrb[9].mxu1  ;;  %v6572_v28 = vadd.f32 %v6278_v30, %v8590_v42 }
 0x1d1   : > { %v6279_v52 = vpop.f32.mrb[10].mxu1  ;;  %v6574_v10 = vadd.f32 %v8590_v42, %v2114_v43 }
 0x1d2   : > { %v2117_v33 = vpop.f32.mrb[11].mxu1  ;;  %v6576_v35 = vadd.f32 %v6279_v52, %v8590_v42 }
 0x1d3   : > { %v6578_v57 = vadd.f32 %v8590_v42, %v2117_v33 }
 0x1d7   : > { %v8579_v62 = vpop.f32.mrb[12].mxu1 }
 0x1d8   : > { %v8581_v26 = vpop.f32.mrb[13].mxu1  ;;  %v6580_v49 = vadd.f32 %v8579_v62, %v8590_v42 }
 0x1d9   : > { %v8583_v20 = vpop.f32.mrb[14].mxu1  ;;  %v6582_v39 = vadd.f32 %v8590_v42, %v8581_v26 }
 0x1da   : > { %v8585_v1 = vpop.f32.mrb[15].mxu1  ;;  %v6584_v3 = vadd.f32 %v8583_v20, %v8590_v42 }
 0x1db   : > { %v6586_v38 = vadd.f32 %v8590_v42, %v8585_v1 }
 0x1e2   : > { %v6510_v7 = vpop.f32.mrb[0].mxu0 }
 0x1e3   : > { %v6557_v24 = vadd.f32 %v6556_v22, %v6510_v7  ;;  %v4976_v37 = vpop.f32.mrb[1].mxu0 }
 0x1e4   : > { %v6559_v54 = vadd.f32 %v6558_v46, %v4976_v37  ;;  %v6511_v8 = vpop.f32.mrb[2].mxu0 }
 0x1e5   : > { %v5137_v36 = vmax.f32 %v6557_v24, 0.0  ;;  %v6561_v34 = vadd.f32 %v6560_v17, %v6511_v8  ;;  %v4979_v2 = vpop.f32.mrb[3].mxu0 }
 0x1e6   : > { %v5135_v32 = vmax.f32 %v6559_v54, 0.0  ;;  %v6563_v31 = vadd.f32 %v6562_v9, %v4979_v2 }
 0x1e7   : > { %5169 = vst [vmem:[%s8600_s29 + $0x10] sm:$0xff] %v5137_v36  ;;  %v5138_v6 = vmax.f32 %v6561_v34, 0.0 }
 0x1e8   : > { %5167 = vst [vmem:[%s8600_s29] sm:$0xff] %v5135_v32  ;;  %v5136_v21 = vmax.f32 %v6563_v31, 0.0 }
 0x1e9   : > { %5170 = vst [vmem:[%s8600_s29 + $0x18] sm:$0xff] %v5138_v6 }
 0x1ea   : > { %5168 = vst [vmem:[%s8600_s29 + $0x8] sm:$0xff] %v5136_v21  ;;  %v6514_v0 = vpop.f32.mrb[4].mxu0 }
 0x1eb   : > { %v6565_v29 = vadd.f32 %v6564_v13, %v6514_v0  ;;  %v4992_v11 = vpop.f32.mrb[5].mxu0 }
 0x1ec   : > { %v6567_v63 = vadd.f32 %v6566_v40, %v4992_v11  ;;  %v6515_v18 = vpop.f32.mrb[6].mxu0 }
 0x1ed   : > { %v5141_v4 = vmax.f32 %v6565_v29, 0.0  ;;  %v6569_v61 = vadd.f32 %v6568_v45, %v6515_v18  ;;  %v4995_v41 = vpop.f32.mrb[7].mxu0 }
 0x1ee   : > { %v5139_v19 = vmax.f32 %v6567_v63, 0.0  ;;  %v6571_v23 = vadd.f32 %v6570_v25, %v4995_v41 }
 0x1ef   : > { %5173 = vst [vmem:[%s8600_s29 + $0x30] sm:$0xff] %v5141_v4  ;;  %v5142_v59 = vmax.f32 %v6569_v61, 0.0 }
 0x1f0   : > { %5171 = vst [vmem:[%s8600_s29 + $0x20] sm:$0xff] %v5139_v19  ;;  %v5140_v44 = vmax.f32 %v6571_v23, 0.0 }
 0x1f1   : > { %5174 = vst [vmem:[%s8600_s29 + $0x38] sm:$0xff] %v5142_v59 }
 0x1f2   : > { %5172 = vst [vmem:[%s8600_s29 + $0x28] sm:$0xff] %v5140_v44  ;;  %v6518_v50 = vpop.f32.mrb[8].mxu0 }
 0x1f3   : > { %v6573_v5 = vadd.f32 %v6572_v28, %v6518_v50  ;;  %v5008_v58 = vpop.f32.mrb[9].mxu0 }
 0x1f4   : > { %v6575_v48 = vadd.f32 %v6574_v10, %v5008_v58  ;;  %v6519_v47 = vpop.f32.mrb[10].mxu0 }
 0x1f5   : > { %v5145_v51 = vmax.f32 %v6573_v5, 0.0  ;;  %v6577_v53 = vadd.f32 %v6576_v35, %v6519_v47  ;;  %v5011_v60 = vpop.f32.mrb[11].mxu0 }
 0x1f6   : > { %v5143_v12 = vmax.f32 %v6575_v48, 0.0  ;;  %v6579_v16 = vadd.f32 %v6578_v57, %v5011_v60 }
 0x1f7   : > { %5177 = vst [vmem:[%s8600_s29 + $0x50] sm:$0xff] %v5145_v51  ;;  %v5146_v15 = vmax.f32 %v6577_v53, 0.0 }
 0x1f8   : > { %5175 = vst [vmem:[%s8600_s29 + $0x40] sm:$0xff] %v5143_v12  ;;  %v5144_v14 = vmax.f32 %v6579_v16, 0.0 }
 0x1f9   : > { %5178 = vst [vmem:[%s8600_s29 + $0x58] sm:$0xff] %v5146_v15 }
 0x1fa   : > { %5176 = vst [vmem:[%s8600_s29 + $0x48] sm:$0xff] %v5144_v14  ;;  %v6522_v27 = vpop.f32.mrb[12].mxu0 }
 0x1fb   : > { %v6581_v55 = vadd.f32 %v6580_v49, %v6522_v27  ;;  %v5024_v56 = vpop.f32.mrb[13].mxu0 }
 0x1fc   : > { %v6583_v30 = vadd.f32 %v6582_v39, %v5024_v56  ;;  %v6523_v43 = vpop.f32.mrb[14].mxu0 }
 0x1fd   : > { %v5149_v52 = vmax.f32 %v6581_v55, 0.0  ;;  %v6585_v33 = vadd.f32 %v6584_v3, %v6523_v43  ;;  %v5027_v62 = vpop.f32.mrb[15].mxu0 }
 0x1fe   : > { %v5147_v22 = vmax.f32 %v6583_v30, 0.0  ;;  %v6587_v46 = vadd.f32 %v6586_v38, %v5027_v62 }
 0x1ff   : > { %v6334_v26 = vpop.f32.mrb[16].mxu1  ;;  %5181 = vst [vmem:[%s8600_s29 + $0x70] sm:$0xff] %v5149_v52  ;;  %v5150_v17 = vmax.f32 %v6585_v33, 0.0 }
 0x200   : > { %v2900_v7 = vpop.f32.mrb[17].mxu1  ;;  %v6588_v20 = vadd.f32 %v6334_v26, %v8590_v42  ;;  %5179 = vst [vmem:[%s8600_s29 + $0x60] sm:$0xff] %v5147_v22  ;;  %v5148_v37 = vmax.f32 %v6587_v46, 0.0 }
 0x201   : > { %v6335_v24 = vpop.f32.mrb[18].mxu1  ;;  %v6590_v1 = vadd.f32 %v8590_v42, %v2900_v7  ;;  %5182 = vst [vmem:[%s8600_s29 + $0x78] sm:$0xff] %v5150_v17 }
 0x202   : > { %v2903_v9 = vpop.f32.mrb[19].mxu1  ;;  %v6592_v54 = vadd.f32 %v6335_v24, %v8590_v42  ;;  %5180 = vst [vmem:[%s8600_s29 + $0x68] sm:$0xff] %v5148_v37  ;;  %v6526_v8 = vpop.f32.mrb[16].mxu0 }
 0x203   : > { %v6594_v36 = vadd.f32 %v8590_v42, %v2903_v9  ;;  %v6589_v34 = vadd.f32 %v6588_v20, %v6526_v8  ;;  %v5040_v2 = vpop.f32.mrb[17].mxu0 }
 0x204   : > { %v6591_v32 = vadd.f32 %v6590_v1, %v5040_v2  ;;  %v6527_v31 = vpop.f32.mrb[18].mxu0 }
 0x205   : > { %v5153_v6 = vmax.f32 %v6589_v34, 0.0  ;;  %v6593_v21 = vadd.f32 %v6592_v54, %v6527_v31  ;;  %v5043_v13 = vpop.f32.mrb[19].mxu0 }
 0x206   : > { %v5151_v0 = vmax.f32 %v6591_v32, 0.0  ;;  %v6595_v45 = vadd.f32 %v6594_v36, %v5043_v13 }
 0x207   : > { %v6338_v40 = vpop.f32.mrb[20].mxu1  ;;  %5185 = vst [vmem:[%s8600_s29 + $0x90] sm:$0xff] %v5153_v6  ;;  %v5154_v11 = vmax.f32 %v6593_v21, 0.0 }
 0x208   : > { %v2916_v29 = vpop.f32.mrb[21].mxu1  ;;  %v6596_v25 = vadd.f32 %v6338_v40, %v8590_v42  ;;  %5183 = vst [vmem:[%s8600_s29 + $0x80] sm:$0xff] %v5151_v0  ;;  %v5152_v18 = vmax.f32 %v6595_v45, 0.0 }
 0x209   : > { %v6339_v63 = vpop.f32.mrb[22].mxu1  ;;  %v6598_v4 = vadd.f32 %v8590_v42, %v2916_v29  ;;  %5186 = vst [vmem:[%s8600_s29 + $0x98] sm:$0xff] %v5154_v11 }
 0x20a   : > { %v2919_v61 = vpop.f32.mrb[23].mxu1  ;;  %v6600_v41 = vadd.f32 %v6339_v63, %v8590_v42  ;;  %5184 = vst [vmem:[%s8600_s29 + $0x88] sm:$0xff] %v5152_v18  ;;  %v6530_v19 = vpop.f32.mrb[20].mxu0 }
 0x20b   : > { %v6602_v23 = vadd.f32 %v8590_v42, %v2919_v61  ;;  %v6597_v59 = vadd.f32 %v6596_v25, %v6530_v19  ;;  %v5056_v44 = vpop.f32.mrb[21].mxu0 }
 0x20c   : > { %v6599_v28 = vadd.f32 %v6598_v4, %v5056_v44  ;;  %v6531_v10 = vpop.f32.mrb[22].mxu0 }
 0x20d   : > { %v5157_v50 = vmax.f32 %v6597_v59, 0.0  ;;  %v6601_v35 = vadd.f32 %v6600_v41, %v6531_v10  ;;  %v5059_v5 = vpop.f32.mrb[23].mxu0 }
 0x20e   : > { %v5155_v57 = vmax.f32 %v6599_v28, 0.0  ;;  %v6603_v48 = vadd.f32 %v6602_v23, %v5059_v5 }
 0x20f   : > { %v6342_v58 = vpop.f32.mrb[24].mxu1  ;;  %5189 = vst [vmem:[%s8600_s29 + $0xb0] sm:$0xff] %v5157_v50  ;;  %v5158_v51 = vmax.f32 %v6601_v35, 0.0 }
 0x210   : > { %v2932_v47 = vpop.f32.mrb[25].mxu1  ;;  %v6604_v53 = vadd.f32 %v6342_v58, %v8590_v42  ;;  %5187 = vst [vmem:[%s8600_s29 + $0xa0] sm:$0xff] %v5155_v57  ;;  %v5156_v12 = vmax.f32 %v6603_v48, 0.0 }
 0x211   : > { %v6343_v60 = vpop.f32.mrb[26].mxu1  ;;  %v6606_v16 = vadd.f32 %v8590_v42, %v2932_v47  ;;  %5190 = vst [vmem:[%s8600_s29 + $0xb8] sm:$0xff] %v5158_v51 }
 0x212   : > { %v2935_v15 = vpop.f32.mrb[27].mxu1  ;;  %v6608_v14 = vadd.f32 %v6343_v60, %v8590_v42  ;;  %5188 = vst [vmem:[%s8600_s29 + $0xa8] sm:$0xff] %v5156_v12  ;;  %v6534_v49 = vpop.f32.mrb[24].mxu0 }
 0x213   : > { %v6610_v39 = vadd.f32 %v8590_v42, %v2935_v15  ;;  %v6605_v27 = vadd.f32 %v6604_v53, %v6534_v49  ;;  %v5072_v3 = vpop.f32.mrb[25].mxu0 }
 0x214   : > { %v6607_v55 = vadd.f32 %v6606_v16, %v5072_v3  ;;  %v6535_v56 = vpop.f32.mrb[26].mxu0 }
 0x215   : > { %v5161_v38 = vmax.f32 %v6605_v27, 0.0  ;;  %v6609_v30 = vadd.f32 %v6608_v14, %v6535_v56  ;;  %v5075_v43 = vpop.f32.mrb[27].mxu0 }
 0x216   : > { %v5159_v33 = vmax.f32 %v6607_v55, 0.0  ;;  %v6611_v62 = vadd.f32 %v6610_v39, %v5075_v43 }
 0x217   : > { %v6346_v52 = vpop.f32.mrb[28].mxu1  ;;  %5193 = vst [vmem:[%s8600_s29 + $0xd0] sm:$0xff] %v5161_v38  ;;  %v5162_v22 = vmax.f32 %v6609_v30, 0.0 }
 0x218   : > { %v2948_v26 = vpop.f32.mrb[29].mxu1  ;;  %v6612_v46 = vadd.f32 %v6346_v52, %v8590_v42  ;;  %5191 = vst [vmem:[%s8600_s29 + $0xc0] sm:$0xff] %v5159_v33  ;;  %v5160_v17 = vmax.f32 %v6611_v62, 0.0 }
 0x219   : > { %v6347_v7 = vpop.f32.mrb[30].mxu1  ;;  %v6614_v20 = vadd.f32 %v8590_v42, %v2948_v26  ;;  %5194 = vst [vmem:[%s8600_s29 + $0xd8] sm:$0xff] %v5162_v22 }
 0x21a   : > { %v2951_v24 = vpop.f32.mrb[31].mxu1  ;;  %v6616_v37 = vadd.f32 %v6347_v7, %v8590_v42  ;;  %5192 = vst [vmem:[%s8600_s29 + $0xc8] sm:$0xff] %v5160_v17  ;;  %v6538_v1 = vpop.f32.mrb[28].mxu0 }
 0x21b   : > { %v6618_v9 = vadd.f32 %v8590_v42, %v2951_v24  ;;  %v6613_v54 = vadd.f32 %v6612_v46, %v6538_v1  ;;  %v5088_v8 = vpop.f32.mrb[29].mxu0 }
 0x21c   : > { %v6615_v36 = vadd.f32 %v6614_v20, %v5088_v8  ;;  %v6539_v34 = vpop.f32.mrb[30].mxu0 }
 0x21d   : > { %v5165_v2 = vmax.f32 %v6613_v54, 0.0  ;;  %v6617_v32 = vadd.f32 %v6616_v37, %v6539_v34  ;;  %v5091_v31 = vpop.f32.mrb[31].mxu0 }
 0x21e   : > { %v5163_v6 = vmax.f32 %v6615_v36, 0.0  ;;  %v6619_v21 = vadd.f32 %v6618_v9, %v5091_v31 }
 0x21f   : > { %5197 = vst [vmem:[%s8600_s29 + $0xf0] sm:$0xff] %v5165_v2  ;;  %v5166_v13 = vmax.f32 %v6617_v32, 0.0 }
 0x220   : > { %5195 = vst [vmem:[%s8600_s29 + $0xe0] sm:$0xff] %v5163_v6  ;;  %v5164_v40 = vmax.f32 %v6619_v21, 0.0 }
 0x221   : > { %5198 = vst [vmem:[%s8600_s29 + $0xf8] sm:$0xff] %v5166_v13 }
 0x222   : > { %5196 = vst [vmem:[%s8600_s29 + $0xe8] sm:$0xff] %v5164_v40 }
 0x223 PF: > { %s13_s14 = sadd.s32 1, %s7041_s14   ;;  %s8683_s12 = smov %s7037_s13 }
 0x224   : > { %p10_p5 = scmp.ge.s32.totalorder %s13_s14, 4   ;;  %s8684_s13 = smov %s8686_s15 }
 0x226   :  { %12 = sbr.rel (!%p10_p5) target bundleno = 2 (0x2), region = 73 }

</bundles_post_ra>
